<compile_context>
chip_gen: v7x
topology: tpu7x:2x2x1
jax: 0.10.0
libtpu: 0.0.40
codegen_flags: <defaults>
</compile_context>

<pallas_src>
import functools

import jax
import jax.numpy as jnp
from jax import lax
from jax.experimental import pallas as pl
from jax.experimental.pallas import tpu as pltpu

NEG_SLOPE = 0.1   # LeakyReLU slope used by this WideResNet variant
BN_EPS = 1e-5


# ----------------------------- fused BasicBlock kernel ----------------------

def _basic_block_kernel(x_ref, bn1_ref, w1_ref, bn2_ref, w2_ref, *rest,
                        stride, equal, abr):
    """One fused WideResNet BasicBlock for a single image (grid over batch)."""
    if equal:
        o_ref, xpad_ref, hpad_ref = rest
        wsc_ref = None
    else:
        wsc_ref, o_ref, xpad_ref, hpad_ref = rest

    _, h_in, w_in, cin = x_ref.shape
    _, out_h, out_w, cout = o_ref.shape
    hw_in = h_in * w_in
    hw_out = out_h * out_w

    def bn_act(v, bn_ref):
        # Eval-mode BN folded to scale/shift (rows 0/1) + LeakyReLU(0.1), f32.
        bn = bn_ref[...].astype(jnp.float32)               # (2, C)
        y = v * bn[0:1, :] + bn[1:2, :]
        return jnp.where(y > 0, y, NEG_SLOPE * y)

    def conv3x3(pad_ref, rows, cols, cin_, w_ref):
        # im2col: 9 taps concatenated along K -> a single MXU matmul.
        taps = []
        for ky in range(3):
            for kx in range(3):
                t = pad_ref[pl.ds(ky, rows), pl.ds(kx, cols), :]
                taps.append(t.reshape(rows * cols, cin_))
        patches = jnp.concatenate(taps, axis=1)             # (rows*cols, 9*cin_)
        return jnp.dot(patches, w_ref[...].astype(jnp.float32),
                       preferred_element_type=jnp.float32)  # (rows*cols, cout)

    x = x_ref[0].astype(jnp.float32)                        # (H, W, Cin)

    # --- pre-activation branch structure (faithful to the PyTorch code) -----
    if equal:
        conv1_in = bn_act(x, bn1_ref)
        shortcut = x
    elif abr:
        act = bn_act(x, bn1_ref)
        conv1_in = act
        shortcut = act
    else:
        # In this PyTorch branch the bn1/relu1 output is discarded; conv1 and
        # the shortcut both consume the raw input.
        conv1_in = x
        shortcut = x

    # --- conv1 (3x3, pad 1), zero-padded into VMEM scratch -------------------
    xpad_ref[...] = jnp.zeros(xpad_ref.shape, xpad_ref.dtype)
    xpad_ref[pl.ds(1, h_in), pl.ds(1, w_in), :] = conv1_in
    h1 = conv3x3(xpad_ref, h_in, w_in, cin, w1_ref)          # stride-1 (H*W, Cout)

    shortcut_flat = shortcut.reshape(hw_in, cin)

    if stride > 1:
        # In-VMEM decimation of the stride-1 conv output (and of the shortcut
        # input for the strided 1x1 conv) via a 0/1 selection matmul built
        # from iotas -- keeps everything on-chip, no strided HBM gather.
        # TODO(synk): at production WRN widths, gather the strided taps
        # directly (pl.ds(..., stride=s) on the padded scratch) to also skip
        # the redundant tap FLOPs; negligible at this size.
        io = lax.broadcasted_iota(jnp.int32, (out_h, out_w, hw_in), 0)
        jo = lax.broadcasted_iota(jnp.int32, (out_h, out_w, hw_in), 1)
        ko = lax.broadcasted_iota(jnp.int32, (out_h, out_w, hw_in), 2)
        sel = (ko == io * (stride * w_in) + jo * stride).astype(jnp.float32)
        sel = sel.reshape(hw_out, hw_in)                     # (HW_out, HW_in)
        h1 = jnp.dot(sel, h1, preferred_element_type=jnp.float32)
        shortcut_flat = jnp.dot(sel, shortcut_flat,
                                preferred_element_type=jnp.float32)

    # --- bn2 + LeakyReLU ------------------------------------------------------
    # TODO(synk): F.dropout for dropRate > 0 (training mode) not implemented;
    # default dropRate=0.0 / eval mode is an identity.
    h2 = bn_act(h1, bn2_ref)                                 # (HW_out, Cout)

    # --- conv2 (3x3, pad 1, stride 1) + fused residual -----------------------
    hpad_ref[...] = jnp.zeros(hpad_ref.shape, hpad_ref.dtype)
    hpad_ref[pl.ds(1, out_h), pl.ds(1, out_w), :] = h2.reshape(out_h, out_w, cout)
    acc = conv3x3(hpad_ref, out_h, out_w, cout, w2_ref)       # (HW_out, Cout)

    if equal:
        res = shortcut_flat                                   # identity shortcut
    else:
        res = jnp.dot(shortcut_flat, wsc_ref[...].astype(jnp.float32),
                      preferred_element_type=jnp.float32)     # fused 1x1 shortcut
    out = acc + res

    o_ref[0] = out.reshape(out_h, out_w, cout).astype(o_ref.dtype)


def basic_block(x, p, stride, activate_before_residual):
    """One fused BasicBlock == one pallas_call, grid over the batch."""
    n, h_in, w_in, cin = x.shape
    cout = p["w1"].shape[1]
    equal = "wsc" not in p
    if equal:
        assert cin == cout and stride == 1, "identity shortcut needs equal shapes"
    out_h = (h_in - 1) // stride + 1
    out_w = (w_in - 1) // stride + 1

    kernel = functools.partial(_basic_block_kernel, stride=stride, equal=equal,
                               abr=activate_before_residual)
    in_specs = [
        pl.BlockSpec((1, h_in, w_in, cin), lambda i: (i, 0, 0, 0)),
        pl.BlockSpec((2, cin), lambda i: (0, 0)),
        pl.BlockSpec((9 * cin, cout), lambda i: (0, 0)),
        pl.BlockSpec((2, cout), lambda i: (0, 0)),
        pl.BlockSpec((9 * cout, cout), lambda i: (0, 0)),
    ]
    args = [x, p["bn1"], p["w1"], p["bn2"], p["w2"]]
    if not equal:
        in_specs.append(pl.BlockSpec((cin, cout), lambda i: (0, 0)))
        args.append(p["wsc"])

    # TODO(synk): at real WideResNet widths on v7x (64 MiB VMEM), tile Cout as
    # a grid axis, keep MXU operands in bf16 and set vmem_limit_bytes; at this
    # toy size all weights + scratch are a few tens of KiB.
    return pl.pallas_call(
        kernel,
        grid=(n,),
        in_specs=in_specs,
        out_specs=pl.BlockSpec((1, out_h, out_w, cout), lambda i: (i, 0, 0, 0)),
        out_shape=jax.ShapeDtypeStruct((n, out_h, out_w, cout), x.dtype),
        scratch_shapes=[
            pltpu.VMEM((h_in + 2, w_in + 2, cin), jnp.float32),    # padded conv1 in
            pltpu.VMEM((out_h + 2, out_w + 2, cout), jnp.float32),  # padded conv2 in
        ],
        compiler_params=pltpu.CompilerParams(dimension_semantics=("parallel",)),
    )(*args)


def network_block(x, params, stride, activate_before_residual):
    for i, p in enumerate(params):
        x = basic_block(x, p, stride if i == 0 else 1, activate_before_residual)
    return x


def prepare_block_params(raw_params):
    """One-time (hoisted) packing: BN folded to a (2, C) scale/shift pair and
    3x3 weights flattened to (9*Cin, Cout) for the single im2col matmul."""
    prepared = []
    for p in raw_params:
        _, _, cin, cout = p["conv1_w"].shape
        q = {
            "bn1": jnp.stack([p["bn1_scale"], p["bn1_shift"]]).astype(jnp.float32),
            "w1": p["conv1_w"].reshape(9 * cin, cout),
            "bn2": jnp.stack([p["bn2_scale"], p["bn2_shift"]]).astype(jnp.float32),
            "w2": p["conv2_w"].reshape(9 * cout, cout),
        }
        if "shortcut_w" in p:
            q["wsc"] = p["shortcut_w"]
        prepared.append(q)
    return prepared


# ---------------------------- pure-JAX reference ----------------------------

def _ref_bn_act(x, scale, shift):
    y = x * scale.reshape(1, 1, 1, -1) + shift.reshape(1, 1, 1, -1)
    return jnp.where(y > 0, y, NEG_SLOPE * y)


def _ref_conv(x, w, stride, padding):
    return jax.lax.conv_general_dilated(
        x, w, window_strides=(stride, stride), padding=padding,
        dimension_numbers=("NHWC", "HWIO", "NHWC"),
        precision=jax.lax.Precision.HIGHEST)


def basic_block_ref(x, p, stride, activate_before_residual):
    cin = x.shape[-1]
    cout = p["conv1_w"].shape[-1]
    equal = cin == cout
    if (not equal) and activate_before_residual:
        x = _ref_bn_act(x, p["bn1_scale"], p["bn1_shift"])
        conv1_in, shortcut_in = x, x
    elif equal:
        conv1_in = _ref_bn_act(x, p["bn1_scale"], p["bn1_shift"])
        shortcut_in = x
    else:
        conv1_in, shortcut_in = x, x
    h = _ref_conv(conv1_in, p["conv1_w"], stride, ((1, 1), (1, 1)))
    h = _ref_bn_act(h, p["bn2_scale"], p["bn2_shift"])
    if equal:
        residual = shortcut_in
    else:
        residual = _ref_conv(shortcut_in, p["shortcut_w"].reshape(1, 1, cin, cout),
                             stride, ((0, 0), (0, 0)))
    return _ref_conv(h, p["conv2_w"], 1, ((1, 1), (1, 1))) + residual


def network_block_ref(x, params, stride, activate_before_residual):
    for i, p in enumerate(params):
        x = basic_block_ref(x, p, stride if i == 0 else 1, activate_before_residual)
    return x


# ------------------------------ parameter init ------------------------------

def init_params(key, nb_layers, in_planes, out_planes):
    params = []
    for i in range(nb_layers):
        cin = in_planes if i == 0 else out_planes
        cout = out_planes
        ks = jax.random.split(jax.random.fold_in(key, i), 12)

        def bn(kg, kb, km, kv, c):
            gamma = 1.0 + 0.1 * jax.random.normal(kg, (c,), jnp.float32)
            beta = 0.1 * jax.random.normal(kb, (c,), jnp.float32)
            mean = 0.1 * jax.random.normal(km, (c,), jnp.float32)
            var = (1.0 + 0.1 * jax.random.normal(kv, (c,), jnp.float32)) ** 2
            scale = gamma / jnp.sqrt(var + BN_EPS)
            return scale, beta - mean * scale

        s1, sh1 = bn(ks[0], ks[1], ks[2], ks[3], cin)
        s2, sh2 = bn(ks[4], ks[5], ks[6], ks[7], cout)
        p = {
            "bn1_scale": s1, "bn1_shift": sh1,
            "conv1_w": jax.random.normal(ks[8], (3, 3, cin, cout), jnp.float32)
                       * (2.0 / (9 * cin)) ** 0.5,
            "bn2_scale": s2, "bn2_shift": sh2,
            "conv2_w": jax.random.normal(ks[9], (3, 3, cout, cout), jnp.float32)
                       * (2.0 / (9 * cout)) ** 0.5,
        }
        if cin != cout:
            p["shortcut_w"] = (jax.random.normal(ks[10], (cin, cout), jnp.float32)
                               * (2.0 / cin) ** 0.5)
        params.append(p)
    return params


# ------------------------------------ main ----------------------------------

if __name__ == "__main__":
    key = jax.random.PRNGKey(0)
    kx, kp = jax.random.split(key)

    # NetworkBlock(nb_layers=2, in_planes=4, out_planes=8, block=BasicBlock,
    #              stride=2, dropRate=0.0, activate_before_residual=True)
    N, C_IN, H, W = 2, 4, 16, 16
    NB_LAYERS, OUT_PLANES, STRIDE, ABR = 2, 8, 2, True

    x_nchw = jax.random.normal(kx, (N, C_IN, H, W), jnp.float32)  # PyTorch NCHW
    x = jnp.transpose(x_nchw, (0, 2, 3, 1))                       # -> NHWC
    raw_params = init_params(kp, NB_LAYERS, C_IN, OUT_PLANES)
    prepared = prepare_block_params(raw_params)

    fwd = jax.jit(lambda xv, ps: network_block(xv, ps, STRIDE, ABR))
    out = jax.block_until_ready(fwd(x, prepared))
    ref = jax.block_until_ready(network_block_ref(x, raw_params, STRIDE, ABR))

    assert out.shape == (N, H // STRIDE, W // STRIDE, OUT_PLANES), out.shape
    # Tolerance covers MXU default-precision f32 matmul vs. HIGHEST-precision
    # XLA reference convs.
    max_err = float(jnp.max(jnp.abs(out - ref)))
    if max_err < 2e-2:
        print("KERNEL_OK")
    else:
        print(f"MISMATCH max_abs_err={max_err:.3e}")
</pallas_src>

<mosaic_0001>
module attributes {stable_mosaic.version = 11 : i64} {
  func.func @_basic_block_kernel(%arg0: i32, %arg1: memref<1x16x16x4xf32, #tpu.memory_space<vmem>>, %arg2: memref<2x4xf32, #tpu.memory_space<vmem>>, %arg3: memref<36x8xf32, #tpu.memory_space<vmem>>, %arg4: memref<2x8xf32, #tpu.memory_space<vmem>>, %arg5: memref<72x8xf32, #tpu.memory_space<vmem>>, %arg6: memref<4x8xf32, #tpu.memory_space<vmem>>, %arg7: memref<1x8x8x8xf32, #tpu.memory_space<vmem>>, %arg8: memref<18x18x4xf32, #tpu.memory_space<vmem>>, %arg9: memref<10x10x8xf32, #tpu.memory_space<vmem>>) attributes {dimension_semantics = [#tpu.dimension_semantics<parallel>], iteration_bounds = array<i64: 2>, scalar_prefetch = 0 : i64, scratch_operands = 2 : i64, tpu.core_type = #tpu.core_type<tc>, window_params = [{transform_indices = @transform_0, window_bounds = array<i64: 1, 16, 16, 4>}, {pipeline_mode = #tpu.pipeline_mode<synchronous>, transform_indices = @transform_1, window_bounds = array<i64: 2, 4>}, {pipeline_mode = #tpu.pipeline_mode<synchronous>, transform_indices = @transform_2, window_bounds = array<i64: 36, 8>}, {pipeline_mode = #tpu.pipeline_mode<synchronous>, transform_indices = @transform_3, window_bounds = array<i64: 2, 8>}, {pipeline_mode = #tpu.pipeline_mode<synchronous>, transform_indices = @transform_4, window_bounds = array<i64: 72, 8>}, {pipeline_mode = #tpu.pipeline_mode<synchronous>, transform_indices = @transform_5, window_bounds = array<i64: 4, 8>}, {transform_indices = @transform_6, window_bounds = array<i64: 1, 8, 8, 8>}]} {
    %c0 = arith.constant 0 : index
    %c0_0 = arith.constant 0 : index
    %c0_1 = arith.constant 0 : index
    %c0_2 = arith.constant 0 : index
    %0 = vector.load %arg1[%c0, %c0_0, %c0_1, %c0_2] : memref<1x16x16x4xf32, #tpu.memory_space<vmem>>, vector<1x16x16x4xf32>
    %1 = vector.shape_cast %0 : vector<1x16x16x4xf32> to vector<16x16x4xf32>
    %c0_3 = arith.constant 0 : index
    %c0_4 = arith.constant 0 : index
    %2 = vector.load %arg2[%c0_3, %c0_4] : memref<2x4xf32, #tpu.memory_space<vmem>>, vector<2x4xf32>
    %3 = vector.extract_strided_slice %2 {offsets = [0, 0], sizes = [1, 4], strides = [1, 1]} : vector<2x4xf32> to vector<1x4xf32>
    %4 = vector.shape_cast %3 : vector<1x4xf32> to vector<1x1x4xf32>
    %5 = vector.broadcast %4 : vector<1x1x4xf32> to vector<16x16x4xf32>
    %6 = arith.mulf %1, %5 : vector<16x16x4xf32>
    %7 = vector.extract_strided_slice %2 {offsets = [1, 0], sizes = [1, 4], strides = [1, 1]} : vector<2x4xf32> to vector<1x4xf32>
    %8 = vector.shape_cast %7 : vector<1x4xf32> to vector<1x1x4xf32>
    %9 = vector.broadcast %8 : vector<1x1x4xf32> to vector<16x16x4xf32>
    %10 = arith.addf %6, %9 : vector<16x16x4xf32>
    %cst = arith.constant 0.000000e+00 : f32
    %11 = vector.broadcast %cst : f32 to vector<16x16x4xf32>
    %12 = arith.cmpf ogt, %10, %11 : vector<16x16x4xf32>
    %cst_5 = arith.constant 1.000000e-01 : f32
    %13 = vector.broadcast %cst_5 : f32 to vector<16x16x4xf32>
    %14 = arith.mulf %13, %10 : vector<16x16x4xf32>
    %15 = arith.select %12, %10, %14 : vector<16x16x4xi1>, vector<16x16x4xf32>
    %cst_6 = arith.constant 0.000000e+00 : f32
    %16 = vector.broadcast %cst_6 : f32 to vector<18x18x4xf32>
    %c0_7 = arith.constant 0 : index
    %c0_8 = arith.constant 0 : index
    %c0_9 = arith.constant 0 : index
    %17 = vector.load %arg8[%c0_7, %c0_8, %c0_9] : memref<18x18x4xf32, #tpu.memory_space<vmem>>, vector<18x18x4xf32>
    tpu.vector_store %arg8[%c0_7, %c0_8, %c0_9], %16 {strides = array<i32>} : memref<18x18x4xf32, #tpu.memory_space<vmem>>, vector<18x18x4xf32>,
    %c1 = arith.constant 1 : index
    %c1_10 = arith.constant 1 : index
    %c0_11 = arith.constant 0 : index
    %18 = vector.load %arg8[%c1, %c1_10, %c0_11] : memref<18x18x4xf32, #tpu.memory_space<vmem>>, vector<16x16x4xf32>
    tpu.vector_store %arg8[%c1, %c1_10, %c0_11], %15 {strides = array<i32>} : memref<18x18x4xf32, #tpu.memory_space<vmem>>, vector<16x16x4xf32>,
    %c0_12 = arith.constant 0 : index
    %c0_13 = arith.constant 0 : index
    %c0_14 = arith.constant 0 : index
    %19 = vector.load %arg8[%c0_12, %c0_13, %c0_14] : memref<18x18x4xf32, #tpu.memory_space<vmem>>, vector<16x16x4xf32>
    %20 = vector.shape_cast %19 : vector<16x16x4xf32> to vector<256x4xf32>
    %c0_15 = arith.constant 0 : index
    %c1_16 = arith.constant 1 : index
    %c0_17 = arith.constant 0 : index
    %21 = vector.load %arg8[%c0_15, %c1_16, %c0_17] : memref<18x18x4xf32, #tpu.memory_space<vmem>>, vector<16x16x4xf32>
    %22 = vector.shape_cast %21 : vector<16x16x4xf32> to vector<256x4xf32>
    %c0_18 = arith.constant 0 : index
    %c2 = arith.constant 2 : index
    %c0_19 = arith.constant 0 : index
    %23 = vector.load %arg8[%c0_18, %c2, %c0_19] : memref<18x18x4xf32, #tpu.memory_space<vmem>>, vector<16x16x4xf32>
    %24 = vector.shape_cast %23 : vector<16x16x4xf32> to vector<256x4xf32>
    %c1_20 = arith.constant 1 : index
    %c0_21 = arith.constant 0 : index
    %c0_22 = arith.constant 0 : index
    %25 = vector.load %arg8[%c1_20, %c0_21, %c0_22] : memref<18x18x4xf32, #tpu.memory_space<vmem>>, vector<16x16x4xf32>
    %26 = vector.shape_cast %25 : vector<16x16x4xf32> to vector<256x4xf32>
    %c1_23 = arith.constant 1 : index
    %c1_24 = arith.constant 1 : index
    %c0_25 = arith.constant 0 : index
    %27 = vector.load %arg8[%c1_23, %c1_24, %c0_25] : memref<18x18x4xf32, #tpu.memory_space<vmem>>, vector<16x16x4xf32>
    %28 = vector.shape_cast %27 : vector<16x16x4xf32> to vector<256x4xf32>
    %c1_26 = arith.constant 1 : index
    %c2_27 = arith.constant 2 : index
    %c0_28 = arith.constant 0 : index
    %29 = vector.load %arg8[%c1_26, %c2_27, %c0_28] : memref<18x18x4xf32, #tpu.memory_space<vmem>>, vector<16x16x4xf32>
    %30 = vector.shape_cast %29 : vector<16x16x4xf32> to vector<256x4xf32>
    %c2_29 = arith.constant 2 : index
    %c0_30 = arith.constant 0 : index
    %c0_31 = arith.constant 0 : index
    %31 = vector.load %arg8[%c2_29, %c0_30, %c0_31] : memref<18x18x4xf32, #tpu.memory_space<vmem>>, vector<16x16x4xf32>
    %32 = vector.shape_cast %31 : vector<16x16x4xf32> to vector<256x4xf32>
    %c2_32 = arith.constant 2 : index
    %c1_33 = arith.constant 1 : index
    %c0_34 = arith.constant 0 : index
    %33 = vector.load %arg8[%c2_32, %c1_33, %c0_34] : memref<18x18x4xf32, #tpu.memory_space<vmem>>, vector<16x16x4xf32>
    %34 = vector.shape_cast %33 : vector<16x16x4xf32> to vector<256x4xf32>
    %c2_35 = arith.constant 2 : index
    %c2_36 = arith.constant 2 : index
    %c0_37 = arith.constant 0 : index
    %35 = vector.load %arg8[%c2_35, %c2_36, %c0_37] : memref<18x18x4xf32, #tpu.memory_space<vmem>>, vector<16x16x4xf32>
    %36 = vector.shape_cast %35 : vector<16x16x4xf32> to vector<256x4xf32>
    %37 = tpu.concatenate %20, %22, %24, %26, %28, %30, %32, %34, %36 in 1 : vector<256x4xf32>, vector<256x4xf32>, vector<256x4xf32>, vector<256x4xf32>, vector<256x4xf32>, vector<256x4xf32>, vector<256x4xf32>, vector<256x4xf32>, vector<256x4xf32> -> vector<256x36xf32>
    %c0_38 = arith.constant 0 : index
    %c0_39 = arith.constant 0 : index
    %38 = vector.load %arg3[%c0_38, %c0_39] : memref<36x8xf32, #tpu.memory_space<vmem>>, vector<36x8xf32>
    %cst_40 = arith.constant dense<0.000000e+00> : vector<256x8xf32>
    %39 = tpu.matmul %37, %38, %cst_40 {dimension_numbers = #tpu.dot_dimension_numbers<[1], [0], [0], [1], [0, 0, 1, 1], [], []>} : vector<256x36xf32>, vector<36x8xf32>, vector<256x8xf32> -> vector<256x8xf32>
    %40 = vector.shape_cast %15 : vector<16x16x4xf32> to vector<256x4xf32>
    %41 = tpu.iota {dimensions = array<i32: 0>} : vector<8x8x256xi32>
    %42 = tpu.iota {dimensions = array<i32: 1>} : vector<8x8x256xi32>
    %43 = tpu.iota {dimensions = array<i32: 2>} : vector<8x8x256xi32>
    %c32_i32 = arith.constant 32 : i32
    %44 = vector.broadcast %c32_i32 : i32 to vector<8x8x256xi32>
    %45 = arith.muli %41, %44 : vector<8x8x256xi32>
    %c2_i32 = arith.constant 2 : i32
    %46 = vector.broadcast %c2_i32 : i32 to vector<8x8x256xi32>
    %47 = arith.muli %42, %46 : vector<8x8x256xi32>
    %48 = arith.addi %45, %47 : vector<8x8x256xi32>
    %49 = arith.cmpi eq, %43, %48 : vector<8x8x256xi32>
    %50 = arith.extui %49 : vector<8x8x256xi1> to vector<8x8x256xi32>
    %51 = arith.sitofp %50 : vector<8x8x256xi32> to vector<8x8x256xf32>
    %52 = vector.shape_cast %51 : vector<8x8x256xf32> to vector<64x256xf32>
    %cst_41 = arith.constant dense<0.000000e+00> : vector<64x8xf32>
    %53 = tpu.matmul %52, %39, %cst_41 {dimension_numbers = #tpu.dot_dimension_numbers<[1], [0], [0], [1], [0, 0, 1, 1], [], []>} : vector<64x256xf32>, vector<256x8xf32>, vector<64x8xf32> -> vector<64x8xf32>
    %cst_42 = arith.constant dense<0.000000e+00> : vector<64x4xf32>
    %54 = tpu.matmul %52, %40, %cst_42 {dimension_numbers = #tpu.dot_dimension_numbers<[1], [0], [0], [1], [0, 0, 1, 1], [], []>} : vector<64x256xf32>, vector<256x4xf32>, vector<64x4xf32> -> vector<64x4xf32>
    %c0_43 = arith.constant 0 : index
    %c0_44 = arith.constant 0 : index
    %55 = vector.load %arg4[%c0_43, %c0_44] : memref<2x8xf32, #tpu.memory_space<vmem>>, vector<2x8xf32>
    %56 = vector.extract_strided_slice %55 {offsets = [0, 0], sizes = [1, 8], strides = [1, 1]} : vector<2x8xf32> to vector<1x8xf32>
    %57 = vector.broadcast %56 : vector<1x8xf32> to vector<64x8xf32>
    %58 = arith.mulf %53, %57 : vector<64x8xf32>
    %59 = vector.extract_strided_slice %55 {offsets = [1, 0], sizes = [1, 8], strides = [1, 1]} : vector<2x8xf32> to vector<1x8xf32>
    %60 = vector.broadcast %59 : vector<1x8xf32> to vector<64x8xf32>
    %61 = arith.addf %58, %60 : vector<64x8xf32>
    %cst_45 = arith.constant 0.000000e+00 : f32
    %62 = vector.broadcast %cst_45 : f32 to vector<64x8xf32>
    %63 = arith.cmpf ogt, %61, %62 : vector<64x8xf32>
    %cst_46 = arith.constant 1.000000e-01 : f32
    %64 = vector.broadcast %cst_46 : f32 to vector<64x8xf32>
    %65 = arith.mulf %64, %61 : vector<64x8xf32>
    %66 = arith.select %63, %61, %65 : vector<64x8xi1>, vector<64x8xf32>
    %cst_47 = arith.constant 0.000000e+00 : f32
    %67 = vector.broadcast %cst_47 : f32 to vector<10x10x8xf32>
    %c0_48 = arith.constant 0 : index
    %c0_49 = arith.constant 0 : index
    %c0_50 = arith.constant 0 : index
    %68 = vector.load %arg9[%c0_48, %c0_49, %c0_50] : memref<10x10x8xf32, #tpu.memory_space<vmem>>, vector<10x10x8xf32>
    tpu.vector_store %arg9[%c0_48, %c0_49, %c0_50], %67 {strides = array<i32>} : memref<10x10x8xf32, #tpu.memory_space<vmem>>, vector<10x10x8xf32>,
    %69 = vector.shape_cast %66 : vector<64x8xf32> to vector<8x8x8xf32>
    %c1_51 = arith.constant 1 : index
    %c1_52 = arith.constant 1 : index
    %c0_53 = arith.constant 0 : index
    %70 = vector.load %arg9[%c1_51, %c1_52, %c0_53] : memref<10x10x8xf32, #tpu.memory_space<vmem>>, vector<8x8x8xf32>
    tpu.vector_store %arg9[%c1_51, %c1_52, %c0_53], %69 {strides = array<i32>} : memref<10x10x8xf32, #tpu.memory_space<vmem>>, vector<8x8x8xf32>,
    %c0_54 = arith.constant 0 : index
    %c0_55 = arith.constant 0 : index
    %c0_56 = arith.constant 0 : index
    %71 = vector.load %arg9[%c0_54, %c0_55, %c0_56] : memref<10x10x8xf32, #tpu.memory_space<vmem>>, vector<8x8x8xf32>
    %72 = vector.shape_cast %71 : vector<8x8x8xf32> to vector<64x8xf32>
    %c0_57 = arith.constant 0 : index
    %c1_58 = arith.constant 1 : index
    %c0_59 = arith.constant 0 : index
    %73 = vector.load %arg9[%c0_57, %c1_58, %c0_59] : memref<10x10x8xf32, #tpu.memory_space<vmem>>, vector<8x8x8xf32>
    %74 = vector.shape_cast %73 : vector<8x8x8xf32> to vector<64x8xf32>
    %c0_60 = arith.constant 0 : index
    %c2_61 = arith.constant 2 : index
    %c0_62 = arith.constant 0 : index
    %75 = vector.load %arg9[%c0_60, %c2_61, %c0_62] : memref<10x10x8xf32, #tpu.memory_space<vmem>>, vector<8x8x8xf32>
    %76 = vector.shape_cast %75 : vector<8x8x8xf32> to vector<64x8xf32>
    %c1_63 = arith.constant 1 : index
    %c0_64 = arith.constant 0 : index
    %c0_65 = arith.constant 0 : index
    %77 = vector.load %arg9[%c1_63, %c0_64, %c0_65] : memref<10x10x8xf32, #tpu.memory_space<vmem>>, vector<8x8x8xf32>
    %78 = vector.shape_cast %77 : vector<8x8x8xf32> to vector<64x8xf32>
    %c1_66 = arith.constant 1 : index
    %c1_67 = arith.constant 1 : index
    %c0_68 = arith.constant 0 : index
    %79 = vector.load %arg9[%c1_66, %c1_67, %c0_68] : memref<10x10x8xf32, #tpu.memory_space<vmem>>, vector<8x8x8xf32>
    %80 = vector.shape_cast %79 : vector<8x8x8xf32> to vector<64x8xf32>
    %c1_69 = arith.constant 1 : index
    %c2_70 = arith.constant 2 : index
    %c0_71 = arith.constant 0 : index
    %81 = vector.load %arg9[%c1_69, %c2_70, %c0_71] : memref<10x10x8xf32, #tpu.memory_space<vmem>>, vector<8x8x8xf32>
    %82 = vector.shape_cast %81 : vector<8x8x8xf32> to vector<64x8xf32>
    %c2_72 = arith.constant 2 : index
    %c0_73 = arith.constant 0 : index
    %c0_74 = arith.constant 0 : index
    %83 = vector.load %arg9[%c2_72, %c0_73, %c0_74] : memref<10x10x8xf32, #tpu.memory_space<vmem>>, vector<8x8x8xf32>
    %84 = vector.shape_cast %83 : vector<8x8x8xf32> to vector<64x8xf32>
    %c2_75 = arith.constant 2 : index
    %c1_76 = arith.constant 1 : index
    %c0_77 = arith.constant 0 : index
    %85 = vector.load %arg9[%c2_75, %c1_76, %c0_77] : memref<10x10x8xf32, #tpu.memory_space<vmem>>, vector<8x8x8xf32>
    %86 = vector.shape_cast %85 : vector<8x8x8xf32> to vector<64x8xf32>
    %c2_78 = arith.constant 2 : index
    %c2_79 = arith.constant 2 : index
    %c0_80 = arith.constant 0 : index
    %87 = vector.load %arg9[%c2_78, %c2_79, %c0_80] : memref<10x10x8xf32, #tpu.memory_space<vmem>>, vector<8x8x8xf32>
    %88 = vector.shape_cast %87 : vector<8x8x8xf32> to vector<64x8xf32>
    %89 = tpu.concatenate %72, %74, %76, %78, %80, %82, %84, %86, %88 in 1 : vector<64x8xf32>, vector<64x8xf32>, vector<64x8xf32>, vector<64x8xf32>, vector<64x8xf32>, vector<64x8xf32>, vector<64x8xf32>, vector<64x8xf32>, vector<64x8xf32> -> vector<64x72xf32>
    %c0_81 = arith.constant 0 : index
    %c0_82 = arith.constant 0 : index
    %90 = vector.load %arg5[%c0_81, %c0_82] : memref<72x8xf32, #tpu.memory_space<vmem>>, vector<72x8xf32>
    %cst_83 = arith.constant dense<0.000000e+00> : vector<64x8xf32>
    %91 = tpu.matmul %89, %90, %cst_83 {dimension_numbers = #tpu.dot_dimension_numbers<[1], [0], [0], [1], [0, 0, 1, 1], [], []>} : vector<64x72xf32>, vector<72x8xf32>, vector<64x8xf32> -> vector<64x8xf32>
    %c0_84 = arith.constant 0 : index
    %c0_85 = arith.constant 0 : index
    %92 = vector.load %arg6[%c0_84, %c0_85] : memref<4x8xf32, #tpu.memory_space<vmem>>, vector<4x8xf32>
    %cst_86 = arith.constant dense<0.000000e+00> : vector<64x8xf32>
    %93 = tpu.matmul %54, %92, %cst_86 {dimension_numbers = #tpu.dot_dimension_numbers<[1], [0], [0], [1], [0, 0, 1, 1], [], []>} : vector<64x4xf32>, vector<4x8xf32>, vector<64x8xf32> -> vector<64x8xf32>
    %94 = arith.addf %91, %93 : vector<64x8xf32>
    %95 = vector.shape_cast %94 : vector<64x8xf32> to vector<8x8x8xf32>
    %c0_87 = arith.constant 0 : index
    %c0_88 = arith.constant 0 : index
    %c0_89 = arith.constant 0 : index
    %c0_90 = arith.constant 0 : index
    %96 = vector.load %arg7[%c0_87, %c0_88, %c0_89, %c0_90] : memref<1x8x8x8xf32, #tpu.memory_space<vmem>>, vector<1x8x8x8xf32>
    %97 = vector.shape_cast %96 : vector<1x8x8x8xf32> to vector<8x8x8xf32>
    %98 = vector.shape_cast %95 : vector<8x8x8xf32> to vector<1x8x8x8xf32>
    tpu.vector_store %arg7[%c0_87, %c0_88, %c0_89, %c0_90], %98 {strides = array<i32>} : memref<1x8x8x8xf32, #tpu.memory_space<vmem>>, vector<1x8x8x8xf32>,
    return
  }
  func.func @transform_0(%arg0: i32) -> (i32, i32, i32, i32) {
    %c0_i32 = arith.constant 0 : i32
    %c0_i32_0 = arith.constant 0 : i32
    %c0_i32_1 = arith.constant 0 : i32
    %c0_i32_2 = arith.constant 0 : i32
    return %arg0, %c0_i32, %c0_i32_0, %c0_i32_1 : i32, i32, i32, i32
  }
  func.func @transform_1(%arg0: i32) -> (i32, i32) {
    %c0_i32 = arith.constant 0 : i32
    %c0_i32_0 = arith.constant 0 : i32
    %c0_i32_1 = arith.constant 0 : i32
    return %c0_i32, %c0_i32_0 : i32, i32
  }
  func.func @transform_2(%arg0: i32) -> (i32, i32) {
    %c0_i32 = arith.constant 0 : i32
    %c0_i32_0 = arith.constant 0 : i32
    %c0_i32_1 = arith.constant 0 : i32
    return %c0_i32, %c0_i32_0 : i32, i32
  }
  func.func @transform_3(%arg0: i32) -> (i32, i32) {
    %c0_i32 = arith.constant 0 : i32
    %c0_i32_0 = arith.constant 0 : i32
    %c0_i32_1 = arith.constant 0 : i32
    return %c0_i32, %c0_i32_0 : i32, i32
  }
  func.func @transform_4(%arg0: i32) -> (i32, i32) {
    %c0_i32 = arith.constant 0 : i32
    %c0_i32_0 = arith.constant 0 : i32
    %c0_i32_1 = arith.constant 0 : i32
    return %c0_i32, %c0_i32_0 : i32, i32
  }
  func.func @transform_5(%arg0: i32) -> (i32, i32) {
    %c0_i32 = arith.constant 0 : i32
    %c0_i32_0 = arith.constant 0 : i32
    %c0_i32_1 = arith.constant 0 : i32
    return %c0_i32, %c0_i32_0 : i32, i32
  }
  func.func @transform_6(%arg0: i32) -> (i32, i32, i32, i32) {
    %c0_i32 = arith.constant 0 : i32
    %c0_i32_0 = arith.constant 0 : i32
    %c0_i32_1 = arith.constant 0 : i32
    %c0_i32_2 = arith.constant 0 : i32
    return %arg0, %c0_i32, %c0_i32_0, %c0_i32_1 : i32, i32, i32, i32
  }
}

module attributes {stable_mosaic.version = 11 : i64} {
  func.func @_basic_block_kernel(%arg0: i32, %arg1: memref<1x8x8x8xf32, #tpu.memory_space<vmem>>, %arg2: memref<2x8xf32, #tpu.memory_space<vmem>>, %arg3: memref<72x8xf32, #tpu.memory_space<vmem>>, %arg4: memref<2x8xf32, #tpu.memory_space<vmem>>, %arg5: memref<72x8xf32, #tpu.memory_space<vmem>>, %arg6: memref<1x8x8x8xf32, #tpu.memory_space<vmem>>, %arg7: memref<10x10x8xf32, #tpu.memory_space<vmem>>, %arg8: memref<10x10x8xf32, #tpu.memory_space<vmem>>) attributes {dimension_semantics = [#tpu.dimension_semantics<parallel>], iteration_bounds = array<i64: 2>, scalar_prefetch = 0 : i64, scratch_operands = 2 : i64, tpu.core_type = #tpu.core_type<tc>, window_params = [{transform_indices = @transform_0, window_bounds = array<i64: 1, 8, 8, 8>}, {pipeline_mode = #tpu.pipeline_mode<synchronous>, transform_indices = @transform_1, window_bounds = array<i64: 2, 8>}, {pipeline_mode = #tpu.pipeline_mode<synchronous>, transform_indices = @transform_2, window_bounds = array<i64: 72, 8>}, {pipeline_mode = #tpu.pipeline_mode<synchronous>, transform_indices = @transform_3, window_bounds = array<i64: 2, 8>}, {pipeline_mode = #tpu.pipeline_mode<synchronous>, transform_indices = @transform_4, window_bounds = array<i64: 72, 8>}, {transform_indices = @transform_5, window_bounds = array<i64: 1, 8, 8, 8>}]} {
    %c0 = arith.constant 0 : index
    %c0_0 = arith.constant 0 : index
    %c0_1 = arith.constant 0 : index
    %c0_2 = arith.constant 0 : index
    %0 = vector.load %arg1[%c0, %c0_0, %c0_1, %c0_2] : memref<1x8x8x8xf32, #tpu.memory_space<vmem>>, vector<1x8x8x8xf32>
    %1 = vector.shape_cast %0 : vector<1x8x8x8xf32> to vector<8x8x8xf32>
    %c0_3 = arith.constant 0 : index
    %c0_4 = arith.constant 0 : index
    %2 = vector.load %arg2[%c0_3, %c0_4] : memref<2x8xf32, #tpu.memory_space<vmem>>, vector<2x8xf32>
    %3 = vector.extract_strided_slice %2 {offsets = [0, 0], sizes = [1, 8], strides = [1, 1]} : vector<2x8xf32> to vector<1x8xf32>
    %4 = vector.shape_cast %3 : vector<1x8xf32> to vector<1x1x8xf32>
    %5 = vector.broadcast %4 : vector<1x1x8xf32> to vector<8x8x8xf32>
    %6 = arith.mulf %1, %5 : vector<8x8x8xf32>
    %7 = vector.extract_strided_slice %2 {offsets = [1, 0], sizes = [1, 8], strides = [1, 1]} : vector<2x8xf32> to vector<1x8xf32>
    %8 = vector.shape_cast %7 : vector<1x8xf32> to vector<1x1x8xf32>
    %9 = vector.broadcast %8 : vector<1x1x8xf32> to vector<8x8x8xf32>
    %10 = arith.addf %6, %9 : vector<8x8x8xf32>
    %cst = arith.constant 0.000000e+00 : f32
    %11 = vector.broadcast %cst : f32 to vector<8x8x8xf32>
    %12 = arith.cmpf ogt, %10, %11 : vector<8x8x8xf32>
    %cst_5 = arith.constant 1.000000e-01 : f32
    %13 = vector.broadcast %cst_5 : f32 to vector<8x8x8xf32>
    %14 = arith.mulf %13, %10 : vector<8x8x8xf32>
    %15 = arith.select %12, %10, %14 : vector<8x8x8xi1>, vector<8x8x8xf32>
    %cst_6 = arith.constant 0.000000e+00 : f32
    %16 = vector.broadcast %cst_6 : f32 to vector<10x10x8xf32>
    %c0_7 = arith.constant 0 : index
    %c0_8 = arith.constant 0 : index
    %c0_9 = arith.constant 0 : index
    %17 = vector.load %arg7[%c0_7, %c0_8, %c0_9] : memref<10x10x8xf32, #tpu.memory_space<vmem>>, vector<10x10x8xf32>
    tpu.vector_store %arg7[%c0_7, %c0_8, %c0_9], %16 {strides = array<i32>} : memref<10x10x8xf32, #tpu.memory_space<vmem>>, vector<10x10x8xf32>,
    %c1 = arith.constant 1 : index
    %c1_10 = arith.constant 1 : index
    %c0_11 = arith.constant 0 : index
    %18 = vector.load %arg7[%c1, %c1_10, %c0_11] : memref<10x10x8xf32, #tpu.memory_space<vmem>>, vector<8x8x8xf32>
    tpu.vector_store %arg7[%c1, %c1_10, %c0_11], %15 {strides = array<i32>} : memref<10x10x8xf32, #tpu.memory_space<vmem>>, vector<8x8x8xf32>,
    %c0_12 = arith.constant 0 : index
    %c0_13 = arith.constant 0 : index
    %c0_14 = arith.constant 0 : index
    %19 = vector.load %arg7[%c0_12, %c0_13, %c0_14] : memref<10x10x8xf32, #tpu.memory_space<vmem>>, vector<8x8x8xf32>
    %20 = vector.shape_cast %19 : vector<8x8x8xf32> to vector<64x8xf32>
    %c0_15 = arith.constant 0 : index
    %c1_16 = arith.constant 1 : index
    %c0_17 = arith.constant 0 : index
    %21 = vector.load %arg7[%c0_15, %c1_16, %c0_17] : memref<10x10x8xf32, #tpu.memory_space<vmem>>, vector<8x8x8xf32>
    %22 = vector.shape_cast %21 : vector<8x8x8xf32> to vector<64x8xf32>
    %c0_18 = arith.constant 0 : index
    %c2 = arith.constant 2 : index
    %c0_19 = arith.constant 0 : index
    %23 = vector.load %arg7[%c0_18, %c2, %c0_19] : memref<10x10x8xf32, #tpu.memory_space<vmem>>, vector<8x8x8xf32>
    %24 = vector.shape_cast %23 : vector<8x8x8xf32> to vector<64x8xf32>
    %c1_20 = arith.constant 1 : index
    %c0_21 = arith.constant 0 : index
    %c0_22 = arith.constant 0 : index
    %25 = vector.load %arg7[%c1_20, %c0_21, %c0_22] : memref<10x10x8xf32, #tpu.memory_space<vmem>>, vector<8x8x8xf32>
    %26 = vector.shape_cast %25 : vector<8x8x8xf32> to vector<64x8xf32>
    %c1_23 = arith.constant 1 : index
    %c1_24 = arith.constant 1 : index
    %c0_25 = arith.constant 0 : index
    %27 = vector.load %arg7[%c1_23, %c1_24, %c0_25] : memref<10x10x8xf32, #tpu.memory_space<vmem>>, vector<8x8x8xf32>
    %28 = vector.shape_cast %27 : vector<8x8x8xf32> to vector<64x8xf32>
    %c1_26 = arith.constant 1 : index
    %c2_27 = arith.constant 2 : index
    %c0_28 = arith.constant 0 : index
    %29 = vector.load %arg7[%c1_26, %c2_27, %c0_28] : memref<10x10x8xf32, #tpu.memory_space<vmem>>, vector<8x8x8xf32>
    %30 = vector.shape_cast %29 : vector<8x8x8xf32> to vector<64x8xf32>
    %c2_29 = arith.constant 2 : index
    %c0_30 = arith.constant 0 : index
    %c0_31 = arith.constant 0 : index
    %31 = vector.load %arg7[%c2_29, %c0_30, %c0_31] : memref<10x10x8xf32, #tpu.memory_space<vmem>>, vector<8x8x8xf32>
    %32 = vector.shape_cast %31 : vector<8x8x8xf32> to vector<64x8xf32>
    %c2_32 = arith.constant 2 : index
    %c1_33 = arith.constant 1 : index
    %c0_34 = arith.constant 0 : index
    %33 = vector.load %arg7[%c2_32, %c1_33, %c0_34] : memref<10x10x8xf32, #tpu.memory_space<vmem>>, vector<8x8x8xf32>
    %34 = vector.shape_cast %33 : vector<8x8x8xf32> to vector<64x8xf32>
    %c2_35 = arith.constant 2 : index
    %c2_36 = arith.constant 2 : index
    %c0_37 = arith.constant 0 : index
    %35 = vector.load %arg7[%c2_35, %c2_36, %c0_37] : memref<10x10x8xf32, #tpu.memory_space<vmem>>, vector<8x8x8xf32>
    %36 = vector.shape_cast %35 : vector<8x8x8xf32> to vector<64x8xf32>
    %37 = tpu.concatenate %20, %22, %24, %26, %28, %30, %32, %34, %36 in 1 : vector<64x8xf32>, vector<64x8xf32>, vector<64x8xf32>, vector<64x8xf32>, vector<64x8xf32>, vector<64x8xf32>, vector<64x8xf32>, vector<64x8xf32>, vector<64x8xf32> -> vector<64x72xf32>
    %c0_38 = arith.constant 0 : index
    %c0_39 = arith.constant 0 : index
    %38 = vector.load %arg3[%c0_38, %c0_39] : memref<72x8xf32, #tpu.memory_space<vmem>>, vector<72x8xf32>
    %cst_40 = arith.constant dense<0.000000e+00> : vector<64x8xf32>
    %39 = tpu.matmul %37, %38, %cst_40 {dimension_numbers = #tpu.dot_dimension_numbers<[1], [0], [0], [1], [0, 0, 1, 1], [], []>} : vector<64x72xf32>, vector<72x8xf32>, vector<64x8xf32> -> vector<64x8xf32>
    %40 = vector.shape_cast %1 : vector<8x8x8xf32> to vector<64x8xf32>
    %c0_41 = arith.constant 0 : index
    %c0_42 = arith.constant 0 : index
    %41 = vector.load %arg4[%c0_41, %c0_42] : memref<2x8xf32, #tpu.memory_space<vmem>>, vector<2x8xf32>
    %42 = vector.extract_strided_slice %41 {offsets = [0, 0], sizes = [1, 8], strides = [1, 1]} : vector<2x8xf32> to vector<1x8xf32>
    %43 = vector.broadcast %42 : vector<1x8xf32> to vector<64x8xf32>
    %44 = arith.mulf %39, %43 : vector<64x8xf32>
    %45 = vector.extract_strided_slice %41 {offsets = [1, 0], sizes = [1, 8], strides = [1, 1]} : vector<2x8xf32> to vector<1x8xf32>
    %46 = vector.broadcast %45 : vector<1x8xf32> to vector<64x8xf32>
    %47 = arith.addf %44, %46 : vector<64x8xf32>
    %cst_43 = arith.constant 0.000000e+00 : f32
    %48 = vector.broadcast %cst_43 : f32 to vector<64x8xf32>
    %49 = arith.cmpf ogt, %47, %48 : vector<64x8xf32>
    %cst_44 = arith.constant 1.000000e-01 : f32
    %50 = vector.broadcast %cst_44 : f32 to vector<64x8xf32>
    %51 = arith.mulf %50, %47 : vector<64x8xf32>
    %52 = arith.select %49, %47, %51 : vector<64x8xi1>, vector<64x8xf32>
    %cst_45 = arith.constant 0.000000e+00 : f32
    %53 = vector.broadcast %cst_45 : f32 to vector<10x10x8xf32>
    %c0_46 = arith.constant 0 : index
    %c0_47 = arith.constant 0 : index
    %c0_48 = arith.constant 0 : index
    %54 = vector.load %arg8[%c0_46, %c0_47, %c0_48] : memref<10x10x8xf32, #tpu.memory_space<vmem>>, vector<10x10x8xf32>
    tpu.vector_store %arg8[%c0_46, %c0_47, %c0_48], %53 {strides = array<i32>} : memref<10x10x8xf32, #tpu.memory_space<vmem>>, vector<10x10x8xf32>,
    %55 = vector.shape_cast %52 : vector<64x8xf32> to vector<8x8x8xf32>
    %c1_49 = arith.constant 1 : index
    %c1_50 = arith.constant 1 : index
    %c0_51 = arith.constant 0 : index
    %56 = vector.load %arg8[%c1_49, %c1_50, %c0_51] : memref<10x10x8xf32, #tpu.memory_space<vmem>>, vector<8x8x8xf32>
    tpu.vector_store %arg8[%c1_49, %c1_50, %c0_51], %55 {strides = array<i32>} : memref<10x10x8xf32, #tpu.memory_space<vmem>>, vector<8x8x8xf32>,
    %c0_52 = arith.constant 0 : index
    %c0_53 = arith.constant 0 : index
    %c0_54 = arith.constant 0 : index
    %57 = vector.load %arg8[%c0_52, %c0_53, %c0_54] : memref<10x10x8xf32, #tpu.memory_space<vmem>>, vector<8x8x8xf32>
    %58 = vector.shape_cast %57 : vector<8x8x8xf32> to vector<64x8xf32>
    %c0_55 = arith.constant 0 : index
    %c1_56 = arith.constant 1 : index
    %c0_57 = arith.constant 0 : index
    %59 = vector.load %arg8[%c0_55, %c1_56, %c0_57] : memref<10x10x8xf32, #tpu.memory_space<vmem>>, vector<8x8x8xf32>
    %60 = vector.shape_cast %59 : vector<8x8x8xf32> to vector<64x8xf32>
    %c0_58 = arith.constant 0 : index
    %c2_59 = arith.constant 2 : index
    %c0_60 = arith.constant 0 : index
    %61 = vector.load %arg8[%c0_58, %c2_59, %c0_60] : memref<10x10x8xf32, #tpu.memory_space<vmem>>, vector<8x8x8xf32>
    %62 = vector.shape_cast %61 : vector<8x8x8xf32> to vector<64x8xf32>
    %c1_61 = arith.constant 1 : index
    %c0_62 = arith.constant 0 : index
    %c0_63 = arith.constant 0 : index
    %63 = vector.load %arg8[%c1_61, %c0_62, %c0_63] : memref<10x10x8xf32, #tpu.memory_space<vmem>>, vector<8x8x8xf32>
    %64 = vector.shape_cast %63 : vector<8x8x8xf32> to vector<64x8xf32>
    %c1_64 = arith.constant 1 : index
    %c1_65 = arith.constant 1 : index
    %c0_66 = arith.constant 0 : index
    %65 = vector.load %arg8[%c1_64, %c1_65, %c0_66] : memref<10x10x8xf32, #tpu.memory_space<vmem>>, vector<8x8x8xf32>
    %66 = vector.shape_cast %65 : vector<8x8x8xf32> to vector<64x8xf32>
    %c1_67 = arith.constant 1 : index
    %c2_68 = arith.constant 2 : index
    %c0_69 = arith.constant 0 : index
    %67 = vector.load %arg8[%c1_67, %c2_68, %c0_69] : memref<10x10x8xf32, #tpu.memory_space<vmem>>, vector<8x8x8xf32>
    %68 = vector.shape_cast %67 : vector<8x8x8xf32> to vector<64x8xf32>
    %c2_70 = arith.constant 2 : index
    %c0_71 = arith.constant 0 : index
    %c0_72 = arith.constant 0 : index
    %69 = vector.load %arg8[%c2_70, %c0_71, %c0_72] : memref<10x10x8xf32, #tpu.memory_space<vmem>>, vector<8x8x8xf32>
    %70 = vector.shape_cast %69 : vector<8x8x8xf32> to vector<64x8xf32>
    %c2_73 = arith.constant 2 : index
    %c1_74 = arith.constant 1 : index
    %c0_75 = arith.constant 0 : index
    %71 = vector.load %arg8[%c2_73, %c1_74, %c0_75] : memref<10x10x8xf32, #tpu.memory_space<vmem>>, vector<8x8x8xf32>
    %72 = vector.shape_cast %71 : vector<8x8x8xf32> to vector<64x8xf32>
    %c2_76 = arith.constant 2 : index
    %c2_77 = arith.constant 2 : index
    %c0_78 = arith.constant 0 : index
    %73 = vector.load %arg8[%c2_76, %c2_77, %c0_78] : memref<10x10x8xf32, #tpu.memory_space<vmem>>, vector<8x8x8xf32>
    %74 = vector.shape_cast %73 : vector<8x8x8xf32> to vector<64x8xf32>
    %75 = tpu.concatenate %58, %60, %62, %64, %66, %68, %70, %72, %74 in 1 : vector<64x8xf32>, vector<64x8xf32>, vector<64x8xf32>, vector<64x8xf32>, vector<64x8xf32>, vector<64x8xf32>, vector<64x8xf32>, vector<64x8xf32>, vector<64x8xf32> -> vector<64x72xf32>
    %c0_79 = arith.constant 0 : index
    %c0_80 = arith.constant 0 : index
    %76 = vector.load %arg5[%c0_79, %c0_80] : memref<72x8xf32, #tpu.memory_space<vmem>>, vector<72x8xf32>
    %cst_81 = arith.constant dense<0.000000e+00> : vector<64x8xf32>
    %77 = tpu.matmul %75, %76, %cst_81 {dimension_numbers = #tpu.dot_dimension_numbers<[1], [0], [0], [1], [0, 0, 1, 1], [], []>} : vector<64x72xf32>, vector<72x8xf32>, vector<64x8xf32> -> vector<64x8xf32>
    %78 = arith.addf %77, %40 : vector<64x8xf32>
    %79 = vector.shape_cast %78 : vector<64x8xf32> to vector<8x8x8xf32>
    %c0_82 = arith.constant 0 : index
    %c0_83 = arith.constant 0 : index
    %c0_84 = arith.constant 0 : index
    %c0_85 = arith.constant 0 : index
    %80 = vector.load %arg6[%c0_82, %c0_83, %c0_84, %c0_85] : memref<1x8x8x8xf32, #tpu.memory_space<vmem>>, vector<1x8x8x8xf32>
    %81 = vector.shape_cast %80 : vector<1x8x8x8xf32> to vector<8x8x8xf32>
    %82 = vector.shape_cast %79 : vector<8x8x8xf32> to vector<1x8x8x8xf32>
    tpu.vector_store %arg6[%c0_82, %c0_83, %c0_84, %c0_85], %82 {strides = array<i32>} : memref<1x8x8x8xf32, #tpu.memory_space<vmem>>, vector<1x8x8x8xf32>,
    return
  }
  func.func @transform_0(%arg0: i32) -> (i32, i32, i32, i32) {
    %c0_i32 = arith.constant 0 : i32
    %c0_i32_0 = arith.constant 0 : i32
    %c0_i32_1 = arith.constant 0 : i32
    %c0_i32_2 = arith.constant 0 : i32
    return %arg0, %c0_i32, %c0_i32_0, %c0_i32_1 : i32, i32, i32, i32
  }
  func.func @transform_1(%arg0: i32) -> (i32, i32) {
    %c0_i32 = arith.constant 0 : i32
    %c0_i32_0 = arith.constant 0 : i32
    %c0_i32_1 = arith.constant 0 : i32
    return %c0_i32, %c0_i32_0 : i32, i32
  }
  func.func @transform_2(%arg0: i32) -> (i32, i32) {
    %c0_i32 = arith.constant 0 : i32
    %c0_i32_0 = arith.constant 0 : i32
    %c0_i32_1 = arith.constant 0 : i32
    return %c0_i32, %c0_i32_0 : i32, i32
  }
  func.func @transform_3(%arg0: i32) -> (i32, i32) {
    %c0_i32 = arith.constant 0 : i32
    %c0_i32_0 = arith.constant 0 : i32
    %c0_i32_1 = arith.constant 0 : i32
    return %c0_i32, %c0_i32_0 : i32, i32
  }
  func.func @transform_4(%arg0: i32) -> (i32, i32) {
    %c0_i32 = arith.constant 0 : i32
    %c0_i32_0 = arith.constant 0 : i32
    %c0_i32_1 = arith.constant 0 : i32
    return %c0_i32, %c0_i32_0 : i32, i32
  }
  func.func @transform_5(%arg0: i32) -> (i32, i32, i32, i32) {
    %c0_i32 = arith.constant 0 : i32
    %c0_i32_0 = arith.constant 0 : i32
    %c0_i32_1 = arith.constant 0 : i32
    %c0_i32_2 = arith.constant 0 : i32
    return %arg0, %c0_i32, %c0_i32_0, %c0_i32_1 : i32, i32, i32, i32
  }
}

</mosaic_0001>

<bundles_post_ra>
// kernel: _lambda_.3
= control target key start
LH: loop header
LB: loop body
LE: loop exit
PB: predicated region body
PF: predicated region fallthrough
CT: control target
= control target key end

     0   :  { %10 = vsyncpa [#allocation5], 0  ;;  %s2507_s0 = inlined_call_operand.vmem [shape: f32[2,8,8,8], index: 0, kind: input, shape index: {}]   ;;  %s2508_s1 = inlined_call_operand.vmem [shape: f32[2,8], index: 1, kind: input, shape index: {}]   ;;  %s2509_s2 = inlined_call_operand.vmem [shape: f32[72,8], index: 2, kind: input, shape index: {}]   ;;  %s2510_s3 = inlined_call_operand.vmem [shape: f32[2,8], index: 3, kind: input, shape index: {}]   ;;  %s2511_s4 = inlined_call_operand.vmem [shape: f32[72,8], index: 4, kind: input, shape index: {}]   ;;  %s2512_s5 = inlined_call_operand.hbm [shape: f32[2,8,8,8], index: 5, kind: output, shape index: {}]  }
   0x1   :  { %12 = vsyncpa [#allocation5 + $0x1], 0  ;;  %s1857_s18 = smov 0   ;;  %s1859_s19 = smov 0  }
   0x2   :  { %s1861_s20 = smov 0   ;;  %s1863_s21 = smov 0  }
   0x3 LB: > { %s1878_s22 = sadd.s32 4294967295, %s1814_s21   ;;  %s1543_s23 = sadd.s32 4294967294, %s1814_s21   ;;  %s1814_s21 = sphi %s1863_s21, %s2521_s21   ;;  %s1810_s20 = sphi %s1861_s20, %s2520_s20   ;;  %s1806_s19 = sphi %s1859_s19, %s2519_s19   ;;  %s1802_s18 = sphi %s1857_s18, %s2518_s18  }
   0x4   : > { %s1882_s24 = sadd.s32 1, %s1814_s21   ;;  %s135_s25 = sadd.s32 1, %s1810_s20 }
   0x5   : > { %s132_s26 = ssub.s32 %s1814_s21, %s1882_s24  ;;  %p145_p0 = scmp.ne.s32.totalorder %s1810_s20, %s1806_s19 }
   0x6   : > { %p133_p1 = scmp.eq.s32.totalorder %s132_s26, 0  ;;  %p146_p2 = scmp.eq.s32.totalorder %s1878_s22, 1 }
   0x7   : > { %p151_p3 = scmp.ne.s32.totalorder %s1806_s19, %s1802_s18  ;;  %p152_p4 = scmp.eq.s32.totalorder %s1543_s23, 1 }
   0x8   : > { %s1893_s27 = scalar_select %p133_p1, %s1810_s20, %s135_s25  }
   0x9   : > { %p1895_p5 = por %p146_p2, %p145_p0  ;;  %p1899_p6 = por %p152_p4, %p151_p3 }
   0xa   : > { %p1546_p7 = scmp.ge.s32.totalorder %s1814_s21, 1  ;;  %p190_p8 = scmp.lt.s32.totalorder %s1814_s21, 3 }
   0xc   : > { %p191_p9 = pnand %p1546_p7, %p190_p8 }
   0xd   : > { %vm280_vm0 = vcmask (!%p191_p9), 64512   ;;  %vm282_vm1 = vcmask (!%p191_p9), 58368   ;;  %v232_v0 = vlaneseq (!%p191_p9)  ;;  %v1816_v1 = vmov (!%p191_p9), 0.0   ;;  %p218_p10 = scmp.lt.s32.totalorder (!%p191_p9), %s1878_s22, 1  ;;  %v231_v3 = vld [vmem:[%s2508_s1] sm:$0x3] (!%p191_p9) }
   0xe   : > { %194 = sbr.rel (%p191_p9) target bundleno = 900 (0x384), region = 40  ;;  %281 = vst.msk [vmem:[#allocation2] sm:$0xff] (!%p191_p9), %vm280_vm0, %v1816_v1  ;;  %284 = vst.msk [vmem:[#allocation2 + $0x10] sm:$0xff] (!%p191_p9), %vm280_vm0, %v1816_v1  ;;  %s1817_s12 = smov (!%p191_p9), 8   ;;  %v711_v36 = vld [vmem:[%s2509_s2] sm:$0xff] (!%p191_p9)  ;;  %v712_v37 = vld [vmem:[%s2509_s2 + $0x8] sm:$0xff] (!%p191_p9) }
   0xf   : > { %283 = vst.msk [vmem:[#allocation2 + $0x8] sm:$0x3] (!%p191_p9), %vm282_vm1, %v1816_v1  ;;  %285 = vst.msk [vmem:[#allocation2 + $0x18] sm:$0x3] (!%p191_p9), %vm282_vm1, %v1816_v1  ;;  %v1946_v2 = vshrl.u32 (!%p191_p9), %v232_v0, 7  ;;  %s1818_s13 = smov (!%p191_p9), 16   ;;  %v1667_v39 = vpack.c.bf16 (!%p191_p9), %v712_v37, %v711_v36 }
  0x10   : > { %286 = vst.msk [vmem:[#allocation2 + $0x20] sm:$0xff] (!%p191_p9), %vm280_vm0, %v1816_v1  ;;  %288 = vst.msk [vmem:[#allocation2 + $0x30] sm:$0xff] (!%p191_p9), %vm280_vm0, %v1816_v1  ;;  %s1819_s14 = smov (!%p191_p9), 24   ;;  %s1820_s15 = smov (!%p191_p9), 40   ;;  %v713_v40 = vld [vmem:[%s2509_s2 + $0x10] sm:$0xff] (!%p191_p9)  ;;  %v714_v41 = vld [vmem:[%s2509_s2 + $0x18] sm:$0xff] (!%p191_p9) }
  0x11   : > { %287 = vst.msk [vmem:[#allocation2 + $0x28] sm:$0x3] (!%p191_p9), %vm282_vm1, %v1816_v1  ;;  %289 = vst.msk [vmem:[#allocation2 + $0x38] sm:$0x3] (!%p191_p9), %vm282_vm1, %v1816_v1  ;;  %v234_v4 = vsub.s32 (!%p191_p9), 0, %v1946_v2  ;;  %v246_v5 = vsub.s32 (!%p191_p9), 1, %v1946_v2  ;;  %1668 = vmatprep.subr.bf16.mxu0 (!%p191_p9), %v1667_v39  ;;  %v1671_v42 = vpack.c.bf16 (!%p191_p9), %v714_v41, %v713_v40 }
  0x12   : > { %290 = vst.msk [vmem:[#allocation2 + $0x40] sm:$0xff] (!%p191_p9), %vm280_vm0, %v1816_v1  ;;  %292 = vst.msk [vmem:[#allocation2 + $0x50] sm:$0xff] (!%p191_p9), %vm280_vm0, %v1816_v1  ;;  %s1821_s16 = smov (!%p191_p9), 32   ;;  %1670 = vmatpush3.bf16.msra.mxu0 (!%p191_p9), %v1667_v39  ;;  %v715_v44 = vld [vmem:[%s2509_s2 + $0x20] sm:$0xff] (!%p191_p9)  ;;  %v716_v45 = vld [vmem:[%s2509_s2 + $0x28] sm:$0xff] (!%p191_p9)  ;;  %s1822_s25 = smov (!%p191_p9), 48  }
  0x13   : > { %291 = vst.msk [vmem:[#allocation2 + $0x48] sm:$0x3] (!%p191_p9), %vm282_vm1, %v1816_v1  ;;  %293 = vst.msk [vmem:[#allocation2 + $0x58] sm:$0x3] (!%p191_p9), %vm282_vm1, %v1816_v1  ;;  %v1956_v6 = vrot.slane (!%p191_p9), %v231_v3, %v234_v4  ;;  %v1965_v9 = vrot.slane (!%p191_p9), %v231_v3, %v246_v5  ;;  %1672 = vmatprep.subr.bf16.mxu0 (!%p191_p9), %v1671_v42  ;;  %v1675_v46 = vpack.c.bf16 (!%p191_p9), %v716_v45, %v715_v44  ;;  %v717_v48 = vld [vmem:[%s2509_s2 + $0x30] sm:$0xff] (!%p191_p9)  ;;  %v718_v49 = vld [vmem:[%s2509_s2 + $0x38] sm:$0xff] (!%p191_p9) }
  0x14   : > { %294 = vst.msk [vmem:[#allocation2 + $0x60] sm:$0xff] (!%p191_p9), %vm280_vm0, %v1816_v1  ;;  %296 = vst.msk [vmem:[#allocation2 + $0x70] sm:$0xff] (!%p191_p9), %vm280_vm0, %v1816_v1  ;;  %v1679_v50 = vpack.c.bf16 (!%p191_p9), %v718_v49, %v717_v48  ;;  %v719_v52 = vld [vmem:[%s2509_s2 + $0x40] sm:$0xff] (!%p191_p9)  ;;  %s1823_s10 = smov (!%p191_p9), 56   ;;  %s2513_s17 = smov (!%p191_p9), 64   ;;  %vm648_vm6 = vcmask (!%p191_p9), 130048  }
  0x15   : > { %295 = vst.msk [vmem:[#allocation2 + $0x68] sm:$0x3] %vm282_vm1, %v1816_v1  ;;  %297 = vst.msk [vmem:[#allocation2 + $0x78] sm:$0x3] %vm282_vm1, %v1816_v1  ;;  %s219_s7 = scalar_select %p218_p10, %s1878_s22, 1  ;;  %v1979_v20 = vld [vmem:[#allocation2 + $0x10] sm:$0xff] }
  0x16   : > { %298 = vst.msk [vmem:[#allocation2 + $0x80] sm:$0xff] %vm280_vm0, %v1816_v1  ;;  %300 = vst.msk [vmem:[#allocation2 + $0x90] sm:$0xff] %vm280_vm0, %v1816_v1  ;;  %v319_v7 = vld [vmem:[#allocation2 + $0x1] sm:$0xff]  ;;  %v320_v11 = vld [vmem:[#allocation2 + $0x11] sm:$0xff]  ;;  %1674 = vmatpush3.bf16.msra.mxu0 %v1671_v42  ;;  %vm657_vm7 = vcmask 195584   ;;  %vm666_vm8 = vcmask 261120  }
  0x17   : > { %299 = vst.msk [vmem:[#allocation2 + $0x88] sm:$0x3] %vm282_vm1, %v1816_v1  ;;  %301 = vst.msk [vmem:[#allocation2 + $0x98] sm:$0x3] %vm282_vm1, %v1816_v1  ;;  %s1571_s8 = sshll.u32 %s219_s7, 6  ;;  %v327_v8 = vld [vmem:[#allocation2 + $0x2] sm:$0xff]  ;;  %392 = vrot.lane.b32.xlu0 %v319_v7, %s1817_s12  ;;  %1676 = vmatprep.subr.bf16.mxu0 %v1675_v46 }
  0x18   : > { %899 = vst.msk [vmem:[#allocation3] sm:$0xff] %vm280_vm0, %v1816_v1  ;;  %901 = vst.msk [vmem:[#allocation3 + $0x10] sm:$0xff] %vm280_vm0, %v1816_v1  ;;  %s1961_s11 = scalar_lea.vmem %s2507_s0, %s1571_s8  ;;  %424 = vrot.lane.b32.xlu1 %v327_v8, %s1818_s13  ;;  %v328_v12 = vld [vmem:[#allocation2 + $0x12] sm:$0xff]  ;;  %vm675_vm9 = vcmask 326656   ;;  %vm684_vm10 = vcmask 392192   ;;  %vm693_vm11 = vcmask 457728  }
  0x19   : > { %900 = vst.msk [vmem:[#allocation3 + $0x8] sm:$0x3] %vm282_vm1, %v1816_v1  ;;  %902 = vst.msk [vmem:[#allocation3 + $0x18] sm:$0x3] %vm282_vm1, %v1816_v1  ;;  %v224_v10 = vld [vmem:[%s1961_s11 + $0x8] sm:$0xff]  ;;  %v226_v14 = vld [vmem:[%s1961_s11 + $0x18] sm:$0xff] }
  0x1a   : > { %903 = vst.msk [vmem:[#allocation3 + $0x20] sm:$0xff] %vm280_vm0, %v1816_v1  ;;  %905 = vst.msk [vmem:[#allocation3 + $0x30] sm:$0xff] %vm280_vm0, %v1816_v1  ;;  %v237_v13 = vmul.f32 %v1956_v6, %v224_v10  ;;  %v239_v16 = vmul.f32 %v1956_v6, %v226_v14  ;;  %v228_v17 = vld [vmem:[%s1961_s11 + $0x28] sm:$0xff]  ;;  %v230_v19 = vld [vmem:[%s1961_s11 + $0x38] sm:$0xff]  ;;  %1678 = vmatpush3.bf16.msra.mxu0 %v1675_v46  ;;  %vm702_vm12 = vcmask 523264   ;;  %vm720_vm13 = vcmask 588800  }
  0x1b   : > { %904 = vst.msk [vmem:[#allocation3 + $0x28] sm:$0x3] %vm282_vm1, %v1816_v1  ;;  %906 = vst.msk [vmem:[#allocation3 + $0x38] sm:$0x3] %vm282_vm1, %v1816_v1  ;;  %394 = vrot.lane.b32.xlu0 %v320_v11, %s1817_s12  ;;  %v241_v18 = vmul.f32 %v1956_v6, %v228_v17  ;;  %v243_v23 = vmul.f32 %v1956_v6, %v230_v19  ;;  %v322_v33 = vld [vmem:[#allocation2 + $0x31] sm:$0xff]  ;;  %1680 = vmatprep.subr.bf16.mxu0 %v1679_v50  ;;  %s2517_s7 = smov 64  }
  0x1c   : > { %907 = vst.msk [vmem:[#allocation3 + $0x40] sm:$0xff] %vm280_vm0, %v1816_v1  ;;  %909 = vst.msk [vmem:[#allocation3 + $0x50] sm:$0xff] %vm280_vm0, %v1816_v1  ;;  %v249_v15 = vadd.f32 %v1965_v9, %v237_v13  ;;  %426 = vrot.lane.b32.xlu1 %v328_v12, %s1818_s13  ;;  %v251_v22 = vadd.f32 %v1965_v9, %v239_v16  ;;  %v330_v43 = vld [vmem:[#allocation2 + $0x32] sm:$0xff]  ;;  %s1825_s9 = smov [#allocation4]  }
  0x1d   : > { %908 = vst.msk [vmem:[#allocation3 + $0x48] sm:$0x3] %vm282_vm1, %v1816_v1  ;;  %910 = vst.msk [vmem:[#allocation3 + $0x58] sm:$0x3] %vm282_vm1, %v1816_v1  ;;  %v253_v24 = vadd.f32 %v1965_v9, %v241_v18  ;;  %v255_v27 = vadd.f32 %v1965_v9, %v243_v23  ;;  %v2023_v47 = vld [vmem:[#allocation2 + $0x30] sm:$0xff]  ;;  %s1756_s23 = sshll.u32 %s1825_s9, 4  ;;  %s1757_s23 = int_to_ptr.vmem [resolvable:$false] %s1756_s23 }
  0x1e   : > { %911 = vst.msk [vmem:[#allocation3 + $0x60] sm:$0xff] %vm280_vm0, %v1816_v1  ;;  %913 = vst.msk [vmem:[#allocation3 + $0x70] sm:$0xff] %vm280_vm0, %v1816_v1  ;;  %vm257_vm2 = vcmp.gt.f32.partialorder %v249_v15, 0.0  ;;  %v265_v21 = vmul.f32 0.1, %v249_v15  ;;  %vm259_vm3 = vcmp.gt.f32.partialorder %v251_v22, 0.0  ;;  %1682 = vmatpush3.bf16.msra.mxu0 %v1679_v50 }
  0x1f   : > { %912 = vst.msk [vmem:[#allocation3 + $0x68] sm:$0x3] %vm282_vm1, %v1816_v1  ;;  %914 = vst.msk [vmem:[#allocation3 + $0x78] sm:$0x3] %vm282_vm1, %v1816_v1  ;;  %v267_v26 = vmul.f32 0.1, %v251_v22  ;;  %456 = vrot.lane.b32.xlu0 %v1979_v20, %s1819_s14  ;;  %1623 = vmatprep.subr.mxu0 %v719_v52 }
  0x20   : > { %915 = vst.msk [vmem:[#allocation3 + $0x80] sm:$0xff] %vm280_vm0, %v1816_v1  ;;  %917 = vst.msk [vmem:[#allocation3 + $0x90] sm:$0xff] %vm280_vm0, %v1816_v1  ;;  %v273_v25 = vsel %vm257_vm2, %v249_v15, %v265_v21  ;;  %520 = vrot.lane.b32.xlu1 %v328_v12, %s1820_s15  ;;  %vm261_vm4 = vcmp.gt.f32.partialorder %v253_v24, 0.0  ;;  %v269_v28 = vmul.f32 0.1, %v253_v24  ;;  %vm263_vm5 = vcmp.gt.f32.partialorder %v255_v27, 0.0 }
  0x21   : > { %916 = vst.msk [vmem:[#allocation3 + $0x88] sm:$0x3] %vm282_vm1, %v1816_v1  ;;  %918 = vst.msk [vmem:[#allocation3 + $0x98] sm:$0x3] %vm282_vm1, %v1816_v1  ;;  %v275_v29 = vsel %vm259_vm3, %v251_v22, %v267_v26  ;;  %v271_v30 = vmul.f32 0.1, %v255_v27 }
  0x22   : > { %304 = vst.msk [vmem:[#allocation2 + $0x21] sm:$0xff] %vm280_vm0, %v273_v25  ;;  %306 = vst.msk [vmem:[#allocation2 + $0x41] sm:$0xff] %vm280_vm0, %v275_v29  ;;  %v277_v31 = vsel %vm261_vm4, %v253_v24, %v269_v28  ;;  %1624 = vmatpush3.msra.mxu0 %v719_v52  ;;  %v324_v54 = vld [vmem:[#allocation2 + $0x51] sm:$0xff]  ;;  %s1758_s26 = scalar_lea.vmem %s1757_s23, 2048 }
  0x23   : > { %308 = vst.msk [vmem:[#allocation2 + $0x61] sm:$0xff] %vm280_vm0, %v277_v31  ;;  %v279_v32 = vsel %vm263_vm5, %v255_v27, %v271_v30  ;;  %488 = vrot.lane.b32.xlu0 %v320_v11, %s1821_s16  ;;  %v332_v56 = vld [vmem:[#allocation2 + $0x52] sm:$0xff]  ;;  %v311_v27 = vld [vmem:[#allocation2] sm:$0xff] }
  0x24   : > { %310 = vst.msk [vmem:[#allocation2 + $0x81] sm:$0xff] %vm280_vm0, %v279_v32  ;;  %v2056_v57 = vld [vmem:[#allocation2 + $0x50] sm:$0xff] }
  0x25   : > { %v326_v60 = vld [vmem:[#allocation2 + $0x71] sm:$0xff] }
  0x26   : > { %v334_v62 = vld [vmem:[#allocation2 + $0x72] sm:$0xff] }
  0x27   : > { %398 = vrot.lane.b32.xlu0 %v322_v33, %s1817_s12  ;;  %v2080_v63 = vld [vmem:[#allocation2 + $0x70] sm:$0xff] }
  0x28   : > { %v367_v10 = vld [vmem:[#allocation2 + $0x90] sm:$0xff] }
  0x29   : > { %v1993_v34 = vld [vmem:[#allocation2 + $0x20] sm:$0xff]  ;;  %v375_v13 = vld [vmem:[#allocation2 + $0x91] sm:$0xff] }
  0x2a   : > { %458 = vrot.lane.b32.xlu1 %v1993_v34, %s1819_s14  ;;  %v321_v35 = vld [vmem:[#allocation2 + $0x21] sm:$0xff]  ;;  %v383_v16 = vld [vmem:[#allocation2 + $0x92] sm:$0xff] }
  0x2b   : > { %490 = vrot.lane.b32.xlu0 %v321_v35, %s1821_s16  ;;  %v329_v38 = vld [vmem:[#allocation2 + $0x22] sm:$0xff] }
  0x2c   : > { %v2035_v51 = vld [vmem:[#allocation2 + $0x40] sm:$0xff] }
  0x2d   : > { %v323_v53 = vld [vmem:[#allocation2 + $0x41] sm:$0xff] }
  0x2e   : > { %396 = vrot.lane.b32.xlu1 %v321_v35, %s1817_s12  ;;  %v331_v55 = vld [vmem:[#allocation2 + $0x42] sm:$0xff] }
  0x2f   : > { %522 = vrot.lane.b32.xlu0 %v329_v38, %s1820_s15  ;;  %v2062_v58 = vld [vmem:[#allocation2 + $0x60] sm:$0xff] }
  0x30   : > { %v325_v59 = vld [vmem:[#allocation2 + $0x61] sm:$0xff] }
  0x31   : > { %v333_v61 = vld [vmem:[#allocation2 + $0x62] sm:$0xff] }
  0x32   : > { %428 = vrot.lane.b32.xlu1 %v329_v38, %s1818_s13  ;;  %v342_v0 = vld [vmem:[#allocation2 + $0x80] sm:$0xff] }
  0x33   : > { %430 = vrot.lane.b32.xlu0 %v330_v43, %s1818_s13  ;;  %v350_v1 = vld [vmem:[#allocation2 + $0x81] sm:$0xff] }
  0x34   : > { %v358_v3 = vld [vmem:[#allocation2 + $0x82] sm:$0xff] }
  0x36   : > { %552 = vrot.lane.b32.xlu1 %v1993_v34, %s1822_s25 }
  0x37   : > { %554 = vrot.lane.b32.xlu0 %v2023_v47, %s1822_s25 }
  0x3a   : > { %460 = vrot.lane.b32.xlu1 %v2023_v47, %s1819_s14 }
  0x3b   : > { %462 = vrot.lane.b32.xlu0 %v2035_v51, %s1819_s14 }
  0x3e   : > { %584 = vrot.lane.b32.xlu1 %v321_v35, %s1823_s10 }
  0x3f   : > { %586 = vrot.lane.b32.xlu0 %v322_v33, %s1823_s10 }
  0x42   : > { %492 = vrot.lane.b32.xlu1 %v322_v33, %s1821_s16 }
  0x43   : > { %400 = vrot.lane.b32.xlu0 %v323_v53, %s1817_s12 }
  0x46   : > { %616 = vrot.lane.b32.xlu1 %v329_v38, %s2513_s17 }
  0x47   : > { %524 = vrot.lane.b32.xlu0 %v330_v43, %s1820_s15 }
  0x4a   : > { %494 = vrot.lane.b32.xlu1 %v323_v53, %s1821_s16 }
  0x4b   : > { %402 = vrot.lane.b32.xlu0 %v324_v54, %s1817_s12 }
  0x4e   : > { %618 = vrot.lane.b32.xlu1 %v330_v43, %s2513_s17 }
  0x4f   : > { %526 = vrot.lane.b32.xlu0 %v331_v55, %s1820_s15 }
  0x52   : > { %432 = vrot.lane.b32.xlu1 %v331_v55, %s1818_s13 }
  0x53   : > { %434 = vrot.lane.b32.xlu0 %v332_v56, %s1818_s13 }
  0x56   : > { %556 = vrot.lane.b32.xlu1 %v2035_v51, %s1822_s25 }
  0x57   : > { %558 = vrot.lane.b32.xlu0 %v2056_v57, %s1822_s25 }
  0x5a   : > { %464 = vrot.lane.b32.xlu1 %v2056_v57, %s1819_s14 }
  0x5b   : > { %466 = vrot.lane.b32.xlu0 %v2062_v58, %s1819_s14 }
  0x5e   : > { %588 = vrot.lane.b32.xlu1 %v323_v53, %s1823_s10 }
  0x5f   : > { %590 = vrot.lane.b32.xlu0 %v324_v54, %s1823_s10 }
  0x62   : > { %496 = vrot.lane.b32.xlu1 %v324_v54, %s1821_s16 }
  0x63   : > { %404 = vrot.lane.b32.xlu0 %v325_v59, %s1817_s12 }
  0x66   : > { %620 = vrot.lane.b32.xlu1 %v331_v55, %s2513_s17 }
  0x67   : > { %528 = vrot.lane.b32.xlu0 %v332_v56, %s1820_s15 }
  0x6a   : > { %498 = vrot.lane.b32.xlu1 %v325_v59, %s1821_s16 }
  0x6b   : > { %406 = vrot.lane.b32.xlu0 %v326_v60, %s1817_s12 }
  0x6e   : > { %622 = vrot.lane.b32.xlu1 %v332_v56, %s2513_s17 }
  0x6f   : > { %530 = vrot.lane.b32.xlu0 %v333_v61, %s1820_s15 }
  0x72   : > { %436 = vrot.lane.b32.xlu1 %v333_v61, %s1818_s13 }
  0x73   : > { %438 = vrot.lane.b32.xlu0 %v334_v62, %s1818_s13 }
  0x76   : > { %560 = vrot.lane.b32.xlu1 %v2062_v58, %s1822_s25 }
  0x77   : > { %562 = vrot.lane.b32.xlu0 %v2080_v63, %s1822_s25 }
  0x7a   : > { %468 = vrot.lane.b32.xlu1 %v2080_v63, %s1819_s14 }
  0x7b   : > { %470 = vrot.lane.b32.xlu0 %v342_v0, %s1819_s14 }
  0x7e   : > { %592 = vrot.lane.b32.xlu1 %v325_v59, %s1823_s10 }
  0x7f   : > { %594 = vrot.lane.b32.xlu0 %v326_v60, %s1823_s10 }
  0x82   : > { %500 = vrot.lane.b32.xlu1 %v326_v60, %s1821_s16 }
  0x83   : > { %502 = vrot.lane.b32.xlu0 %v350_v1, %s1821_s16 }
  0x86   : > { %624 = vrot.lane.b32.xlu1 %v333_v61, %s2513_s17 }
  0x87   : > { %626 = vrot.lane.b32.xlu0 %v334_v62, %s2513_s17 }
  0x89   : > { %v393_v7 = vpop.permute.xlu0 %392 }
  0x8a   : > { %532 = vrot.lane.b32.xlu1 %v334_v62, %s1820_s15  ;;  %v425_v8 = vpop.permute.xlu1 %424  ;;  %v640_v30 = vsel %vm280_vm0, %v311_v27, %v393_v7 }
  0x8b   : > { %564 = vrot.lane.b32.xlu0 %v342_v0, %s1822_s25  ;;  %v649_v33 = vsel %vm648_vm6, %v640_v30, %v425_v8 }
  0x8d   : > { %v395_v11 = vpop.permute.xlu0 %394 }
  0x8e   : > { %534 = vrot.lane.b32.xlu1 %v358_v3, %s1820_s15  ;;  %v427_v12 = vpop.permute.xlu1 %426  ;;  %v641_v41 = vsel %vm280_vm0, %v1979_v20, %v395_v11 }
  0x8f   : > { %596 = vrot.lane.b32.xlu0 %v350_v1, %s1823_s10  ;;  %v650_v46 = vsel %vm648_vm6, %v641_v41, %v427_v12 }
  0x91   : > { %v457_v14 = vpop.permute.xlu0 %456 }
  0x92   : > { %566 = vrot.lane.b32.xlu1 %v367_v10, %s1822_s25  ;;  %v521_v15 = vpop.permute.xlu1 %520  ;;  %v658_v35 = vsel %vm657_vm7, %v649_v33, %v457_v14 }
  0x93   : > { %628 = vrot.lane.b32.xlu0 %v358_v3, %s2513_s17 }
  0x95   : > { %v489_v17 = vpop.permute.xlu0 %488 }
  0x96   : > { %598 = vrot.lane.b32.xlu1 %v375_v13, %s1823_s10  ;;  %v667_v36 = vsel %vm666_vm8, %v658_v35, %v489_v17 }
  0x97   : > { %v676_v39 = vsel %vm675_vm9, %v667_v36, %v521_v15 }
  0x99   : > { %v2101_v19 = vpop.permute.xlu0 %398 }
  0x9a   : > { %630 = vrot.lane.b32.xlu1 %v383_v16, %s2513_s17 }
  0x9c   : > { %v459_v18 = vpop.permute.xlu1 %458 }
  0x9d   : > { %v491_v22 = vpop.permute.xlu0 %490  ;;  %v659_v48 = vsel %vm657_vm7, %v650_v46, %v459_v18 }
  0x9e   : > { %v668_v52 = vsel %vm666_vm8, %v659_v48, %v491_v22 }
  0xa0   : > { %v397_v21 = vpop.permute.xlu1 %396 }
  0xa1   : > { %v523_v24 = vpop.permute.xlu0 %522  ;;  %v642_v10 = vsel %vm280_vm0, %v1993_v34, %v397_v21  ;;  %v643_v34 = vsel %vm280_vm0, %v2023_v47, %v2101_v19 }
  0xa2   : > { %v677_v53 = vsel %vm675_vm9, %v668_v52, %v523_v24 }
  0xa4   : > { %v429_v23 = vpop.permute.xlu1 %428 }
  0xa5   : > { %v2103_v26 = vpop.permute.xlu0 %430  ;;  %v651_v11 = vsel %vm648_vm6, %v642_v10, %v429_v23 }
  0xa6   : > { %v652_v21 = vsel %vm648_vm6, %v643_v34, %v2103_v26 }
  0xa8   : > { %v553_v25 = vpop.permute.xlu1 %552 }
  0xa9   : > { %v555_v29 = vpop.permute.xlu0 %554  ;;  %v685_v40 = vsel %vm684_vm10, %v676_v39, %v553_v25 }
  0xaa   : > { %v686_v20 = vsel %vm684_vm10, %v677_v53, %v555_v29 }
  0xac   : > { %v461_v28 = vpop.permute.xlu1 %460 }
  0xad   : > { %v463_v32 = vpop.permute.xlu0 %462  ;;  %v660_v12 = vsel %vm657_vm7, %v651_v11, %v461_v28 }
  0xae   : > { %v661_v23 = vsel %vm657_vm7, %v652_v21, %v463_v32 }
  0xb0   : > { %v585_v31 = vpop.permute.xlu1 %584 }
  0xb1   : > { %v587_v38 = vpop.permute.xlu0 %586  ;;  %v694_v42 = vsel %vm693_vm11, %v685_v40, %v585_v31 }
  0xb2   : > { %v695_v54 = vsel %vm693_vm11, %v686_v20, %v587_v38 }
  0xb4   : > { %v493_v37 = vpop.permute.xlu1 %492 }
  0xb5   : > { %v401_v44 = vpop.permute.xlu0 %400  ;;  %v669_v15 = vsel %vm666_vm8, %v660_v12, %v493_v37 }
  0xb8   : > { %v617_v43 = vpop.permute.xlu1 %616 }
  0xb9   : > { %v703_v45 = vsel %vm702_vm12, %v694_v42, %v617_v43  ;;  %v525_v50 = vpop.permute.xlu0 %524  ;;  %v644_v42 = vsel %vm280_vm0, %v2035_v51, %v401_v44 }
  0xba   : > { %1625 = vmatprep.mubr.msk.f32.mxu0 %vm720_vm13, %v703_v45  ;;  %v678_v16 = vsel %vm675_vm9, %v669_v15, %v525_v50 }
  0xbc   : > { %v495_v49 = vpop.permute.xlu1 %494 }
  0xbd   : > { %v403_v56 = vpop.permute.xlu0 %402  ;;  %v670_v29 = vsel %vm666_vm8, %v661_v23, %v495_v49 }
  0xbe   : > { %v645_v50 = vsel %vm280_vm0, %v2056_v57, %v403_v56 }
  0xc0   : > { %v619_v55 = vpop.permute.xlu1 %618 }
  0xc1   : > { %v704_v59 = vsel %vm702_vm12, %v695_v54, %v619_v55  ;;  %v527_v61 = vpop.permute.xlu0 %526 }
  0xc2   : > { %1626 = vmatmul.mubr.msk.f32.vlgmr.msra.gmra.mrb[0].mxu0 %vm720_vm13, %v704_v59  ;;  %v679_v30 = vsel %vm675_vm9, %v670_v29, %v527_v61 }
  0xc4   : > { %v433_v60 = vpop.permute.xlu1 %432 }
  0xc5   : > { %v435_v0 = vpop.permute.xlu0 %434  ;;  %v653_v43 = vsel %vm648_vm6, %v644_v42, %v433_v60 }
  0xc6   : > { %v654_v53 = vsel %vm648_vm6, %v645_v50, %v435_v0 }
  0xc8   : > { %v557_v62 = vpop.permute.xlu1 %556 }
  0xc9   : > { %v559_v3 = vpop.permute.xlu0 %558  ;;  %v687_v17 = vsel %vm684_vm10, %v678_v16, %v557_v62 }
  0xca   : > { %v688_v31 = vsel %vm684_vm10, %v679_v30, %v559_v3  ;;  %v936_v30 = vld [vmem:[#allocation3 + $0x1] sm:$0xff] }
  0xcb   : > { %1009 = vrot.lane.b32.xlu0 %v936_v30, %s1817_s12 }
  0xcc   : > { %v465_v1 = vpop.permute.xlu1 %464 }
  0xcd   : > { %v467_v8 = vpop.permute.xlu0 %466  ;;  %v662_v45 = vsel %vm657_vm7, %v653_v43, %v465_v1 }
  0xce   : > { %v663_v54 = vsel %vm657_vm7, %v654_v53, %v467_v8 }
  0xd0   : > { %v589_v7 = vpop.permute.xlu1 %588 }
  0xd1   : > { %v591_v14 = vpop.permute.xlu0 %590  ;;  %v696_v18 = vsel %vm693_vm11, %v687_v17, %v589_v7 }
  0xd2   : > { %v697_v33 = vsel %vm693_vm11, %v688_v31, %v591_v14  ;;  %v984_v31 = vld [vmem:[#allocation3 + $0x90] sm:$0xff] }
  0xd3   : > { %1183 = vrot.lane.b32.xlu1 %v984_v31, %s1822_s25 }
  0xd4   : > { %v497_v13 = vpop.permute.xlu1 %496 }
  0xd5   : > { %v405_v24 = vpop.permute.xlu0 %404  ;;  %v671_v49 = vsel %vm666_vm8, %v662_v45, %v497_v13 }
  0xd6   : > { %v646_v8 = vsel %vm280_vm0, %v2062_v58, %v405_v24 }
  0xd8   : > { %v621_v22 = vpop.permute.xlu1 %620 }
  0xd9   : > { %v705_v25 = vsel %vm702_vm12, %v696_v18, %v621_v22  ;;  %v529_v28 = vpop.permute.xlu0 %528 }
  0xda   : > { %1628 = vmatprep.mubr.msk.f32.mxu0 %vm720_vm13, %v705_v25  ;;  %v680_v52 = vsel %vm675_vm9, %v671_v49, %v529_v28 }
  0xdc   : > { %v499_v27 = vpop.permute.xlu1 %498 }
  0xdd   : > { %v407_v36 = vpop.permute.xlu0 %406  ;;  %v672_v59 = vsel %vm666_vm8, %v663_v54, %v499_v27 }
  0xde   : > { %v647_v15 = vsel %vm280_vm0, %v2080_v63, %v407_v36  ;;  %v850_v36 = vld [vmem:[%s2510_s3] sm:$0x3] }
  0xe0   : > { %v623_v35 = vpop.permute.xlu1 %622 }
  0xe1   : > { %v706_v47 = vsel %vm702_vm12, %v697_v33, %v623_v35  ;;  %v531_v26 = vpop.permute.xlu0 %530  ;;  %v944_v33 = vld [vmem:[#allocation3 + $0x2] sm:$0xff]  ;;  %v992_v35 = vld [vmem:[#allocation3 + $0x91] sm:$0xff] }
  0xe2   : > { %1629 = vmatmul.mubr.msk.f32.gmra.mrb[2].mxu0 %vm720_vm13, %v706_v47  ;;  %v681_v61 = vsel %vm675_vm9, %v672_v59, %v531_v26  ;;  %1041 = vrot.lane.b32.xlu0 %v944_v33, %s1818_s13  ;;  %v2195_v47 = vrot.slane %v850_v36, %v234_v4 }
  0xe3   : > { %1215 = vrot.lane.b32.xlu1 %v992_v35, %s1823_s10 }
  0xe4   : > { %v437_v19 = vpop.permute.xlu1 %436 }
  0xe5   : > { %v439_v32 = vpop.permute.xlu0 %438  ;;  %v655_v10 = vsel %vm648_vm6, %v646_v8, %v437_v19  ;;  %v2199_v19 = vrot.slane %v850_v36, %v246_v5 }
  0xe6   : > { %v656_v17 = vsel %vm648_vm6, %v647_v15, %v439_v32  ;;  %v1328_v15 = vld [vmem:[%s2511_s4 + $0x38] sm:$0xff] }
  0xe8   : > { %v561_v37 = vpop.permute.xlu1 %560 }
  0xe9   : > { %v563_v39 = vpop.permute.xlu0 %562  ;;  %v689_v20 = vsel %vm684_vm10, %v680_v52, %v561_v37 }
  0xea   : > { %v690_v57 = vsel %vm684_vm10, %v681_v61, %v563_v39 }
  0xec   : > { %v469_v38 = vpop.permute.xlu1 %468 }
  0xed   : > { %v471_v41 = vpop.permute.xlu0 %470  ;;  %v664_v11 = vsel %vm657_vm7, %v655_v10, %v469_v38  ;;  %v1325_v10 = vld [vmem:[%s2511_s4 + $0x20] sm:$0xff] }
  0xee   : > { %v665_v22 = vsel %vm657_vm7, %v656_v17, %v471_v41 }
  0xf0   : > { %v593_v40 = vpop.permute.xlu1 %592 }
  0xf1   : > { %v595_v48 = vpop.permute.xlu0 %594  ;;  %v698_v51 = vsel %vm693_vm11, %v689_v20, %v593_v40 }
  0xf2   : > { %v699_v56 = vsel %vm693_vm11, %v690_v57, %v595_v48  ;;  %v1321_v57 = vld [vmem:[%s2511_s4] sm:$0xff] }
  0xf4   : > { %v501_v46 = vpop.permute.xlu1 %500 }
  0xf5   : > { %v503_v55 = vpop.permute.xlu0 %502  ;;  %v673_v14 = vsel %vm666_vm8, %v664_v11, %v501_v46  ;;  %v1326_v11 = vld [vmem:[%s2511_s4 + $0x28] sm:$0xff] }
  0xf6   : > { %v674_v34 = vsel %vm666_vm8, %v665_v22, %v503_v55 }
  0xf8   : > { %v625_v44 = vpop.permute.xlu1 %624 }
  0xf9   : > { %v707_v60 = vsel %vm702_vm12, %v698_v51, %v625_v44  ;;  %v627_v0 = vpop.permute.xlu0 %626 }
  0xfa   : > { %1631 = vmatprep.mubr.msk.f32.mxu0 %vm720_vm13, %v707_v60  ;;  %v708_v1 = vsel %vm702_vm12, %v699_v56, %v627_v0  ;;  %v1322_v56 = vld [vmem:[%s2511_s4 + $0x8] sm:$0xff] }
  0xfb   : > { %1632 = vmatmul.mubr.msk.f32.gmra.mrb[4].mxu0 %vm720_vm13, %v708_v1  ;;  %v1323_v1 = vld [vmem:[%s2511_s4 + $0x10] sm:$0xff] }
  0xfc   : > { %v533_v62 = vpop.permute.xlu1 %532 }
  0xfd   : > { %v565_v7 = vpop.permute.xlu0 %564  ;;  %v682_v16 = vsel %vm675_vm9, %v673_v14, %v533_v62  ;;  %v1683_v62 = vpack.c.bf16 %v1322_v56, %v1321_v57  ;;  %v1327_v14 = vld [vmem:[%s2511_s4 + $0x30] sm:$0xff] }
  0xfe   : > { %v691_v18 = vsel %vm684_vm10, %v682_v16, %v565_v7  ;;  %v1695_v17 = vpack.c.bf16 %v1328_v15, %v1327_v14 }
  0xff   : > { %1684 = vmatprep.subr.bf16.mxu1 %v1683_v62 }
 0x100   : > { %v535_v3 = vpop.permute.xlu1 %534  ;;  %1686 = vmatpush3.bf16.msra.mxu1 %v1683_v62 }
 0x101   : > { %v597_v13 = vpop.permute.xlu0 %596  ;;  %v683_v23 = vsel %vm675_vm9, %v674_v34, %v535_v3  ;;  %v1324_v3 = vld [vmem:[%s2511_s4 + $0x18] sm:$0xff] }
 0x102   : > { %v700_v58 = vsel %vm693_vm11, %v691_v18, %v597_v13  ;;  %v1687_v7 = vpack.c.bf16 %v1324_v3, %v1323_v1  ;;  %v928_v1 = vld [vmem:[#allocation3] sm:$0xff] }
 0x104   : > { %v567_v12 = vpop.permute.xlu1 %566  ;;  %1688 = vmatprep.subr.bf16.mxu1 %v1687_v7 }
 0x105   : > { %v629_v25 = vpop.permute.xlu0 %628  ;;  %v692_v63 = vsel %vm684_vm10, %v683_v23, %v567_v12  ;;  %v1691_v12 = vpack.c.bf16 %v1326_v11, %v1325_v10  ;;  %1690 = vmatpush3.bf16.msra.mxu1 %v1687_v7  ;;  %v1329_v23 = vld [vmem:[%s2511_s4 + $0x40] sm:$0xff] }
 0x106   : > { %v709_v21 = vsel %vm702_vm12, %v700_v58, %v629_v25 }
 0x107   : > { %1634 = vmatprep.mubr.msk.f32.mxu0 %vm720_vm13, %v709_v21  ;;  %1692 = vmatprep.subr.bf16.mxu1 %v1691_v12 }
 0x108   : > { %v599_v24 = vpop.permute.xlu1 %598 }
 0x109   : > { %v701_v27 = vsel %vm693_vm11, %v692_v63, %v599_v24  ;;  %1694 = vmatpush3.bf16.msra.mxu1 %v1691_v12 }
 0x10a   : > { %1696 = vmatprep.subr.bf16.mxu1 %v1695_v17 }
 0x10c   : > { %v631_v28 = vpop.permute.xlu1 %630 }
 0x10d   : > { %v710_v29 = vsel %vm702_vm12, %v701_v27, %v631_v28  ;;  %1698 = vmatpush3.bf16.msra.mxu1 %v1695_v17 }
 0x10e   : > { %1635 = vmatmul.mubr.msk.f32.gmra.mrb[6].mxu0 %vm720_vm13, %v710_v29  ;;  %1653 = vmatprep.subr.mxu1 %v1329_v23 }
 0x111   : > { %1654 = vmatpush3.msra.mxu1 %v1329_v23 }
 0x195   : > { %v1627_v26 = vpop.f32.mrb[0].mxu0 }
 0x196   : > { %v856_v37 = vmul.f32 %v1627_v26, %v2195_v47  ;;  %v811_v32 = vpop.f32.mrb[1].mxu0 }
 0x197   : > { %v855_v38 = vmul.f32 %v2195_v47, %v811_v32 }
 0x198   : > { %v868_v39 = vadd.f32 %v2199_v19, %v856_v37 }
 0x199   : > { %v867_v40 = vadd.f32 %v2199_v19, %v855_v38 }
 0x19a   : > { %vm876_vm14 = vcmp.gt.f32.partialorder %v868_v39, 0.0  ;;  %v884_v41 = vmul.f32 0.1, %v868_v39 }
 0x19b   : > { %vm875_vm15 = vcmp.gt.f32.partialorder %v867_v40, 0.0  ;;  %v883_v42 = vmul.f32 0.1, %v867_v40 }
 0x19c   : > { %v892_v4 = vsel %vm876_vm14, %v868_v39, %v884_v41 }
 0x19d   : > { %921 = vst.msk [vmem:[#allocation3 + $0x21] sm:$0xff] %vm280_vm0, %v892_v4  ;;  %v891_v2 = vsel %vm875_vm15, %v867_v40, %v883_v42 }
 0x19e   : > { %920 = vst.msk [vmem:[#allocation3 + $0x11] sm:$0xff] %vm280_vm0, %v891_v2 }
 0x1a4   : > { %v961_v5 = vld [vmem:[#allocation3 + $0x21] sm:$0xff] }
 0x1a5   : > { %v2207_v43 = vld [vmem:[#allocation3 + $0x20] sm:$0xff]  ;;  %1107 = vrot.lane.b32.xlu0 %v961_v5, %s1821_s16  ;;  %v2214_v46 = vld [vmem:[#allocation3 + $0x10] sm:$0xff] }
 0x1a6   : > { %1075 = vrot.lane.b32.xlu1 %v2207_v43, %s1819_s14  ;;  %v969_v45 = vld [vmem:[#allocation3 + $0x22] sm:$0xff]  ;;  %v960_v48 = vld [vmem:[#allocation3 + $0x11] sm:$0xff] }
 0x1a7   : > { %v945_v60 = vld [vmem:[#allocation3 + $0x12] sm:$0xff] }
 0x1a9   : > { %1139 = vrot.lane.b32.xlu0 %v969_v45, %s1820_s15 }
 0x1aa   : > { %1013 = vrot.lane.b32.xlu1 %v961_v5, %s1817_s12 }
 0x1ad   : > { %1073 = vrot.lane.b32.xlu0 %v2214_v46, %s1819_s14 }
 0x1ae   : > { %1045 = vrot.lane.b32.xlu1 %v969_v45, %s1818_s13 }
 0x1b1   : > { %1105 = vrot.lane.b32.xlu0 %v960_v48, %s1821_s16 }
 0x1b2   : > { %1169 = vrot.lane.b32.xlu1 %v2207_v43, %s1822_s25 }
 0x1b5   : > { %v1630_v49 = vpop.f32.mrb[2].mxu0 }
 0x1b6   : > { %1201 = vrot.lane.b32.xlu1 %v961_v5, %s1823_s10  ;;  %v858_v50 = vmul.f32 %v1630_v49, %v2195_v47  ;;  %v821_v52 = vpop.f32.mrb[3].mxu0 }
 0x1b7   : > { %v857_v53 = vmul.f32 %v2195_v47, %v821_v52 }
 0x1b8   : > { %v870_v20 = vadd.f32 %v2199_v19, %v858_v50 }
 0x1b9   : > { %v869_v54 = vadd.f32 %v2199_v19, %v857_v53 }
 0x1ba   : > { %1233 = vrot.lane.b32.xlu1 %v969_v45, %s2513_s17  ;;  %vm878_vm1 = vcmp.gt.f32.partialorder %v870_v20, 0.0  ;;  %v886_v51 = vmul.f32 0.1, %v870_v20 }
 0x1bb   : > { %vm877_vm2 = vcmp.gt.f32.partialorder %v869_v54, 0.0  ;;  %v885_v44 = vmul.f32 0.1, %v869_v54 }
 0x1bc   : > { %v894_v55 = vsel %vm878_vm1, %v870_v20, %v886_v51  ;;  %v1010_v20 = vpop.permute.xlu0 %1009 }
 0x1bd   : > { %923 = vst.msk [vmem:[#allocation3 + $0x41] sm:$0xff] %vm280_vm0, %v894_v55  ;;  %v893_v59 = vsel %vm877_vm2, %v869_v54, %v885_v44  ;;  %v1000_v54 = vld [vmem:[#allocation3 + $0x92] sm:$0xff] }
 0x1be   : > { %1011 = vrot.lane.b32.xlu1 %v960_v48, %s1817_s12  ;;  %922 = vst.msk [vmem:[#allocation3 + $0x31] sm:$0xff] %vm280_vm0, %v893_v59  ;;  %v2323_v48 = vpop.permute.xlu1 %1183 }
 0x1c0   : > { %v1042_v44 = vpop.permute.xlu0 %1041 }
 0x1c2   : > { %1043 = vrot.lane.b32.xlu1 %v945_v60, %s1818_s13  ;;  %v2332_v52 = vpop.permute.xlu1 %1215 }
 0x1c4   : > { %v2232_v61 = vld [vmem:[#allocation3 + $0x40] sm:$0xff] }
 0x1c5   : > { %1079 = vrot.lane.b32.xlu0 %v2232_v61, %s1819_s14  ;;  %v963_v0 = vld [vmem:[#allocation3 + $0x41] sm:$0xff]  ;;  %v939_v13 = vld [vmem:[#allocation3 + $0x31] sm:$0xff] }
 0x1c6   : > { %1137 = vrot.lane.b32.xlu1 %v945_v60, %s1820_s15  ;;  %v948_v8 = vld [vmem:[#allocation3 + $0x42] sm:$0xff]  ;;  %v947_v25 = vld [vmem:[#allocation3 + $0x32] sm:$0xff] }
 0x1c7   : > { %v2277_v28 = vld [vmem:[#allocation3 + $0x30] sm:$0xff] }
 0x1c9   : > { %1017 = vrot.lane.b32.xlu0 %v963_v0, %s1817_s12 }
 0x1ca   : > { %1111 = vrot.lane.b32.xlu1 %v963_v0, %s1821_s16 }
 0x1cd   : > { %1143 = vrot.lane.b32.xlu0 %v948_v8, %s1820_s15 }
 0x1ce   : > { %1049 = vrot.lane.b32.xlu1 %v948_v8, %s1818_s13  ;;  %v1633_v16 = vpop.f32.mrb[4].mxu0 }
 0x1cf   : > { %v860_v18 = vmul.f32 %v1633_v16, %v2195_v47  ;;  %v831_v22 = vpop.f32.mrb[5].mxu0 }
 0x1d0   : > { %v859_v58 = vmul.f32 %v2195_v47, %v831_v22 }
 0x1d1   : > { %1015 = vrot.lane.b32.xlu0 %v939_v13, %s1817_s12  ;;  %v872_v24 = vadd.f32 %v2199_v19, %v860_v18 }
 0x1d2   : > { %1173 = vrot.lane.b32.xlu1 %v2232_v61, %s1822_s25  ;;  %v871_v34 = vadd.f32 %v2199_v19, %v859_v58 }
 0x1d3   : > { %vm880_vm3 = vcmp.gt.f32.partialorder %v872_v24, 0.0  ;;  %v888_v21 = vmul.f32 0.1, %v872_v24 }
 0x1d4   : > { %vm879_vm4 = vcmp.gt.f32.partialorder %v871_v34, 0.0  ;;  %v887_v63 = vmul.f32 0.1, %v871_v34 }
 0x1d5   : > { %1047 = vrot.lane.b32.xlu0 %v947_v25, %s1818_s13  ;;  %v896_v27 = vsel %vm880_vm3, %v872_v24, %v888_v21 }
 0x1d6   : > { %1205 = vrot.lane.b32.xlu1 %v963_v0, %s1823_s10  ;;  %925 = vst.msk [vmem:[#allocation3 + $0x61] sm:$0xff] %vm280_vm0, %v896_v27  ;;  %v895_v29 = vsel %vm879_vm4, %v871_v34, %v887_v63 }
 0x1d7   : > { %924 = vst.msk [vmem:[#allocation3 + $0x51] sm:$0xff] %vm280_vm0, %v895_v29 }
 0x1d9   : > { %1171 = vrot.lane.b32.xlu0 %v2277_v28, %s1822_s25 }
 0x1da   : > { %1237 = vrot.lane.b32.xlu1 %v948_v8, %s2517_s7  ;;  %v1257_v8 = vsel %vm280_vm0, %v928_v1, %v1010_v20 }
 0x1db   : > { %v1265_v10 = vsel %vm648_vm6, %v1257_v8, %v1042_v44 }
 0x1dd   : > { %1203 = vrot.lane.b32.xlu0 %v939_v13, %s1823_s10  ;;  %v2292_v26 = vld [vmem:[#allocation3 + $0x60] sm:$0xff] }
 0x1de   : > { %1077 = vrot.lane.b32.xlu1 %v2277_v28, %s1819_s14  ;;  %v965_v40 = vld [vmem:[#allocation3 + $0x61] sm:$0xff]  ;;  %v941_v41 = vld [vmem:[#allocation3 + $0x51] sm:$0xff] }
 0x1df   : > { %v949_v42 = vld [vmem:[#allocation3 + $0x52] sm:$0xff] }
 0x1e0   : > { %v2309_v4 = vld [vmem:[#allocation3 + $0x50] sm:$0xff] }
 0x1e1   : > { %1141 = vrot.lane.b32.xlu0 %v947_v25, %s1820_s15  ;;  %v1636_v30 = vpop.f32.mrb[6].mxu0 }
 0x1e2   : > { %1109 = vrot.lane.b32.xlu1 %v939_v13, %s1821_s16  ;;  %v862_v31 = vmul.f32 %v1636_v30, %v2195_v47  ;;  %v841_v33 = vpop.f32.mrb[7].mxu0 }
 0x1e3   : > { %v861_v35 = vmul.f32 %v2195_v47, %v841_v33 }
 0x1e4   : > { %v874_v36 = vadd.f32 %v2199_v19, %v862_v31 }
 0x1e5   : > { %v873_v37 = vadd.f32 %v2199_v19, %v861_v35  ;;  %1083 = vrot.lane.b32.xlu0 %v2292_v26, %s1819_s14  ;;  %v950_v19 = vld [vmem:[#allocation3 + $0x62] sm:$0xff] }
 0x1e6   : > { %1235 = vrot.lane.b32.xlu1 %v947_v25, %s2517_s7  ;;  %vm882_vm5 = vcmp.gt.f32.partialorder %v874_v36, 0.0  ;;  %v890_v32 = vmul.f32 0.1, %v874_v36 }
 0x1e7   : > { %vm881_vm14 = vcmp.gt.f32.partialorder %v873_v37, 0.0  ;;  %v889_v38 = vmul.f32 0.1, %v873_v37 }
 0x1e8   : > { %v898_v39 = vsel %vm882_vm5, %v874_v36, %v890_v32 }
 0x1e9   : > { %927 = vst.msk [vmem:[#allocation3 + $0x81] sm:$0xff] %vm280_vm0, %v898_v39  ;;  %v897_v47 = vsel %vm881_vm14, %v873_v37, %v889_v38  ;;  %1021 = vrot.lane.b32.xlu0 %v965_v40, %s1817_s12 }
 0x1ea   : > { %1115 = vrot.lane.b32.xlu1 %v965_v40, %s1821_s16  ;;  %926 = vst.msk [vmem:[#allocation3 + $0x71] sm:$0xff] %vm280_vm0, %v897_v47 }
 0x1ed   : > { %1147 = vrot.lane.b32.xlu0 %v950_v19, %s1820_s15 }
 0x1ee   : > { %1053 = vrot.lane.b32.xlu1 %v950_v19, %s1818_s13 }
 0x1f0   : > { %v959_v2 = vld [vmem:[#allocation3 + $0x80] sm:$0xff] }
 0x1f1   : > { %1019 = vrot.lane.b32.xlu0 %v941_v41, %s1817_s12  ;;  %v975_v5 = vld [vmem:[#allocation3 + $0x82] sm:$0xff]  ;;  %v2325_v49 = vld [vmem:[#allocation3 + $0x70] sm:$0xff] }
 0x1f2   : > { %1177 = vrot.lane.b32.xlu1 %v2292_v26, %s1822_s25  ;;  %v967_v45 = vld [vmem:[#allocation3 + $0x81] sm:$0xff]  ;;  %v966_v50 = vld [vmem:[#allocation3 + $0x71] sm:$0xff] }
 0x1f3   : > { %v974_v53 = vld [vmem:[#allocation3 + $0x72] sm:$0xff] }
 0x1f5   : > { %1051 = vrot.lane.b32.xlu0 %v949_v42, %s1818_s13 }
 0x1f6   : > { %1209 = vrot.lane.b32.xlu1 %v965_v40, %s1823_s10 }
 0x1f9   : > { %1175 = vrot.lane.b32.xlu0 %v2309_v4, %s1822_s25 }
 0x1fa   : > { %1241 = vrot.lane.b32.xlu1 %v950_v19, %s2517_s7 }
 0x1fd   : > { %1207 = vrot.lane.b32.xlu0 %v941_v41, %s1823_s10 }
 0x1fe   : > { %1081 = vrot.lane.b32.xlu1 %v2309_v4, %s1819_s14 }
 0x201   : > { %1145 = vrot.lane.b32.xlu0 %v949_v42, %s1820_s15 }
 0x202   : > { %1113 = vrot.lane.b32.xlu1 %v941_v41, %s1821_s16 }
 0x205   : > { %1087 = vrot.lane.b32.xlu0 %v959_v2, %s1819_s14 }
 0x206   : > { %1239 = vrot.lane.b32.xlu1 %v949_v42, %s2517_s7 }
 0x209   : > { %1119 = vrot.lane.b32.xlu0 %v967_v45, %s1821_s16 }
 0x20a   : > { %1151 = vrot.lane.b32.xlu1 %v975_v5, %s1820_s15 }
 0x20d   : > { %1181 = vrot.lane.b32.xlu0 %v959_v2, %s1822_s25 }
 0x20e   : > { %1085 = vrot.lane.b32.xlu1 %v2325_v49, %s1819_s14 }
 0x211   : > { %1213 = vrot.lane.b32.xlu0 %v967_v45, %s1823_s10 }
 0x212   : > { %1117 = vrot.lane.b32.xlu1 %v966_v50, %s1821_s16  ;;  %s1572_s16 = sshll.u32 %s1878_s22, 10 }
 0x213   : > { %s2457_s17 = scalar_lea.hbm %s2512_s5, %s1572_s16 }
 0x215   : > { %1023 = vrot.lane.b32.xlu0 %v966_v50, %s1817_s12 }
 0x216   : > { %1149 = vrot.lane.b32.xlu1 %v974_v53, %s1820_s15 }
 0x217   : > { %v1108_v60 = vpop.permute.xlu0 %1107 }
 0x218   : > { %v1076_v51 = vpop.permute.xlu1 %1075 }
 0x219   : > { %1055 = vrot.lane.b32.xlu0 %v974_v53, %s1818_s13  ;;  %s215_s13 = sand.u32 1, %s1806_s19  }
 0x21a   : > { %1247 = vrot.lane.b32.xlu1 %v1000_v54, %s2517_s7  ;;  %s1547_s14 = sshll.u32 %s215_s13, 6  ;;  %s2465_s22 = scalar_lea.sflag [#allocation5], %s215_s13 }
 0x21b   : > { %v1140_v56 = vpop.permute.xlu0 %1139  ;;  %s217_s15 = scalar_lea.vmem [#allocation4], %s1547_s14 }
 0x21c   : > { %v1014_v55 = vpop.permute.xlu1 %1013 }
 0x21d   : > { %1179 = vrot.lane.b32.xlu0 %v2325_v49, %s1822_s25  ;;  %v1259_v38 = vsel %vm280_vm0, %v2207_v43, %v1014_v55  ;;  %s1481_s25 = sshll.u32 %s217_s15, 4  ;;  %s2459_s25 = int_to_ptr.vmem [resolvable:$true] %s1481_s25 }
 0x21e   : > { %p1759_p0 = scmp.lt.s32.totalorder %s2459_s25, %s1757_s23 }
 0x21f   : > { %v1074_v3 = vpop.permute.xlu0 %1073 }
 0x220   : > { %v1046_v59 = vpop.permute.xlu1 %1045  ;;  %v1273_v13 = vsel %vm657_vm7, %v1265_v10, %v1074_v3 }
 0x221   : > { %1211 = vrot.lane.b32.xlu0 %v966_v50, %s1823_s10  ;;  %v1267_v39 = vsel %vm648_vm6, %v1259_v38, %v1046_v59 }
 0x223   : > { %v1106_v11 = vpop.permute.xlu0 %1105 }
 0x224   : > { %v1170_v57 = vpop.permute.xlu1 %1169  ;;  %v1281_v14 = vsel %vm666_vm8, %v1273_v13, %v1106_v11 }
 0x225   : > { %1243 = vrot.lane.b32.xlu0 %v974_v53, %s2517_s7 }
 0x228   : > { %v1202_v62 = vpop.permute.xlu1 %1201 }
 0x229   : > { %1245 = vrot.lane.b32.xlu0 %v975_v5, %s2517_s7 }
 0x22c   : > { %v1234_v0 = vpop.permute.xlu1 %1233 }
 0x230   : > { %v1012_v7 = vpop.permute.xlu1 %1011 }
 0x231   : > { %v1258_v30 = vsel %vm280_vm0, %v2214_v46, %v1012_v7 }
 0x234   : > { %v1044_v12 = vpop.permute.xlu1 %1043 }
 0x235   : > { %v1266_v35 = vsel %vm648_vm6, %v1258_v30, %v1044_v12 }
 0x236   : > { %v1274_v36 = vsel %vm657_vm7, %v1266_v35, %v1076_v51 }
 0x237   : > { %v1080_v16 = vpop.permute.xlu0 %1079  ;;  %v1282_v40 = vsel %vm666_vm8, %v1274_v36, %v1108_v60 }
 0x238   : > { %v1138_v15 = vpop.permute.xlu1 %1137  ;;  %v1290_v42 = vsel %vm675_vm9, %v1282_v40, %v1140_v56 }
 0x239   : > { %v1289_v17 = vsel %vm675_vm9, %v1281_v14, %v1138_v15 }
 0x23a   : > { %v1297_v18 = vsel %vm684_vm10, %v1289_v17, %v1170_v57 }
 0x23b   : > { %v1305_v22 = vsel %vm693_vm11, %v1297_v18, %v1202_v62  ;;  %v1018_v24 = vpop.permute.xlu0 %1017 }
 0x23c   : > { %v1112_v58 = vpop.permute.xlu1 %1111  ;;  %v1313_v25 = vsel %vm702_vm12, %v1305_v22, %v1234_v0  ;;  %v1261_v13 = vsel %vm280_vm0, %v2232_v61, %v1018_v24 }
 0x23d   : > { %1655 = vmatprep.mubr.msk.f32.mxu1 %vm720_vm13, %v1313_v25 }
 0x23f   : > { %v1144_v21 = vpop.permute.xlu0 %1143 }
 0x240   : > { %v1050_v34 = vpop.permute.xlu1 %1049 }
 0x241   : > { %v1269_v14 = vsel %vm648_vm6, %v1261_v13, %v1050_v34 }
 0x243   : > { %v1016_v63 = vpop.permute.xlu0 %1015 }
 0x244   : > { %v1174_v23 = vpop.permute.xlu1 %1173  ;;  %v1260_v1 = vsel %vm280_vm0, %v2277_v28, %v1016_v63 }
 0x247   : > { %v1048_v29 = vpop.permute.xlu0 %1047 }
 0x248   : > { %v1206_v27 = vpop.permute.xlu1 %1205  ;;  %v1268_v8 = vsel %vm648_vm6, %v1260_v1, %v1048_v29 }
 0x249   : > { %v1276_v10 = vsel %vm657_vm7, %v1268_v8, %v1080_v16 }
 0x24a   : > { %v1284_v15 = vsel %vm666_vm8, %v1276_v10, %v1112_v58 }
 0x24b   : > { %v1172_v33 = vpop.permute.xlu0 %1171  ;;  %v1292_v25 = vsel %vm675_vm9, %v1284_v15, %v1144_v21 }
 0x24c   : > { %v1238_v31 = vpop.permute.xlu1 %1237  ;;  %v1298_v5 = vsel %vm684_vm10, %v1290_v42, %v1172_v33 }
 0x24f   : > { %v1204_v32 = vpop.permute.xlu0 %1203 }
 0x250   : > { %v1078_v37 = vpop.permute.xlu1 %1077  ;;  %v1306_v43 = vsel %vm693_vm11, %v1298_v5, %v1204_v32 }
 0x251   : > { %v1275_v47 = vsel %vm657_vm7, %v1267_v39, %v1078_v37 }
 0x253   : > { %v1142_v41 = vpop.permute.xlu0 %1141 }
 0x254   : > { %v1110_v19 = vpop.permute.xlu1 %1109 }
 0x255   : > { %v1283_v46 = vsel %vm666_vm8, %v1275_v47, %v1110_v19 }
 0x256   : > { %v1291_v2 = vsel %vm675_vm9, %v1283_v46, %v1142_v41 }
 0x257   : > { %v1299_v45 = vsel %vm684_vm10, %v1291_v2, %v1174_v23  ;;  %v1084_v53 = vpop.permute.xlu0 %1083 }
 0x258   : > { %v1236_v50 = vpop.permute.xlu1 %1235  ;;  %v1307_v20 = vsel %vm693_vm11, %v1299_v45, %v1206_v27 }
 0x259   : > { %v1314_v54 = vsel %vm702_vm12, %v1306_v43, %v1236_v50  ;;  %v1315_v51 = vsel %vm702_vm12, %v1307_v20, %v1238_v31 }
 0x25a   : > { %1656 = vmatmul.mubr.msk.f32.vlgmr.msra.gmra.mrb[0].mxu1 %vm720_vm13, %v1314_v54 }
 0x25b   : > { %1658 = vmatprep.mubr.msk.f32.mxu1 %vm720_vm13, %v1315_v51  ;;  %v1022_v55 = vpop.permute.xlu0 %1021 }
 0x25c   : > { %v1116_v44 = vpop.permute.xlu1 %1115  ;;  %v1263_v42 = vsel %vm280_vm0, %v2292_v26, %v1022_v55 }
 0x25f   : > { %v1148_v60 = vpop.permute.xlu0 %1147 }
 0x260   : > { %v1054_v59 = vpop.permute.xlu1 %1053 }
 0x263   : > { %v1020_v56 = vpop.permute.xlu0 %1019 }
 0x264   : > { %v1178_v57 = vpop.permute.xlu1 %1177  ;;  %v1262_v37 = vsel %vm280_vm0, %v2309_v4, %v1020_v56  ;;  %v1271_v4 = vsel %vm648_vm6, %v1263_v42, %v1054_v59 }
 0x267   : > { %v1052_v0 = vpop.permute.xlu0 %1051 }
 0x268   : > { %v1210_v62 = vpop.permute.xlu1 %1209  ;;  %v1270_v39 = vsel %vm648_vm6, %v1262_v37, %v1052_v0 }
 0x269   : > { %v1278_v41 = vsel %vm657_vm7, %v1270_v39, %v1084_v53 }
 0x26b   : > { %v1176_v7 = vpop.permute.xlu0 %1175 }
 0x26c   : > { %v1242_v3 = vpop.permute.xlu1 %1241  ;;  %v1300_v16 = vsel %vm684_vm10, %v1292_v25, %v1176_v7 }
 0x26f   : > { %v1208_v12 = vpop.permute.xlu0 %1207 }
 0x270   : > { %v1082_v11 = vpop.permute.xlu1 %1081  ;;  %v1308_v61 = vsel %vm693_vm11, %v1300_v16, %v1208_v12 }
 0x271   : > { %v1277_v17 = vsel %vm657_vm7, %v1269_v14, %v1082_v11  ;;  %v225_v11 = vld [vmem:[%s1961_s11 + $0x10] sm:$0xff] }
 0x272   : > { %v238_v12 = vmul.f32 %v1956_v6, %v225_v11 }
 0x273   : > { %v1146_v22 = vpop.permute.xlu0 %1145 }
 0x274   : > { %v1114_v18 = vpop.permute.xlu1 %1113  ;;  %v250_v13 = vadd.f32 %v1965_v9, %v238_v12 }
 0x275   : > { %v1285_v28 = vsel %vm666_vm8, %v1277_v17, %v1114_v18  ;;  %v227_v17 = vld [vmem:[%s1961_s11 + $0x20] sm:$0xff]  ;;  %v229_v18 = vld [vmem:[%s1961_s11 + $0x30] sm:$0xff] }
 0x276   : > { %v1293_v23 = vsel %vm675_vm9, %v1285_v28, %v1146_v22  ;;  %v266_v14 = vmul.f32 0.1, %v250_v13  ;;  %v240_v22 = vmul.f32 %v1956_v6, %v227_v17  ;;  %v242_v28 = vmul.f32 %v1956_v6, %v229_v18 }
 0x277   : > { %v1301_v63 = vsel %vm684_vm10, %v1293_v23, %v1178_v57  ;;  %v1088_v34 = vpop.permute.xlu0 %1087 }
 0x278   : > { %v1240_v24 = vpop.permute.xlu1 %1239  ;;  %v1309_v58 = vsel %vm693_vm11, %v1301_v63, %v1210_v62  ;;  %v252_v25 = vadd.f32 %v1965_v9, %v240_v22  ;;  %v254_v23 = vadd.f32 %v1965_v9, %v242_v28 }
 0x279   : > { %v1316_v27 = vsel %vm702_vm12, %v1308_v61, %v1240_v24  ;;  %v1317_v29 = vsel %vm702_vm12, %v1309_v58, %v1242_v3  ;;  %v223_v3 = vld [vmem:[%s1961_s11] sm:$0xff] }
 0x27a   : > { %1659 = vmatmul.mubr.msk.f32.gmra.mrb[2].mxu1 %vm720_vm13, %v1316_v27  ;;  %v236_v7 = vmul.f32 %v1956_v6, %v223_v3  ;;  %v268_v16 = vmul.f32 0.1, %v252_v25  ;;  %v270_v63 = vmul.f32 0.1, %v254_v23  ;;  %v1748_v6 = vld [vmem:[%s1961_s11 + $0x8] sm:$0xff] }
 0x27b   : > { %1661 = vmatprep.mubr.msk.f32.mxu1 %vm720_vm13, %v1317_v29  ;;  %v1120_v21 = vpop.permute.xlu0 %1119 }
 0x27c   : > { %v1152_v31 = vpop.permute.xlu1 %1151  ;;  %v248_v8 = vadd.f32 %v1965_v9, %v236_v7 }
 0x27f   : > { %v1182_v30 = vpop.permute.xlu0 %1181 }
 0x280   : > { %v1086_v35 = vpop.permute.xlu1 %1085 }
 0x281   : > { %v1279_v45 = vsel %vm657_vm7, %v1271_v4, %v1086_v35 }
 0x283   : > { %v1214_v33 = vpop.permute.xlu0 %1213 }
 0x284   : > { %v1118_v40 = vpop.permute.xlu1 %1117 }
 0x285   : > { %v1287_v50 = vsel %vm666_vm8, %v1279_v45, %v1118_v40  ;;  %v1751_v40 = vld [vmem:[%s1961_s11 + $0x38] sm:$0xff] }
 0x287   : > { %v1024_v36 = vpop.permute.xlu0 %1023 }
 0x288   : > { %v1264_v32 = vsel %vm280_vm0, %v2325_v49, %v1024_v36  ;;  %v1150_v5 = vpop.permute.xlu1 %1149  ;;  %v1286_v49 = vsel %vm666_vm8, %v1278_v41, %v1116_v44  ;;  %v1750_v36 = vld [vmem:[%s1961_s11 + $0x28] sm:$0xff] }
 0x289   : > { %v1295_v53 = vsel %vm675_vm9, %v1287_v50, %v1150_v5  ;;  %v1294_v54 = vsel %vm675_vm9, %v1286_v49, %v1148_v60 }
 0x28a   : > { %v1303_v59 = vsel %vm684_vm10, %v1295_v53, %v1182_v30 }
 0x28b   : > { %v1056_v38 = vpop.permute.xlu0 %1055  ;;  %v1311_v62 = vsel %vm693_vm11, %v1303_v59, %v1214_v33 }
 0x28c   : > { %v1272_v47 = vsel %vm648_vm6, %v1264_v32, %v1056_v38  ;;  %v1248_v56 = vpop.permute.xlu1 %1247  ;;  %vm256_vm6 = vcmp.gt.f32.partialorder %v248_v8, 0.0 }
 0x28d   : > { %v1280_v19 = vsel %vm657_vm7, %v1272_v47, %v1088_v34  ;;  %vm258_vm7 = vcmp.gt.f32.partialorder %v250_v13, 0.0 }
 0x28e   : > { %v1288_v2 = vsel %vm666_vm8, %v1280_v19, %v1120_v21  ;;  %v274_v15 = vsel %vm258_vm7, %v250_v13, %v266_v14  ;;  %vm260_vm8 = vcmp.gt.f32.partialorder %v252_v25, 0.0  ;;  %v1749_v21 = vld [vmem:[%s1961_s11 + $0x18] sm:$0xff]  ;;  %s1752_s11 = scalar_lea.vmem %s2459_s25, 1024 }
 0x28f   : > { %v1180_v46 = vpop.permute.xlu0 %1179  ;;  %v1296_v20 = vsel %vm675_vm9, %v1288_v2, %v1152_v31  ;;  %305 = vst.msk [vmem:[#allocation2 + $0x31] sm:$0xff] %vm280_vm0, %v274_v15  ;;  %vm262_vm9 = vcmp.gt.f32.partialorder %v254_v23, 0.0  ;;  %v276_v61 = vsel %vm260_vm8, %v252_v25, %v268_v16  ;;  %p1753_p11 = scmp.ne.s32.totalorder %s2459_s25, %s1752_s11  ;;  %p1760_p1 = scmp.lt.s32.totalorder %s1758_s26, %s1752_s11 }
 0x290   : > { %v1302_v26 = vsel %vm684_vm10, %v1294_v54, %v1180_v46  ;;  %v1304_v51 = vsel %vm684_vm10, %v1296_v20, %v2323_v48  ;;  %v278_v24 = vsel %vm262_vm9, %v254_v23, %v270_v63  ;;  %307 = vst.msk [vmem:[#allocation2 + $0x51] sm:$0xff] %vm280_vm0, %v276_v61 }
 0x291   : > { %v1312_v60 = vsel %vm693_vm11, %v1304_v51, %v2332_v52  ;;  %v264_v52 = vmul.f32 0.1, %v248_v8  ;;  %309 = vst.msk [vmem:[#allocation2 + $0x71] sm:$0xff] %vm280_vm0, %v278_v24  ;;  %p1754_p12 = pnand %p1753_p11, %p1895_p5  ;;  %p1761_p2 = por %p1760_p1, %p1759_p0 }
 0x292   : > { %v1320_v48 = vsel %vm702_vm12, %v1312_v60, %v1248_v56 }
 0x293   : > { %v1212_v43 = vpop.permute.xlu0 %1211  ;;  %v272_v10 = vsel %vm256_vm6, %v248_v8, %v264_v52  ;;  %p1755_p13 = pneg %p1754_p12 }
 0x294   : > { %v1310_v55 = vsel %vm693_vm11, %v1302_v26, %v1212_v43  ;;  %303 = vst.msk [vmem:[#allocation2 + $0x11] sm:$0xff] %vm280_vm0, %v272_v10 }
 0x295   : > { %p1762_p3 = pnand %p1761_p2, %p1755_p13 }
 0x297   : > { %v1244_v44 = vpop.permute.xlu0 %1243 }
 0x298   : > { %v1318_v57 = vsel %vm702_vm12, %v1310_v55, %v1244_v44 }
 0x299   : > { %1662 = vmatmul.mubr.msk.f32.gmra.mrb[4].mxu1 %vm720_vm13, %v1318_v57 }
 0x29b   : > { %v1246_v0 = vpop.permute.xlu0 %1245 }
 0x29c   : > { %v1319_v1 = vsel %vm702_vm12, %v1311_v62, %v1246_v0 }
 0x29d   : > { %1664 = vmatprep.mubr.msk.f32.mxu1 %vm720_vm13, %v1319_v1 }
 0x29e   : > { %1665 = vmatmul.mubr.msk.f32.gmra.mrb[6].mxu1 %vm720_vm13, %v1320_v48 }
 0x32d   : > { %v1657_v34 = vpop.f32.mrb[0].mxu1 }
 0x32e   : > { %v1426_v58 = vadd.f32 %v1748_v6, %v1657_v34  ;;  %v1420_v27 = vpop.f32.mrb[1].mxu1 }
 0x32f   : > { %v1421_v9 = vadd.f32 %v1420_v27, %v223_v3 }
 0x330   : > { %1460 = vst.msk [vmem:[%s217_s15 + $0x8] sm:$0xff] %vm280_vm0, %v1426_v58 }
 0x331   : > { %1459 = vst.msk [vmem:[%s217_s15] sm:$0xff] %vm280_vm0, %v1421_v9 }
 0x34d   : > { %v1660_v29 = vpop.f32.mrb[2].mxu1 }
 0x34e   : > { %v1436_v30 = vadd.f32 %v1749_v21, %v1660_v29  ;;  %v1430_v31 = vpop.f32.mrb[3].mxu1 }
 0x34f   : > { %v1431_v33 = vadd.f32 %v1430_v31, %v225_v11 }
 0x350   : > { %1462 = vst.msk [vmem:[%s217_s15 + $0x18] sm:$0xff] %vm280_vm0, %v1436_v30 }
 0x351   : > { %1461 = vst.msk [vmem:[%s217_s15 + $0x10] sm:$0xff] %vm280_vm0, %v1431_v33 }
 0x36c   : > { %v1663_v35 = vpop.f32.mrb[4].mxu1 }
 0x36d   : > { %v1446_v37 = vadd.f32 %v1750_v36, %v1663_v35  ;;  %v1440_v32 = vpop.f32.mrb[5].mxu1 }
 0x36e   : > { %v1441_v38 = vadd.f32 %v1440_v32, %v227_v17 }
 0x36f   : > { %1464 = vst.msk [vmem:[%s217_s15 + $0x28] sm:$0xff] %vm280_vm0, %v1446_v37 }
 0x370   : > { %1463 = vst.msk [vmem:[%s217_s15 + $0x20] sm:$0xff] %vm280_vm0, %v1441_v38 }
 0x371   : > { %v1666_v39 = vpop.f32.mrb[6].mxu1 }
 0x372   : > { %v1456_v47 = vadd.f32 %v1751_v40, %v1666_v39  ;;  %v1450_v19 = vpop.f32.mrb[7].mxu1 }
 0x373   : > { %v1451_v41 = vadd.f32 %v1450_v19, %v229_v18 }
 0x374   : > { %1466 = vst.msk [vmem:[%s217_s15 + $0x38] sm:$0xff] %vm280_vm0, %v1456_v47 }
 0x375   : > { %1465 = vst.msk [vmem:[%s217_s15 + $0x30] sm:$0xff] %vm280_vm0, %v1451_v41 }
 0x376   : > { %1765 = shalt.err (!%p1762_p3)
}
 0x377   : > { %s1766_s30 = scalar_lea.hbm %s2457_s17, 1024  ;;  %s1770_s13 = scalar_lea.hbm %s2512_s5, 2048 }
 0x378   : > { %p1767_p4 = scmp.ne.s32.totalorder %s2457_s17, %s1766_s30  ;;  %p1771_p9 = scmp.lt.u32.totalorder %s2457_s17, %s2512_s5 }
 0x379   : > { %p1772_p10 = scmp.lt.u32.totalorder %s1770_s13, %s1766_s30  ;;  %p1774_p12 = scmp.lt.u32.totalorder %s1766_s30, %s2457_s17 }
 0x37a   : > { %p1768_p7 = pnand %p1767_p4, %p1895_p5 }
 0x37b   : > { %p1773_p11 = por %p1772_p10, %p1771_p9 }
 0x37c   : > { %p1769_p8 = pneg %p1768_p7 }
 0x37d   : > { %p1775_p13 = por %p1774_p12, %p1773_p11 }
 0x37f   : > { %p1776_p0 = pnand %p1775_p13, %p1769_p8 }
 0x381   : > { %1779 = shalt.err (!%p1776_p0)
}
 0x382   : > { %s1826_s16 = smov 128  }
 0x383   : > { %1699 = dma.vmem_to_hbm [thread:$0]  (%p1895_p5), %s2459_s25, 1024, %s2457_s17, %s2465_s22, %s1826_s16, %s1826_s16, %s1817_s12  }
 0x384 PF: > { %p1705_p1 = scmp.ge.s32.totalorder %s1814_s21, 2  ;;  %s1496_s10 = sand.u32 1, %s1802_s18  }
 0x385   : > { %s1497_s8 = scalar_lea.sflag [#allocation5], %s1496_s10 }
 0x386   : > { %p1702_p2 = pnand %p1705_p1, %p1899_p6 }
 0x388   : > { %1797 = dma.done.wait (!%p1702_p2), %s1497_s8, 1024  }
 0x389   : > { %1799 = vsyncadd (!%p1702_p2), %s1497_s8, 4294966272  ;;  %p15_p3 = scmp.ge.s32.totalorder %s1882_s24, 4   ;;  %s2518_s18 = smov %s1806_s19 }
 0x38a   : > { %s2519_s19 = smov %s1810_s20  ;;  %s2520_s20 = smov %s1893_s27 }
 0x38b   : > { %s2521_s21 = smov %s1882_s24  ;;  %17 = sbr.rel (!%p15_p3) target bundleno = 3 (0x3), region = 79 }
 0x392   :  { %1502 = vsyncpa [#allocation5], 1 }
 0x393   :  { %1504 = vsyncpa [#allocation5 + $0x1], 1 }

// kernel: _lambda_.2
= control target key start
LH: loop header
LB: loop body
LE: loop exit
PB: predicated region body
PF: predicated region fallthrough
CT: control target
= control target key end

     0   :  { %s4104_s21 = smov 0   ;;  %s6041_s0 = inlined_call_operand.vmem [shape: f32[2,16,16,4], index: 0, kind: input, shape index: {}]   ;;  %s6042_s1 = inlined_call_operand.vmem [shape: f32[2,4], index: 1, kind: input, shape index: {}]   ;;  %s6043_s2 = inlined_call_operand.vmem [shape: f32[36,8], index: 2, kind: input, shape index: {}]   ;;  %s6044_s3 = inlined_call_operand.vmem [shape: f32[2,8], index: 3, kind: input, shape index: {}]   ;;  %s6045_s4 = inlined_call_operand.vmem [shape: f32[72,8], index: 4, kind: input, shape index: {}]   ;;  %s6046_s5 = inlined_call_operand.vmem [shape: f32[4,8], index: 5, kind: input, shape index: {}]   ;;  %s6047_s6 = inlined_call_operand.vmem [shape: f32[2,8,8,8], index: 6, kind: output, shape index: {}]  }
   0x1 LB: > { %s3531_s22 = sadd.s32 4294967295, %s4053_s21   ;;  %p3535_p0 = scmp.ge.s32.totalorder %s4053_s21, 1  ;;  %s4053_s21 = sphi %s4104_s21, %s16_s21  }
   0x2   : > { %p212_p1 = scmp.lt.s32.totalorder %s4053_s21, 3 }
   0x4   : > { %p213_p2 = pnand %p3535_p0, %p212_p1 }
   0x6   : > { %216 = sbr.rel (%p213_p2) target bundleno = 1572 (0x624), region = 44 }
   0xd   : > { %vm6072_vm0 = vcmask 31744   ;;  %vm456_vm1 = vcmask 25600   ;;  %v6052_v0 = vlaneseq  ;;  %v6050_v1 = vmov 0.0   ;;  %p242_p3 = scmp.lt.s32.totalorder %s3531_s22, 1  ;;  %v284_v3 = vld [vmem:[%s6042_s1] sm:$0x3] }
   0xe   : > { %454 = vst.msk [vmem:[#allocation2] sm:$0xff] %vm6072_vm0, %v6050_v1  ;;  %455 = vst.msk [vmem:[#allocation2 + $0x8] sm:$0xff] %vm6072_vm0, %v6050_v1  ;;  %vm6074_vm2 = vcmask 64512   ;;  %s4056_s29 = smov 8   ;;  %s4057_s30 = smov 4   ;;  %vm6073_vm15 = vcmask 1043456  }
   0xf   : > { %458 = vst.msk [vmem:[#allocation2 + $0x18] sm:$0xff] %vm6072_vm0, %v6050_v1  ;;  %459 = vst.msk [vmem:[#allocation2 + $0x20] sm:$0xff] %vm6072_vm0, %v6050_v1  ;;  %v4223_v2 = vshrl.u32 %v6052_v0, 7  ;;  %s6175_s22 = smov (!%p242_p3, %s3531_s22), 1  ;;  %s4058_s7 = smov 12  }
  0x10   : > { %461 = vst.msk [vmem:[#allocation2 + $0x30] sm:$0xff] %vm6072_vm0, %v6050_v1  ;;  %462 = vst.msk [vmem:[#allocation2 + $0x38] sm:$0xff] %vm6072_vm0, %v6050_v1  ;;  %s3640_s25 = sshll.u32 %s6175_s22, 8  ;;  %s4059_s8 = smov 16  }
  0x11   : > { %464 = vst.msk [vmem:[#allocation2 + $0x48] sm:$0xff] %vm6072_vm0, %v6050_v1  ;;  %465 = vst.msk [vmem:[#allocation2 + $0x50] sm:$0xff] %vm6072_vm0, %v6050_v1  ;;  %v6049_v4 = vsub.s32 0, %v4223_v2  ;;  %v6048_v5 = vsub.s32 1, %v4223_v2  ;;  %s4258_s28 = scalar_lea.vmem %s6041_s0, %s3640_s25  ;;  %s4060_s9 = smov 20  }
  0x12   : > { %467 = vst.msk [vmem:[#allocation2 + $0x60] sm:$0xff] %vm6072_vm0, %v6050_v1  ;;  %468 = vst.msk [vmem:[#allocation2 + $0x68] sm:$0xff] %vm6072_vm0, %v6050_v1  ;;  %v252_v8 = vld [vmem:[%s4258_s28] sm:$0xff]  ;;  %v253_v9 = vld [vmem:[%s4258_s28 + $0x8] sm:$0xff]  ;;  %s4061_s14 = smov 24   ;;  %s4062_s19 = smov 28  }
  0x13   : > { %470 = vst.msk [vmem:[#allocation2 + $0x78] sm:$0xff] %vm6072_vm0, %v6050_v1  ;;  %471 = vst.msk [vmem:[#allocation2 + $0x80] sm:$0xff] %vm6072_vm0, %v6050_v1  ;;  %v4262_v6 = vrot.slane %v284_v3, %v6049_v4  ;;  %v4266_v7 = vrot.slane %v284_v3, %v6048_v5  ;;  %v254_v10 = vld [vmem:[%s4258_s28 + $0x10] sm:$0xff]  ;;  %v255_v18 = vld [vmem:[%s4258_s28 + $0x18] sm:$0xff]  ;;  %s4063_s24 = smov 32   ;;  %s4065_s25 = smov 56  }
  0x14   : > { %473 = vst.msk [vmem:[#allocation2 + $0x90] sm:$0xff] %vm6072_vm0, %v6050_v1  ;;  %474 = vst.msk [vmem:[#allocation2 + $0x98] sm:$0xff] %vm6072_vm0, %v6050_v1  ;;  %v256_v19 = vld [vmem:[%s4258_s28 + $0x20] sm:$0xff]  ;;  %v257_v24 = vld [vmem:[%s4258_s28 + $0x28] sm:$0xff]  ;;  %s4066_s26 = smov 64   ;;  %s4067_s27 = smov 48  }
  0x15   : > { %476 = vst.msk [vmem:[#allocation2 + $0xa8] sm:$0xff] %vm6072_vm0, %v6050_v1  ;;  %477 = vst.msk [vmem:[#allocation2 + $0xb0] sm:$0xff] %vm6072_vm0, %v6050_v1  ;;  %v606_v11 = vld [vmem:[#allocation2 + $0x2] sm:$0xff]  ;;  %v289_v14 = vmul.f32 %v4262_v6, %v252_v8  ;;  %v290_v15 = vmul.f32 %v4262_v6, %v253_v9  ;;  %v291_v16 = vmul.f32 %v4262_v6, %v254_v10  ;;  %v258_v25 = vld [vmem:[%s4258_s28 + $0x30] sm:$0xff]  ;;  %s4068_s15 = smov 40  }
  0x16   : > { %479 = vst.msk [vmem:[#allocation2 + $0xc0] sm:$0xff] %vm6072_vm0, %v6050_v1  ;;  %480 = vst.msk [vmem:[#allocation2 + $0xc8] sm:$0xff] %vm6072_vm0, %v6050_v1  ;;  %v574_v12 = vld [vmem:[#allocation2 + $0x1] sm:$0xff]  ;;  %991 = vrot.lane.b32.xlu1 %v606_v11, %s4056_s29  ;;  %v292_v23 = vmul.f32 %v4262_v6, %v255_v18  ;;  %v259_v26 = vld [vmem:[%s4258_s28 + $0x38] sm:$0xff]  ;;  %v293_v27 = vmul.f32 %v4262_v6, %v256_v19  ;;  %v294_v28 = vmul.f32 %v4262_v6, %v257_v24 }
  0x17   : > { %482 = vst.msk [vmem:[#allocation2 + $0xd8] sm:$0xff] %vm6072_vm0, %v6050_v1  ;;  %483 = vst.msk [vmem:[#allocation2 + $0xe0] sm:$0xff] %vm6072_vm0, %v6050_v1  ;;  %863 = vrot.lane.b32.xlu0 %v574_v12, %s4057_s30  ;;  %v325_v20 = vadd.f32 %v4266_v7, %v289_v14  ;;  %v326_v21 = vadd.f32 %v4266_v7, %v290_v15  ;;  %v327_v22 = vadd.f32 %v4266_v7, %v291_v16  ;;  %v260_v40 = vld [vmem:[%s4258_s28 + $0x40] sm:$0xff]  ;;  %v261_v43 = vld [vmem:[%s4258_s28 + $0x48] sm:$0xff] }
  0x18   : > { %485 = vst.msk [vmem:[#allocation2 + $0xf0] sm:$0xff] %vm6072_vm0, %v6050_v1  ;;  %486 = vst.msk [vmem:[#allocation2 + $0xf8] sm:$0xff] %vm6072_vm0, %v6050_v1  ;;  %v295_v29 = vmul.f32 %v4262_v6, %v258_v25  ;;  %v296_v30 = vmul.f32 %v4262_v6, %v259_v26  ;;  %v328_v34 = vadd.f32 %v4266_v7, %v292_v23  ;;  %v262_v8 = vld [vmem:[%s4258_s28 + $0x50] sm:$0xff]  ;;  %v263_v15 = vld [vmem:[%s4258_s28 + $0x58] sm:$0xff] }
  0x19   : > { %488 = vst.msk [vmem:[#allocation2 + $0x108] sm:$0xff] %vm6072_vm0, %v6050_v1  ;;  %489 = vst.msk [vmem:[#allocation2 + $0x110] sm:$0xff] %vm6072_vm0, %v6050_v1  ;;  %vm357_vm3 = vcmp.gt.f32.partialorder %v325_v20, 0.0  ;;  %vm358_vm4 = vcmp.gt.f32.partialorder %v326_v21, 0.0  ;;  %v389_v31 = vmul.f32 0.1, %v325_v20  ;;  %v329_v35 = vadd.f32 %v4266_v7, %v293_v27 }
  0x1a   : > { %491 = vst.msk [vmem:[#allocation2 + $0x120] sm:$0xff] %vm6072_vm0, %v6050_v1  ;;  %492 = vst.msk [vmem:[#allocation2 + $0x128] sm:$0xff] %vm6072_vm0, %v6050_v1  ;;  %v390_v32 = vmul.f32 0.1, %v326_v21  ;;  %vm359_vm5 = vcmp.gt.f32.partialorder %v327_v22, 0.0  ;;  %v330_v38 = vadd.f32 %v4266_v7, %v294_v28  ;;  %v331_v39 = vadd.f32 %v4266_v7, %v295_v29  ;;  %v2120_v25 = vld [vmem:[%s6043_s2 + $0x10] sm:$0xff] }
  0x1b   : > { %494 = vst.msk [vmem:[#allocation2 + $0x138] sm:$0xff] %vm6072_vm0, %v6050_v1  ;;  %495 = vst.msk [vmem:[#allocation2 + $0x140] sm:$0xff] %vm6072_vm0, %v6050_v1  ;;  %v391_v33 = vmul.f32 0.1, %v327_v22  ;;  %v4293_v36 = vsel %vm357_vm3, %v325_v20, %v389_v31  ;;  %vm360_vm6 = vcmp.gt.f32.partialorder %v328_v34, 0.0  ;;  %vm361_vm7 = vcmp.gt.f32.partialorder %v329_v35, 0.0 }
  0x1c   : > { %497 = vst.msk [vmem:[#allocation2 + $0x150] sm:$0xff] %vm6072_vm0, %v6050_v1  ;;  %498 = vst.msk [vmem:[#allocation2 + $0x158] sm:$0xff] %vm6072_vm0, %v6050_v1  ;;  %v4295_v37 = vsel %vm358_vm4, %v326_v21, %v390_v32  ;;  %v392_v42 = vmul.f32 0.1, %v328_v34  ;;  %v393_v44 = vmul.f32 0.1, %v329_v35  ;;  %v332_v48 = vadd.f32 %v4266_v7, %v296_v30 }
  0x1d   : > { %500 = vst.msk [vmem:[#allocation2 + $0x168] sm:$0xff] %vm6072_vm0, %v6050_v1  ;;  %501 = vst.msk [vmem:[#allocation2 + $0x170] sm:$0xff] %vm6072_vm0, %v6050_v1  ;;  %v4304_v41 = vsel %vm359_vm5, %v327_v22, %v391_v33  ;;  %vm362_vm8 = vcmp.gt.f32.partialorder %v330_v38, 0.0  ;;  %v394_v45 = vmul.f32 0.1, %v330_v38  ;;  %vm363_vm9 = vcmp.gt.f32.partialorder %v331_v39, 0.0 }
  0x1e   : > { %503 = vst.msk [vmem:[#allocation2 + $0x180] sm:$0xff] %vm6072_vm0, %v6050_v1  ;;  %504 = vst.msk [vmem:[#allocation2 + $0x188] sm:$0xff] %vm6072_vm0, %v6050_v1  ;;  %v4309_v46 = vsel %vm360_vm6, %v328_v34, %v392_v42  ;;  %v395_v47 = vmul.f32 0.1, %v331_v39  ;;  %v297_v49 = vmul.f32 %v4262_v6, %v260_v40  ;;  %v4315_v50 = vsel %vm361_vm7, %v329_v35, %v393_v44  ;;  %v2118_v20 = vld [vmem:[%s6043_s2] sm:$0xff]  ;;  %v2119_v21 = vld [vmem:[%s6043_s2 + $0x8] sm:$0xff] }
  0x1f   : > { %506 = vst.msk [vmem:[#allocation2 + $0x198] sm:$0xff] %vm6072_vm0, %v6050_v1  ;;  %507 = vst.msk [vmem:[#allocation2 + $0x1a0] sm:$0xff] %vm6072_vm0, %v6050_v1  ;;  %v4317_v51 = vsel %vm362_vm8, %v330_v38, %v394_v45  ;;  %v298_v52 = vmul.f32 %v4262_v6, %v261_v43  ;;  %vm364_vm10 = vcmp.gt.f32.partialorder %v332_v48, 0.0  ;;  %v396_v54 = vmul.f32 0.1, %v332_v48  ;;  %v2121_v26 = vld [vmem:[%s6043_s2 + $0x18] sm:$0xff] }
  0x20   : > { %457 = vst.msk [vmem:[#allocation2 + $0x10] sm:$0x3] %vm456_vm1, %v6050_v1  ;;  %460 = vst.msk [vmem:[#allocation2 + $0x28] sm:$0x3] %vm456_vm1, %v6050_v1  ;;  %v4324_v53 = vsel %vm363_vm9, %v331_v39, %v395_v47  ;;  %v333_v55 = vadd.f32 %v4266_v7, %v297_v49  ;;  %v299_v9 = vmul.f32 %v4262_v6, %v262_v8  ;;  %v2122_v30 = vld [vmem:[%s6043_s2 + $0x20] sm:$0xf] }
  0x21   : > { %463 = vst.msk [vmem:[#allocation2 + $0x40] sm:$0x3] %vm456_vm1, %v6050_v1  ;;  %466 = vst.msk [vmem:[#allocation2 + $0x58] sm:$0x3] %vm456_vm1, %v6050_v1  ;;  %v334_v56 = vadd.f32 %v4266_v7, %v298_v52  ;;  %v4330_v57 = vsel %vm364_vm10, %v332_v48, %v396_v54  ;;  %v300_v16 = vmul.f32 %v4262_v6, %v263_v15  ;;  %v264_v33 = vld [vmem:[%s4258_s28 + $0x60] sm:$0xff]  ;;  %v265_v42 = vld [vmem:[%s4258_s28 + $0x68] sm:$0xff] }
  0x22   : > { %469 = vst.msk [vmem:[#allocation2 + $0x70] sm:$0x3] %vm456_vm1, %v6050_v1  ;;  %472 = vst.msk [vmem:[#allocation2 + $0x88] sm:$0x3] %vm456_vm1, %v6050_v1  ;;  %vm365_vm11 = vcmp.gt.f32.partialorder %v333_v55, 0.0  ;;  %v335_v10 = vadd.f32 %v4266_v7, %v299_v9  ;;  %v3919_v23 = vpack.c.bf16 %v2119_v21, %v2118_v20  ;;  %v3923_v29 = vpack.c.bf16 %v2121_v26, %v2120_v25  ;;  %v543_v4 = vld [vmem:[#allocation2 + $0x8] sm:$0xff] }
  0x23   : > { %475 = vst.msk [vmem:[#allocation2 + $0xa0] sm:$0x3] %vm456_vm1, %v6050_v1  ;;  %478 = vst.msk [vmem:[#allocation2 + $0xb8] sm:$0x3] %vm456_vm1, %v6050_v1  ;;  %v397_v58 = vmul.f32 0.1, %v333_v55  ;;  %v336_v19 = vadd.f32 %v4266_v7, %v300_v16  ;;  %v301_v34 = vmul.f32 %v4262_v6, %v264_v33  ;;  %v302_v43 = vmul.f32 %v4262_v6, %v265_v42 }
  0x24   : > { %481 = vst.msk [vmem:[#allocation2 + $0xd0] sm:$0x3] %vm456_vm1, %v6050_v1  ;;  %484 = vst.msk [vmem:[#allocation2 + $0xe8] sm:$0x3] %vm456_vm1, %v6050_v1  ;;  %vm366_vm12 = vcmp.gt.f32.partialorder %v334_v56, 0.0  ;;  %vm367_vm13 = vcmp.gt.f32.partialorder %v335_v10, 0.0  ;;  %3920 = vmatprep.subr.bf16.mxu0 %v3919_v23 }
  0x25   : > { %487 = vst.msk [vmem:[#allocation2 + $0x100] sm:$0x3] %vm456_vm1, %v6050_v1  ;;  %490 = vst.msk [vmem:[#allocation2 + $0x118] sm:$0x3] %vm456_vm1, %v6050_v1  ;;  %v398_v61 = vmul.f32 0.1, %v334_v56  ;;  %v4342_v62 = vsel %vm365_vm11, %v333_v55, %v397_v58  ;;  %3922 = vmatpush3.bf16.msra.mxu0 %v3919_v23  ;;  %v337_v35 = vadd.f32 %v4266_v7, %v301_v34 }
  0x26   : > { %493 = vst.msk [vmem:[#allocation2 + $0x130] sm:$0x3] %vm456_vm1, %v6050_v1  ;;  %496 = vst.msk [vmem:[#allocation2 + $0x148] sm:$0x3] %vm456_vm1, %v6050_v1  ;;  %vm368_vm14 = vcmp.gt.f32.partialorder %v336_v19, 0.0  ;;  %3924 = vmatprep.subr.bf16.mxu0 %v3923_v29  ;;  %v338_v44 = vadd.f32 %v4266_v7, %v302_v43  ;;  %vm1920_vm9 = vcmask 97280  }
  0x27   : > { %499 = vst.msk [vmem:[#allocation2 + $0x160] sm:$0x3] %vm456_vm1, %v6050_v1  ;;  %502 = vst.msk [vmem:[#allocation2 + $0x178] sm:$0x3] %vm456_vm1, %v6050_v1  ;;  %v607_v13 = vld [vmem:[#allocation2 + $0xa] sm:$0xff]  ;;  %v4346_v3 = vsel %vm366_vm12, %v334_v56, %v398_v61  ;;  %vm6071_vm10 = vcmask 130048  }
  0x28   : > { %505 = vst.msk [vmem:[#allocation2 + $0x190] sm:$0x3] %vm456_vm1, %v6050_v1  ;;  %508 = vst.msk [vmem:[#allocation2 + $0x1a8] sm:$0x3] %vm456_vm1, %v6050_v1  ;;  %v575_v17 = vld [vmem:[#allocation2 + $0x9] sm:$0xff]  ;;  %993 = vrot.lane.b32.xlu1 %v607_v13, %s4056_s29  ;;  %vm369_vm1 = vcmp.gt.f32.partialorder %v337_v35, 0.0 }
  0x29   : > { %2769 = vst.msk [vmem:[#allocation3] sm:$0xff] %vm6074_vm2, %v6050_v1  ;;  %2772 = vst.msk [vmem:[#allocation3 + $0x10] sm:$0xff] %vm6074_vm2, %v6050_v1  ;;  %865 = vrot.lane.b32.xlu0 %v575_v17, %s4057_s30  ;;  %v399_v13 = vmul.f32 0.1, %v335_v10  ;;  %v400_v22 = vmul.f32 0.1, %v336_v19  ;;  %3926 = vmatpush3.bf16.msra.mxu0 %v3923_v29 }
  0x2a   : > { %2774 = vst.msk [vmem:[#allocation3 + $0x20] sm:$0xff] %vm6074_vm2, %v6050_v1  ;;  %2776 = vst.msk [vmem:[#allocation3 + $0x30] sm:$0xff] %vm6074_vm2, %v6050_v1  ;;  %3825 = vmatprep.subr.msk.mxu0 %vm6073_vm15, %v2122_v30  ;;  %v401_v39 = vmul.f32 0.1, %v337_v35  ;;  %v402_v47 = vmul.f32 0.1, %v338_v44 }
  0x2b   : > { %2778 = vst.msk [vmem:[#allocation3 + $0x40] sm:$0xff] %vm6074_vm2, %v6050_v1  ;;  %2780 = vst.msk [vmem:[#allocation3 + $0x50] sm:$0xff] %vm6074_vm2, %v6050_v1  ;;  %v4357_v14 = vsel %vm367_vm13, %v335_v10, %v399_v13  ;;  %v4377_v24 = vsel %vm368_vm14, %v336_v19, %v400_v22  ;;  %vm370_vm3 = vcmp.gt.f32.partialorder %v338_v44, 0.0  ;;  %v266_v56 = vld [vmem:[%s4258_s28 + $0x70] sm:$0xff]  ;;  %v267_v10 = vld [vmem:[%s4258_s28 + $0x78] sm:$0xff]  ;;  %vm1986_vm11 = vcmask 162816  }
  0x2c   : > { %2782 = vst.msk [vmem:[#allocation3 + $0x60] sm:$0xff] %vm6074_vm2, %v6050_v1  ;;  %2784 = vst.msk [vmem:[#allocation3 + $0x70] sm:$0xff] %vm6074_vm2, %v6050_v1  ;;  %v4412_v40 = vsel %vm369_vm1, %v337_v35, %v401_v39  ;;  %v4426_v48 = vsel %vm370_vm3, %v338_v44, %v402_v47  ;;  %v303_v58 = vmul.f32 %v4262_v6, %v266_v56  ;;  %v268_v22 = vld [vmem:[%s4258_s28 + $0x80] sm:$0xff]  ;;  %vm6070_vm12 = vcmask 195584  }
  0x2d   : > { %2786 = vst.msk [vmem:[#allocation3 + $0x80] sm:$0xff] %vm6074_vm2, %v6050_v1  ;;  %2788 = vst.msk [vmem:[#allocation3 + $0x90] sm:$0xff] %vm6074_vm2, %v6050_v1  ;;  %3826 = vmatpush3.msk.msra.mxu0 %vm6073_vm15, %v2122_v30  ;;  %v305_v23 = vmul.f32 %v4262_v6, %v268_v22  ;;  %vm2052_vm13 = vcmask 228352   ;;  %vm6069_vm1 = vcmask 261120   ;;  %vm2123_vm3 = vcmask 293888  }
  0x2e   : > { %510 = vst.msk [vmem:[#allocation2 + $0x19] sm:$0xff] %vm6072_vm0, %v4293_v36  ;;  %511 = vst.msk [vmem:[#allocation2 + $0x21] sm:$0xff] %vm6072_vm0, %v4295_v37  ;;  %v339_v61 = vadd.f32 %v4266_v7, %v303_v58 }
  0x2f   : > { %512 = vst.msk [vmem:[#allocation2 + $0x31] sm:$0xff] %vm6072_vm0, %v4304_v41  ;;  %513 = vst.msk [vmem:[#allocation2 + $0x39] sm:$0xff] %vm6072_vm0, %v4309_v46  ;;  %v341_v25 = vadd.f32 %v4266_v7, %v305_v23 }
  0x30   : > { %514 = vst.msk [vmem:[#allocation2 + $0x49] sm:$0xff] %vm6072_vm0, %v4315_v50  ;;  %515 = vst.msk [vmem:[#allocation2 + $0x51] sm:$0xff] %vm6072_vm0, %v4317_v51  ;;  %v403_v8 = vmul.f32 0.1, %v339_v61  ;;  %vm371_vm4 = vcmp.gt.f32.partialorder %v339_v61, 0.0 }
  0x31   : > { %516 = vst.msk [vmem:[#allocation2 + $0x61] sm:$0xff] %vm6072_vm0, %v4324_v53  ;;  %517 = vst.msk [vmem:[#allocation2 + $0x69] sm:$0xff] %vm6072_vm0, %v4330_v57  ;;  %v405_v30 = vmul.f32 0.1, %v341_v25  ;;  %vm373_vm6 = vcmp.gt.f32.partialorder %v341_v25, 0.0 }
  0x32   : > { %6075 = vst [vmem:[#allocation4_spill] sm:$0xff] %v4342_v62  ;;  %518 = vst.msk [vmem:[#allocation2 + $0x79] sm:$0xff] %vm6072_vm0, %v4342_v62  ;;  %v4450_v9 = vsel %vm371_vm4, %v339_v61, %v403_v8 }
  0x33   : > { %6076 = vst [vmem:[#allocation5_spill] sm:$0xff] %v4346_v3  ;;  %519 = vst.msk [vmem:[#allocation2 + $0x81] sm:$0xff] %vm6072_vm0, %v4346_v3 }
  0x34   : > { %6077 = vst [vmem:[#allocation6_spill] sm:$0xff] %v4357_v14  ;;  %520 = vst.msk [vmem:[#allocation2 + $0x91] sm:$0xff] %vm6072_vm0, %v4357_v14 }
  0x35   : > { %v4332_v59 = vld [vmem:[#allocation2 + $0x20] sm:$0xff]  ;;  %v4334_v60 = vld [vmem:[#allocation2 + $0x18] sm:$0xff]  ;;  %6078 = vst [vmem:[#allocation7_spill] sm:$0xff] %v4377_v24  ;;  %521 = vst.msk [vmem:[#allocation2 + $0x99] sm:$0xff] %vm6072_vm0, %v4377_v24 }
  0x36   : > { %1121 = vrot.lane.b32.xlu1 %v4332_v59, %s4058_s7  ;;  %1119 = vrot.lane.b32.xlu0 %v4334_v60, %s4058_s7  ;;  %v670_v63 = vld [vmem:[#allocation2 + $0x19] sm:$0xff]  ;;  %v671_v11 = vld [vmem:[#allocation2 + $0x21] sm:$0xff]  ;;  %v4365_v18 = vld [vmem:[#allocation2 + $0x30] sm:$0xff]  ;;  %6079 = vst [vmem:[#allocation8_spill] sm:$0xff] %v4412_v40 }
  0x37   : > { %v702_v12 = vld [vmem:[#allocation2 + $0x1a] sm:$0xff]  ;;  %v703_v17 = vld [vmem:[#allocation2 + $0x22] sm:$0xff]  ;;  %v767_v28 = vld [vmem:[#allocation2 + $0x31] sm:$0xff]  ;;  %522 = vst.msk [vmem:[#allocation2 + $0xa9] sm:$0xff] %vm6072_vm0, %v4412_v40 }
  0x38   : > { %v4390_v27 = vld [vmem:[#allocation2 + $0x38] sm:$0xff]  ;;  %v4421_v45 = vld [vmem:[#allocation2 + $0x48] sm:$0xff]  ;;  %6080 = vst [vmem:[#allocation9_spill] sm:$0xff] %v4426_v48  ;;  %523 = vst.msk [vmem:[#allocation2 + $0xb1] sm:$0xff] %vm6072_vm0, %v4426_v48 }
  0x39   : > { %v768_v31 = vld [vmem:[#allocation2 + $0x39] sm:$0xff]  ;;  %v4433_v49 = vld [vmem:[#allocation2 + $0x50] sm:$0xff]  ;;  %6081 = vst [vmem:[#allocation10_spill] sm:$0xff] %v4450_v9  ;;  %524 = vst.msk [vmem:[#allocation2 + $0xc1] sm:$0xff] %vm6072_vm0, %v4450_v9 }
  0x3a   : > { %1247 = vrot.lane.b32.xlu0 %v670_v63, %s4059_s8  ;;  %867 = vrot.lane.b32.xlu1 %v670_v63, %s4057_s30  ;;  %v799_v32 = vld [vmem:[#allocation2 + $0x32] sm:$0xff]  ;;  %v800_v38 = vld [vmem:[#allocation2 + $0x3a] sm:$0xff]  ;;  %v769_v52 = vld [vmem:[#allocation2 + $0x49] sm:$0xff] }
  0x3b   : > { %v770_v54 = vld [vmem:[#allocation2 + $0x51] sm:$0xff]  ;;  %v4459_v13 = vld [vmem:[#allocation2 + $0x60] sm:$0xff]  ;;  %v772_v20 = vld [vmem:[#allocation2 + $0x69] sm:$0xff] }
  0x3c   : > { %v801_v55 = vld [vmem:[#allocation2 + $0x4a] sm:$0xff]  ;;  %v802_v63 = vld [vmem:[#allocation2 + $0x52] sm:$0xff]  ;;  %v771_v19 = vld [vmem:[#allocation2 + $0x61] sm:$0xff] }
  0x3d   : > { %v803_v21 = vld [vmem:[#allocation2 + $0x62] sm:$0xff]  ;;  %v804_v26 = vld [vmem:[#allocation2 + $0x6a] sm:$0xff]  ;;  %v4503_v39 = vld [vmem:[#allocation2 + $0x78] sm:$0xff] }
  0x3e   : > { %1249 = vrot.lane.b32.xlu0 %v671_v11, %s4059_s8  ;;  %1375 = vrot.lane.b32.xlu1 %v702_v12, %s4060_s9  ;;  %v805_v8 = vld [vmem:[#allocation2 + $0x7a] sm:$0xff]  ;;  %v806_v22 = vld [vmem:[#allocation2 + $0x82] sm:$0xff] }
  0x42   : > { %869 = vrot.lane.b32.xlu0 %v671_v11, %s4057_s30  ;;  %995 = vrot.lane.b32.xlu1 %v702_v12, %s4056_s29  ;;  %v304_v11 = vmul.f32 %v4262_v6, %v267_v10 }
  0x44   : > { %v340_v12 = vadd.f32 %v4266_v7, %v304_v11 }
  0x46   : > { %1377 = vrot.lane.b32.xlu0 %v703_v17, %s4060_s9  ;;  %1503 = vrot.lane.b32.xlu1 %v4365_v18, %s4061_s14  ;;  %v404_v15 = vmul.f32 0.1, %v340_v12  ;;  %vm372_vm5 = vcmp.gt.f32.partialorder %v340_v12, 0.0 }
  0x48   : > { %v4464_v16 = vsel %vm372_vm5, %v340_v12, %v404_v15  ;;  %v270_v12 = vld [vmem:[%s4258_s28 + $0x90] sm:$0xff] }
  0x49   : > { %6082 = vst [vmem:[#allocation11_spill] sm:$0xff] %v4464_v16  ;;  %525 = vst.msk [vmem:[#allocation2 + $0xc9] sm:$0xff] %vm6072_vm0, %v4464_v16 }
  0x4a   : > { %997 = vrot.lane.b32.xlu0 %v703_v17, %s4056_s29  ;;  %1123 = vrot.lane.b32.xlu1 %v4365_v18, %s4058_s7  ;;  %v4471_v17 = vld [vmem:[#allocation2 + $0x68] sm:$0xff] }
  0x4e   : > { %1505 = vrot.lane.b32.xlu0 %v4390_v27, %s4061_s14  ;;  %1631 = vrot.lane.b32.xlu1 %v767_v28, %s4062_s19 }
  0x52   : > { %1125 = vrot.lane.b32.xlu0 %v4390_v27, %s4058_s7  ;;  %1251 = vrot.lane.b32.xlu1 %v767_v28, %s4059_s8 }
  0x56   : > { %1633 = vrot.lane.b32.xlu0 %v768_v31, %s4062_s19  ;;  %1759 = vrot.lane.b32.xlu1 %v799_v32, %s4063_s24 }
  0x5a   : > { %871 = vrot.lane.b32.xlu0 %v767_v28, %s4057_s30  ;;  %1253 = vrot.lane.b32.xlu1 %v768_v31, %s4059_s8 }
  0x5e   : > { %1379 = vrot.lane.b32.xlu0 %v799_v32, %s4060_s9  ;;  %1761 = vrot.lane.b32.xlu1 %v800_v38, %s4063_s24 }
  0x62   : > { %873 = vrot.lane.b32.xlu0 %v768_v31, %s4057_s30  ;;  %999 = vrot.lane.b32.xlu1 %v799_v32, %s4056_s29  ;;  %v4490_v31 = vsel %vm373_vm6, %v341_v25, %v405_v30  ;;  %v269_v32 = vld [vmem:[%s4258_s28 + $0x88] sm:$0xff]  ;;  %v542_v30 = vld [vmem:[#allocation2] sm:$0xff] }
  0x63   : > { %526 = vst.msk [vmem:[#allocation2 + $0xd9] sm:$0xff] %vm6072_vm0, %v4490_v31  ;;  %v306_v33 = vmul.f32 %v4262_v6, %v269_v32 }
  0x66   : > { %1381 = vrot.lane.b32.xlu0 %v800_v38, %s4060_s9  ;;  %1507 = vrot.lane.b32.xlu1 %v4421_v45, %s4061_s14 }
  0x6a   : > { %1001 = vrot.lane.b32.xlu0 %v800_v38, %s4056_s29  ;;  %1127 = vrot.lane.b32.xlu1 %v4421_v45, %s4058_s7  ;;  %v342_v38 = vadd.f32 %v4266_v7, %v306_v33  ;;  %v271_v33 = vld [vmem:[%s4258_s28 + $0x98] sm:$0xff] }
  0x6c   : > { %v406_v42 = vmul.f32 0.1, %v342_v38  ;;  %vm374_vm7 = vcmp.gt.f32.partialorder %v342_v38, 0.0 }
  0x6e   : > { %1509 = vrot.lane.b32.xlu0 %v4433_v49, %s4061_s14  ;;  %1635 = vrot.lane.b32.xlu1 %v769_v52, %s4062_s19  ;;  %v4508_v43 = vsel %vm374_vm7, %v342_v38, %v406_v42 }
  0x6f   : > { %527 = vst.msk [vmem:[#allocation2 + $0xe1] sm:$0xff] %vm6072_vm0, %v4508_v43 }
  0x72   : > { %1129 = vrot.lane.b32.xlu0 %v4433_v49, %s4058_s7  ;;  %1255 = vrot.lane.b32.xlu1 %v769_v52, %s4059_s8 }
  0x76   : > { %1637 = vrot.lane.b32.xlu0 %v770_v54, %s4062_s19  ;;  %1763 = vrot.lane.b32.xlu1 %v801_v55, %s4063_s24 }
  0x7a   : > { %875 = vrot.lane.b32.xlu0 %v769_v52, %s4057_s30  ;;  %1257 = vrot.lane.b32.xlu1 %v770_v54, %s4059_s8  ;;  %v4517_v52 = vld [vmem:[#allocation2 + $0x80] sm:$0xff] }
  0x7e   : > { %1383 = vrot.lane.b32.xlu0 %v801_v55, %s4060_s9  ;;  %1765 = vrot.lane.b32.xlu1 %v802_v63, %s4063_s24 }
  0x82   : > { %877 = vrot.lane.b32.xlu0 %v770_v54, %s4057_s30  ;;  %1003 = vrot.lane.b32.xlu1 %v801_v55, %s4056_s29  ;;  %v773_v54 = vld [vmem:[#allocation2 + $0x79] sm:$0xff] }
  0x86   : > { %1385 = vrot.lane.b32.xlu0 %v802_v63, %s4060_s9  ;;  %1511 = vrot.lane.b32.xlu1 %v4459_v13, %s4061_s14 }
  0x88   : > { %v4486_v28 = vpop.permute.xlu1 %991 }
  0x89   : > { %v864_v29 = vpop.permute.xlu0 %863 }
  0x8a   : > { %1005 = vrot.lane.b32.xlu0 %v802_v63, %s4056_s29  ;;  %1131 = vrot.lane.b32.xlu1 %v4459_v13, %s4058_s7  ;;  %v774_v63 = vld [vmem:[#allocation2 + $0x81] sm:$0xff]  ;;  %v1855_v38 = vsel %vm6072_vm0, %v542_v30, %v864_v29 }
  0x8e   : > { %1513 = vrot.lane.b32.xlu0 %v4471_v17, %s4061_s14  ;;  %1639 = vrot.lane.b32.xlu1 %v771_v19, %s4062_s19 }
  0x92   : > { %1133 = vrot.lane.b32.xlu0 %v4471_v17, %s4058_s7  ;;  %1259 = vrot.lane.b32.xlu1 %v771_v19, %s4059_s8 }
  0x96   : > { %1641 = vrot.lane.b32.xlu0 %v772_v20, %s4062_s19  ;;  %1767 = vrot.lane.b32.xlu1 %v803_v21, %s4063_s24 }
  0x9a   : > { %879 = vrot.lane.b32.xlu0 %v771_v19, %s4057_s30  ;;  %1261 = vrot.lane.b32.xlu1 %v772_v20, %s4059_s8  ;;  %v4498_v34 = vpop.permute.xlu1 %993 }
  0x9b   : > { %v4500_v35 = vpop.permute.xlu0 %865 }
  0x9e   : > { %1387 = vrot.lane.b32.xlu0 %v803_v21, %s4060_s9  ;;  %1769 = vrot.lane.b32.xlu1 %v804_v26, %s4063_s24 }
  0xa2   : > { %881 = vrot.lane.b32.xlu0 %v772_v20, %s4057_s30  ;;  %1007 = vrot.lane.b32.xlu1 %v803_v21, %s4056_s29  ;;  %v307_v20 = vmul.f32 %v4262_v6, %v270_v12  ;;  %v308_v12 = vmul.f32 %v4262_v6, %v271_v33 }
  0xa4   : > { %v343_v21 = vadd.f32 %v4266_v7, %v307_v20  ;;  %v344_v20 = vadd.f32 %v4266_v7, %v308_v12 }
  0xa6   : > { %1389 = vrot.lane.b32.xlu0 %v804_v26, %s4060_s9  ;;  %1515 = vrot.lane.b32.xlu1 %v4503_v39, %s4061_s14  ;;  %vm375_vm8 = vcmp.gt.f32.partialorder %v343_v21, 0.0  ;;  %v408_v5 = vmul.f32 0.1, %v344_v20  ;;  %vm376_vm14 = vcmp.gt.f32.partialorder %v344_v20, 0.0 }
  0xa8   : > { %v4512_v44 = vpop.permute.xlu1 %1121  ;;  %v1120_v47 = vpop.permute.xlu0 %1119 }
  0xaa   : > { %1009 = vrot.lane.b32.xlu0 %v804_v26, %s4056_s29  ;;  %1135 = vrot.lane.b32.xlu1 %v4503_v39, %s4058_s7  ;;  %v407_v26 = vmul.f32 0.1, %v343_v21 }
  0xac   : > { %v1248_v55 = vpop.permute.xlu0 %1247  ;;  %v4519_v56 = vpop.permute.xlu1 %867  ;;  %v4546_v32 = vsel %vm375_vm8, %v343_v21, %v407_v26  ;;  %v1888_v21 = vsel %vm6074_vm2, %v1855_v38, %v4486_v28  ;;  %v4558_v26 = vld [vmem:[#allocation2 + $0x90] sm:$0xff]  ;;  %v4570_v28 = vsel %vm376_vm14, %v344_v20, %v408_v5 }
  0xad   : > { %528 = vst.msk [vmem:[#allocation2 + $0xf1] sm:$0xff] %vm6072_vm0, %v4546_v32  ;;  %v1921_v29 = vsel %vm1920_vm9, %v1888_v21, %v1120_v47  ;;  %529 = vst.msk [vmem:[#allocation2 + $0xf9] sm:$0xff] %vm6072_vm0, %v4570_v28 }
  0xae   : > { %1517 = vrot.lane.b32.xlu0 %v4517_v52, %s4061_s14  ;;  %1643 = vrot.lane.b32.xlu1 %v773_v54, %s4062_s19 }
  0xb0   : > { %v4524_v58 = vpop.permute.xlu0 %1249  ;;  %v1376_v61 = vpop.permute.xlu1 %1375 }
  0xb2   : > { %1137 = vrot.lane.b32.xlu0 %v4517_v52, %s4058_s7  ;;  %1263 = vrot.lane.b32.xlu1 %v773_v54, %s4059_s8 }
  0xb4   : > { %v4529_v10 = vpop.permute.xlu0 %869  ;;  %v4531_v11 = vpop.permute.xlu1 %995 }
  0xb6   : > { %1645 = vrot.lane.b32.xlu0 %v774_v63, %s4062_s19  ;;  %1771 = vrot.lane.b32.xlu1 %v805_v8, %s4063_s24 }
  0xb8   : > { %v1378_v15 = vpop.permute.xlu0 %1377  ;;  %v1504_v19 = vpop.permute.xlu1 %1503 }
  0xba   : > { %883 = vrot.lane.b32.xlu0 %v773_v54, %s4057_s30  ;;  %1265 = vrot.lane.b32.xlu1 %v774_v63, %s4059_s8 }
  0xbc   : > { %v4540_v23 = vpop.permute.xlu0 %997  ;;  %v4542_v25 = vpop.permute.xlu1 %1123 }
  0xbe   : > { %1391 = vrot.lane.b32.xlu0 %v805_v8, %s4060_s9  ;;  %1773 = vrot.lane.b32.xlu1 %v806_v22, %s4063_s24 }
  0xc0   : > { %v1506_v42 = vpop.permute.xlu0 %1505  ;;  %v1632_v54 = vpop.permute.xlu1 %1631 }
  0xc2   : > { %885 = vrot.lane.b32.xlu0 %v774_v63, %s4057_s30  ;;  %1011 = vrot.lane.b32.xlu1 %v805_v8, %s4056_s29  ;;  %v1954_v63 = vsel %vm6071_vm10, %v1921_v29, %v1248_v55  ;;  %v1856_v55 = vsel %vm6072_vm0, %v543_v4, %v4500_v35  ;;  %v775_v4 = vld [vmem:[#allocation2 + $0x91] sm:$0xff] }
  0xc3   : > { %v1987_v8 = vsel %vm1986_vm11, %v1954_v63, %v1376_v61  ;;  %v1889_v5 = vsel %vm6074_vm2, %v1856_v55, %v4498_v34 }
  0xc4   : > { %v4561_v30 = vpop.permute.xlu0 %1125  ;;  %v4563_v33 = vpop.permute.xlu1 %1251  ;;  %v2020_v47 = vsel %vm6070_vm12, %v1987_v8, %v1504_v19  ;;  %v4585_v19 = vld [vmem:[#allocation2 + $0x98] sm:$0xff]  ;;  %v1922_v35 = vsel %vm1920_vm9, %v1889_v5, %v4512_v44 }
  0xc5   : > { %v2053_v38 = vsel %vm2052_vm13, %v2020_v47, %v1632_v54 }
  0xc6   : > { %1393 = vrot.lane.b32.xlu0 %v806_v22, %s4060_s9  ;;  %1519 = vrot.lane.b32.xlu1 %v4558_v26, %s4061_s14 }
  0xc8   : > { %v1634_v12 = vpop.permute.xlu0 %1633  ;;  %v1760_v61 = vpop.permute.xlu1 %1759 }
  0xc9   : > { %v2086_v21 = vsel %vm6069_vm1, %v2053_v38, %v1760_v61 }
  0xca   : > { %1013 = vrot.lane.b32.xlu0 %v806_v22, %s4056_s29  ;;  %1139 = vrot.lane.b32.xlu1 %v4558_v26, %s4058_s7  ;;  %v1955_v22 = vsel %vm6071_vm10, %v1922_v35, %v4524_v58  ;;  %v776_v58 = vld [vmem:[#allocation2 + $0x99] sm:$0xff] }
  0xcb   : > { %3827 = vmatprep.mubr.msk.f32.mxu0 %vm2123_vm3, %v2086_v21  ;;  %v1988_v29 = vsel %vm1986_vm11, %v1955_v22, %v1378_v15  ;;  %v807_v15 = vld [vmem:[#allocation2 + $0x92] sm:$0xff]  ;;  %v808_v35 = vld [vmem:[#allocation2 + $0x9a] sm:$0xff] }
  0xcc   : > { %v4589_v54 = vpop.permute.xlu0 %871  ;;  %v4591_v20 = vpop.permute.xlu1 %1253  ;;  %v2021_v34 = vsel %vm6070_vm12, %v1988_v29, %v1506_v42  ;;  %v272_v42 = vld [vmem:[%s4258_s28 + $0xa0] sm:$0xff] }
  0xcd   : > { %v2054_v63 = vsel %vm2052_vm13, %v2021_v34, %v1634_v12  ;;  %v309_v21 = vmul.f32 %v4262_v6, %v272_v42 }
  0xce   : > { %1521 = vrot.lane.b32.xlu0 %v4585_v19, %s4061_s14  ;;  %1647 = vrot.lane.b32.xlu1 %v775_v4, %s4062_s19 }
  0xcf   : > { %v345_v5 = vadd.f32 %v4266_v7, %v309_v21  ;;  %v1857_v21 = vsel %vm6072_vm0, %v4334_v60, %v4519_v56 }
  0xd0   : > { %v1380_v44 = vpop.permute.xlu0 %1379  ;;  %v1762_v8 = vpop.permute.xlu1 %1761 }
  0xd1   : > { %v2087_v47 = vsel %vm6069_vm1, %v2054_v63, %v1762_v8  ;;  %v409_v34 = vmul.f32 0.1, %v345_v5  ;;  %vm377_vm4 = vcmp.gt.f32.partialorder %v345_v5, 0.0 }
  0xd2   : > { %1141 = vrot.lane.b32.xlu0 %v4585_v19, %s4058_s7  ;;  %1267 = vrot.lane.b32.xlu1 %v775_v4, %s4059_s8 }
  0xd3   : > { %3828 = vmatmul.mubr.msk.f32.vlgmr.msra.gmra.mrb[0].mxu0 %vm2123_vm3, %v2087_v47  ;;  %v4623_v63 = vsel %vm377_vm4, %v345_v5, %v409_v34  ;;  %v1890_v5 = vsel %vm6074_vm2, %v1857_v21, %v4531_v11  ;;  %v4637_v34 = vld [vmem:[#allocation2 + $0xa8] sm:$0xff] }
  0xd4   : > { %v4606_v55 = vpop.permute.xlu0 %873  ;;  %v4608_v38 = vpop.permute.xlu1 %999  ;;  %530 = vst.msk [vmem:[#allocation2 + $0x109] sm:$0xff] %vm6072_vm0, %v4623_v63  ;;  %v1923_v0 = vsel %vm1920_vm9, %v1890_v5, %v4542_v25 }
  0xd5   : > { %v1956_v60 = vsel %vm6071_vm10, %v1923_v0, %v4563_v33  ;;  %v1858_v33 = vsel %vm6072_vm0, %v4332_v59, %v4529_v10 }
  0xd6   : > { %1649 = vrot.lane.b32.xlu0 %v776_v58, %s4062_s19  ;;  %1775 = vrot.lane.b32.xlu1 %v807_v15, %s4063_s24  ;;  %v1989_v56 = vsel %vm1986_vm11, %v1956_v60, %v1380_v44  ;;  %v777_v44 = vld [vmem:[#allocation2 + $0xa9] sm:$0xff] }
  0xd8   : > { %v1382_v12 = vpop.permute.xlu0 %1381  ;;  %v1508_v61 = vpop.permute.xlu1 %1507 }
  0xd9   : > { %v2022_v25 = vsel %vm6070_vm12, %v1989_v56, %v1508_v61 }
  0xda   : > { %887 = vrot.lane.b32.xlu0 %v775_v4, %s4057_s30  ;;  %1269 = vrot.lane.b32.xlu1 %v776_v58, %s4059_s8  ;;  %v273_v4 = vld [vmem:[%s4258_s28 + $0xa8] sm:$0xff] }
  0xdb   : > { %v310_v42 = vmul.f32 %v4262_v6, %v273_v4 }
  0xdc   : > { %v4617_v22 = vpop.permute.xlu0 %1001  ;;  %v4619_v29 = vpop.permute.xlu1 %1127 }
  0xdd   : > { %v346_v1 = vadd.f32 %v4266_v7, %v310_v42 }
  0xde   : > { %1395 = vrot.lane.b32.xlu0 %v807_v15, %s4060_s9  ;;  %1777 = vrot.lane.b32.xlu1 %v808_v35, %s4063_s24 }
  0xdf   : > { %v410_v9 = vmul.f32 0.1, %v346_v1  ;;  %vm378_vm5 = vcmp.gt.f32.partialorder %v346_v1, 0.0 }
  0xe0   : > { %v1510_v8 = vpop.permute.xlu0 %1509  ;;  %v1636_v47 = vpop.permute.xlu1 %1635 }
  0xe1   : > { %v4651_v11 = vsel %vm378_vm5, %v346_v1, %v410_v9  ;;  %v1891_v1 = vsel %vm6074_vm2, %v1858_v33, %v4540_v23  ;;  %v4667_v9 = vld [vmem:[#allocation2 + $0xb0] sm:$0xff] }
  0xe2   : > { %889 = vrot.lane.b32.xlu0 %v776_v58, %s4057_s30  ;;  %1015 = vrot.lane.b32.xlu1 %v807_v15, %s4056_s29  ;;  %531 = vst.msk [vmem:[#allocation2 + $0x111] sm:$0xff] %vm6072_vm0, %v4651_v11  ;;  %v2055_v58 = vsel %vm2052_vm13, %v2022_v25, %v1636_v47  ;;  %v1924_v61 = vsel %vm1920_vm9, %v1891_v1, %v4561_v30  ;;  %v810_v33 = vld [vmem:[#allocation2 + $0xb2] sm:$0xff] }
  0xe3   : > { %v1957_v59 = vsel %vm6071_vm10, %v1924_v61, %v4591_v20  ;;  %v778_v20 = vld [vmem:[#allocation2 + $0xb1] sm:$0xff] }
  0xe4   : > { %v4641_v16 = vpop.permute.xlu0 %1129  ;;  %v4643_v4 = vpop.permute.xlu1 %1255  ;;  %v1990_v10 = vsel %vm1986_vm11, %v1957_v59, %v1382_v12  ;;  %v809_v12 = vld [vmem:[#allocation2 + $0xaa] sm:$0xff] }
  0xe5   : > { %v2023_v23 = vsel %vm6070_vm12, %v1990_v10, %v1510_v8  ;;  %v274_v8 = vld [vmem:[%s4258_s28 + $0xb0] sm:$0xff] }
  0xe6   : > { %1397 = vrot.lane.b32.xlu0 %v808_v35, %s4060_s9  ;;  %1523 = vrot.lane.b32.xlu1 %v4637_v34, %s4061_s14 }
  0xe8   : > { %v1638_v15 = vpop.permute.xlu0 %1637  ;;  %v1764_v42 = vpop.permute.xlu1 %1763 }
  0xe9   : > { %v2088_v0 = vsel %vm6069_vm1, %v2055_v58, %v1764_v42  ;;  %v311_v42 = vmul.f32 %v4262_v6, %v274_v8 }
  0xea   : > { %1017 = vrot.lane.b32.xlu0 %v808_v35, %s4056_s29  ;;  %1143 = vrot.lane.b32.xlu1 %v4637_v34, %s4058_s7  ;;  %v2056_v35 = vsel %vm2052_vm13, %v2023_v23, %v1638_v15 }
  0xeb   : > { %3830 = vmatprep.mubr.msk.f32.mxu0 %vm2123_vm3, %v2088_v0  ;;  %v347_v0 = vadd.f32 %v4266_v7, %v311_v42 }
  0xec   : > { %v4671_v47 = vpop.permute.xlu0 %875  ;;  %v4673_v21 = vpop.permute.xlu1 %1257 }
  0xed   : > { %v411_v59 = vmul.f32 0.1, %v347_v0  ;;  %vm379_vm6 = vcmp.gt.f32.partialorder %v347_v0, 0.0 }
  0xee   : > { %1525 = vrot.lane.b32.xlu0 %v4667_v9, %s4061_s14  ;;  %1651 = vrot.lane.b32.xlu1 %v777_v44, %s4062_s19 }
  0xef   : > { %v4705_v10 = vsel %vm379_vm6, %v347_v0, %v411_v59  ;;  %v4719_v0 = vld [vmem:[#allocation2 + $0xc0] sm:$0xff] }
  0xf0   : > { %v1384_v30 = vpop.permute.xlu0 %1383  ;;  %v1766_v5 = vpop.permute.xlu1 %1765  ;;  %532 = vst.msk [vmem:[#allocation2 + $0x121] sm:$0xff] %vm6072_vm0, %v4705_v10 }
  0xf1   : > { %v2089_v60 = vsel %vm6069_vm1, %v2056_v35, %v1766_v5 }
  0xf2   : > { %1145 = vrot.lane.b32.xlu0 %v4667_v9, %s4058_s7  ;;  %1271 = vrot.lane.b32.xlu1 %v777_v44, %s4059_s8 }
  0xf3   : > { %3831 = vmatmul.mubr.msk.f32.gmra.mrb[2].mxu0 %vm2123_vm3, %v2089_v60  ;;  %v1859_v60 = vsel %vm6072_vm0, %v4365_v18, %v4589_v54 }
  0xf4   : > { %v4688_v56 = vpop.permute.xlu0 %877  ;;  %v4690_v25 = vpop.permute.xlu1 %1003  ;;  %v1892_v42 = vsel %vm6074_vm2, %v1859_v60, %v4608_v38 }
  0xf5   : > { %v1925_v59 = vsel %vm1920_vm9, %v1892_v42, %v4619_v29 }
  0xf6   : > { %1653 = vrot.lane.b32.xlu0 %v778_v20, %s4062_s19  ;;  %1779 = vrot.lane.b32.xlu1 %v809_v12, %s4063_s24  ;;  %v1958_v18 = vsel %vm6071_vm10, %v1925_v59, %v4643_v4 }
  0xf7   : > { %v1991_v54 = vsel %vm1986_vm11, %v1958_v18, %v1384_v30  ;;  %v1860_v30 = vsel %vm6072_vm0, %v4390_v27, %v4606_v55 }
  0xf8   : > { %v1386_v58 = vpop.permute.xlu0 %1385  ;;  %v1512_v15 = vpop.permute.xlu1 %1511 }
  0xf9   : > { %v2024_v29 = vsel %vm6070_vm12, %v1991_v54, %v1512_v15  ;;  %v4749_v15 = vld [vmem:[#allocation2 + $0xc8] sm:$0xff] }
  0xfa   : > { %891 = vrot.lane.b32.xlu0 %v777_v44, %s4057_s30  ;;  %1273 = vrot.lane.b32.xlu1 %v778_v20, %s4059_s8  ;;  %v275_v44 = vld [vmem:[%s4258_s28 + $0xb8] sm:$0xff] }
  0xfb   : > { %v312_v5 = vmul.f32 %v4262_v6, %v275_v44 }
  0xfc   : > { %v4699_v1 = vpop.permute.xlu0 %1005  ;;  %v4701_v61 = vpop.permute.xlu1 %1131 }
  0xfd   : > { %v348_v8 = vadd.f32 %v4266_v7, %v312_v5 }
  0xfe   : > { %1399 = vrot.lane.b32.xlu0 %v809_v12, %s4060_s9  ;;  %1781 = vrot.lane.b32.xlu1 %v810_v33, %s4063_s24 }
  0xff   : > { %v412_v40 = vmul.f32 0.1, %v348_v8  ;;  %vm380_vm7 = vcmp.gt.f32.partialorder %v348_v8, 0.0 }
 0x100   : > { %v1514_v23 = vpop.permute.xlu0 %1513  ;;  %v1640_v35 = vpop.permute.xlu1 %1639 }
 0x101   : > { %v4733_v38 = vsel %vm380_vm7, %v348_v8, %v412_v40  ;;  %v1893_v40 = vsel %vm6074_vm2, %v1860_v30, %v4617_v22  ;;  %v812_v30 = vld [vmem:[#allocation2 + $0xca] sm:$0xff] }
 0x102   : > { %893 = vrot.lane.b32.xlu0 %v778_v20, %s4057_s30  ;;  %1019 = vrot.lane.b32.xlu1 %v809_v12, %s4056_s29  ;;  %533 = vst.msk [vmem:[#allocation2 + $0x129] sm:$0xff] %vm6072_vm0, %v4733_v38  ;;  %v2057_v20 = vsel %vm2052_vm13, %v2024_v29, %v1640_v35  ;;  %v779_v35 = vld [vmem:[#allocation2 + $0xc1] sm:$0xff]  ;;  %v1926_v60 = vsel %vm1920_vm9, %v1893_v40, %v4641_v16 }
 0x103   : > { %v1959_v27 = vsel %vm6071_vm10, %v1926_v60, %v4673_v21  ;;  %v780_v21 = vld [vmem:[#allocation2 + $0xc9] sm:$0xff] }
 0x104   : > { %v4723_v48 = vpop.permute.xlu0 %1133  ;;  %v4725_v44 = vpop.permute.xlu1 %1259  ;;  %v1992_v55 = vsel %vm1986_vm11, %v1959_v27, %v1386_v58  ;;  %v811_v58 = vld [vmem:[#allocation2 + $0xc2] sm:$0xff] }
 0x105   : > { %v2025_v22 = vsel %vm6070_vm12, %v1992_v55, %v1514_v23  ;;  %v276_v23 = vld [vmem:[%s4258_s28 + $0xc0] sm:$0xff] }
 0x106   : > { %1401 = vrot.lane.b32.xlu0 %v810_v33, %s4060_s9  ;;  %1527 = vrot.lane.b32.xlu1 %v4719_v0, %s4061_s14 }
 0x108   : > { %v1642_v12 = vpop.permute.xlu0 %1641  ;;  %v1768_v5 = vpop.permute.xlu1 %1767 }
 0x109   : > { %v2090_v4 = vsel %vm6069_vm1, %v2057_v20, %v1768_v5  ;;  %v313_v5 = vmul.f32 %v4262_v6, %v276_v23 }
 0x10a   : > { %1021 = vrot.lane.b32.xlu0 %v810_v33, %s4056_s29  ;;  %1147 = vrot.lane.b32.xlu1 %v4719_v0, %s4058_s7  ;;  %v2058_v33 = vsel %vm2052_vm13, %v2025_v22, %v1642_v12 }
 0x10b   : > { %3833 = vmatprep.mubr.msk.f32.mxu0 %vm2123_vm3, %v2090_v4  ;;  %v349_v4 = vadd.f32 %v4266_v7, %v313_v5 }
 0x10c   : > { %v4753_v8 = vpop.permute.xlu0 %879  ;;  %v4755_v42 = vpop.permute.xlu1 %1261 }
 0x10d   : > { %v413_v27 = vmul.f32 0.1, %v349_v4  ;;  %vm381_vm8 = vcmp.gt.f32.partialorder %v349_v4, 0.0 }
 0x10e   : > { %1529 = vrot.lane.b32.xlu0 %v4749_v15, %s4061_s14  ;;  %1655 = vrot.lane.b32.xlu1 %v779_v35, %s4062_s19 }
 0x10f   : > { %v4787_v55 = vsel %vm381_vm8, %v349_v4, %v413_v27  ;;  %v4801_v4 = vld [vmem:[#allocation2 + $0xd8] sm:$0xff] }
 0x110   : > { %v1388_v16 = vpop.permute.xlu0 %1387  ;;  %v1770_v59 = vpop.permute.xlu1 %1769  ;;  %6083 = vst [vmem:[#allocation12_spill] sm:$0xff] %v4787_v55  ;;  %534 = vst.msk [vmem:[#allocation2 + $0x139] sm:$0xff] %vm6072_vm0, %v4787_v55 }
 0x111   : > { %v2091_v18 = vsel %vm6069_vm1, %v2058_v33, %v1770_v59 }
 0x112   : > { %1149 = vrot.lane.b32.xlu0 %v4749_v15, %s4058_s7  ;;  %1275 = vrot.lane.b32.xlu1 %v779_v35, %s4059_s8 }
 0x113   : > { %3834 = vmatmul.mubr.msk.f32.gmra.mrb[4].mxu0 %vm2123_vm3, %v2091_v18  ;;  %v1861_v18 = vsel %vm6072_vm0, %v4421_v45, %v4671_v47 }
 0x114   : > { %v4770_v54 = vpop.permute.xlu0 %881  ;;  %v4772_v29 = vpop.permute.xlu1 %1007  ;;  %v1894_v5 = vsel %vm6074_vm2, %v1861_v18, %v4690_v25 }
 0x115   : > { %v1927_v27 = vsel %vm1920_vm9, %v1894_v5, %v4701_v61 }
 0x116   : > { %1657 = vrot.lane.b32.xlu0 %v780_v21, %s4062_s19  ;;  %1783 = vrot.lane.b32.xlu1 %v811_v58, %s4063_s24  ;;  %v1960_v45 = vsel %vm6071_vm10, %v1927_v27, %v4725_v44 }
 0x117   : > { %v1993_v47 = vsel %vm1986_vm11, %v1960_v45, %v1388_v16  ;;  %v1862_v16 = vsel %vm6072_vm0, %v4433_v49, %v4688_v56 }
 0x118   : > { %v1390_v20 = vpop.permute.xlu0 %1389  ;;  %v1516_v12 = vpop.permute.xlu1 %1515 }
 0x119   : > { %v2026_v61 = vsel %vm6070_vm12, %v1993_v47, %v1516_v12  ;;  %v4831_v12 = vld [vmem:[#allocation2 + $0xe0] sm:$0xff] }
 0x11a   : > { %895 = vrot.lane.b32.xlu0 %v779_v35, %s4057_s30  ;;  %1277 = vrot.lane.b32.xlu1 %v780_v21, %s4059_s8  ;;  %v277_v35 = vld [vmem:[%s4258_s28 + $0xc8] sm:$0xff] }
 0x11b   : > { %v314_v59 = vmul.f32 %v4262_v6, %v277_v35 }
 0x11c   : > { %v4781_v40 = vpop.permute.xlu0 %1009  ;;  %v4783_v60 = vpop.permute.xlu1 %1135 }
 0x11d   : > { %v350_v23 = vadd.f32 %v4266_v7, %v314_v59 }
 0x11e   : > { %1403 = vrot.lane.b32.xlu0 %v811_v58, %s4060_s9  ;;  %1785 = vrot.lane.b32.xlu1 %v812_v30, %s4063_s24 }
 0x11f   : > { %v414_v14 = vmul.f32 0.1, %v350_v23  ;;  %vm382_vm14 = vcmp.gt.f32.partialorder %v350_v23, 0.0 }
 0x120   : > { %v1518_v22 = vpop.permute.xlu0 %1517  ;;  %v1644_v33 = vpop.permute.xlu1 %1643 }
 0x121   : > { %v4815_v25 = vsel %vm382_vm14, %v350_v23, %v414_v14  ;;  %v1895_v14 = vsel %vm6074_vm2, %v1862_v16, %v4699_v1  ;;  %v814_v16 = vld [vmem:[#allocation2 + $0xe2] sm:$0xff] }
 0x122   : > { %897 = vrot.lane.b32.xlu0 %v780_v21, %s4057_s30  ;;  %1023 = vrot.lane.b32.xlu1 %v811_v58, %s4056_s29  ;;  %6084 = vst [vmem:[#allocation13_spill] sm:$0xff] %v4815_v25  ;;  %535 = vst.msk [vmem:[#allocation2 + $0x141] sm:$0xff] %vm6072_vm0, %v4815_v25  ;;  %v2059_v21 = vsel %vm2052_vm13, %v2026_v61, %v1644_v33  ;;  %v781_v33 = vld [vmem:[#allocation2 + $0xd9] sm:$0xff]  ;;  %v1928_v18 = vsel %vm1920_vm9, %v1895_v14, %v4723_v48 }
 0x123   : > { %v1961_v49 = vsel %vm6071_vm10, %v1928_v18, %v4755_v42  ;;  %v782_v42 = vld [vmem:[#allocation2 + $0xe1] sm:$0xff] }
 0x124   : > { %v4805_v24 = vpop.permute.xlu0 %1137  ;;  %v4807_v35 = vpop.permute.xlu1 %1263  ;;  %v1994_v56 = vsel %vm1986_vm11, %v1961_v49, %v1390_v20  ;;  %v813_v20 = vld [vmem:[#allocation2 + $0xda] sm:$0xff] }
 0x125   : > { %v2027_v1 = vsel %vm6070_vm12, %v1994_v56, %v1518_v22  ;;  %v278_v22 = vld [vmem:[%s4258_s28 + $0xd0] sm:$0xff] }
 0x126   : > { %1405 = vrot.lane.b32.xlu0 %v812_v30, %s4060_s9  ;;  %1531 = vrot.lane.b32.xlu1 %v4801_v4, %s4061_s14 }
 0x128   : > { %v1646_v58 = vpop.permute.xlu0 %1645  ;;  %v1772_v59 = vpop.permute.xlu1 %1771 }
 0x129   : > { %v2092_v44 = vsel %vm6069_vm1, %v2059_v21, %v1772_v59  ;;  %v315_v59 = vmul.f32 %v4262_v6, %v278_v22 }
 0x12a   : > { %1025 = vrot.lane.b32.xlu0 %v812_v30, %s4056_s29  ;;  %1151 = vrot.lane.b32.xlu1 %v4801_v4, %s4058_s7  ;;  %v2060_v30 = vsel %vm2052_vm13, %v2027_v1, %v1646_v58 }
 0x12b   : > { %3836 = vmatprep.mubr.msk.f32.mxu0 %vm2123_vm3, %v2092_v44  ;;  %v351_v44 = vadd.f32 %v4266_v7, %v315_v59 }
 0x12c   : > { %v4835_v23 = vpop.permute.xlu0 %883  ;;  %v4837_v5 = vpop.permute.xlu1 %1265 }
 0x12d   : > { %v415_v49 = vmul.f32 0.1, %v351_v44  ;;  %vm383_vm4 = vcmp.gt.f32.partialorder %v351_v44, 0.0 }
 0x12e   : > { %1533 = vrot.lane.b32.xlu0 %v4831_v12, %s4061_s14  ;;  %1659 = vrot.lane.b32.xlu1 %v781_v33, %s4062_s19 }
 0x12f   : > { %v4869_v56 = vsel %vm383_vm4, %v351_v44, %v415_v49  ;;  %v4883_v44 = vld [vmem:[#allocation2 + $0xf0] sm:$0xff] }
 0x130   : > { %v1392_v48 = vpop.permute.xlu0 %1391  ;;  %v1774_v27 = vpop.permute.xlu1 %1773  ;;  %6085 = vst [vmem:[#allocation14_spill] sm:$0xff] %v4869_v56  ;;  %536 = vst.msk [vmem:[#allocation2 + $0x151] sm:$0xff] %vm6072_vm0, %v4869_v56 }
 0x131   : > { %v2093_v45 = vsel %vm6069_vm1, %v2060_v30, %v1774_v27 }
 0x132   : > { %1153 = vrot.lane.b32.xlu0 %v4831_v12, %s4058_s7  ;;  %1279 = vrot.lane.b32.xlu1 %v781_v33, %s4059_s8 }
 0x133   : > { %3837 = vmatmul.mubr.msk.f32.gmra.mrb[6].mxu0 %vm2123_vm3, %v2093_v45  ;;  %v1863_v45 = vsel %vm6072_vm0, %v4459_v13, %v4753_v8 }
 0x134   : > { %v4852_v47 = vpop.permute.xlu0 %885  ;;  %v4854_v61 = vpop.permute.xlu1 %1011  ;;  %v1896_v59 = vsel %vm6074_vm2, %v1863_v45, %v4772_v29 }
 0x135   : > { %v1929_v49 = vsel %vm1920_vm9, %v1896_v59, %v4783_v60 }
 0x136   : > { %1661 = vrot.lane.b32.xlu0 %v782_v42, %s4062_s19  ;;  %1787 = vrot.lane.b32.xlu1 %v813_v20, %s4063_s24  ;;  %v1962_v13 = vsel %vm6071_vm10, %v1929_v49, %v4807_v35 }
 0x137   : > { %v1995_v8 = vsel %vm1986_vm11, %v1962_v13, %v1392_v48  ;;  %v1864_v48 = vsel %vm6072_vm0, %v4471_v17, %v4770_v54 }
 0x138   : > { %v1394_v21 = vpop.permute.xlu0 %1393  ;;  %v1520_v58 = vpop.permute.xlu1 %1519 }
 0x139   : > { %v2028_v60 = vsel %vm6070_vm12, %v1995_v8, %v1520_v58  ;;  %v4913_v58 = vld [vmem:[#allocation2 + $0xf8] sm:$0xff] }
 0x13a   : > { %899 = vrot.lane.b32.xlu0 %v781_v33, %s4057_s30  ;;  %1281 = vrot.lane.b32.xlu1 %v782_v42, %s4059_s8  ;;  %v279_v33 = vld [vmem:[%s4258_s28 + $0xd8] sm:$0xff] }
 0x13b   : > { %v316_v27 = vmul.f32 %v4262_v6, %v279_v33 }
 0x13c   : > { %v4863_v14 = vpop.permute.xlu0 %1013  ;;  %v4865_v18 = vpop.permute.xlu1 %1139 }
 0x13d   : > { %v352_v22 = vadd.f32 %v4266_v7, %v316_v27 }
 0x13e   : > { %1407 = vrot.lane.b32.xlu0 %v813_v20, %s4060_s9  ;;  %1789 = vrot.lane.b32.xlu1 %v814_v16, %s4063_s24 }
 0x13f   : > { %v416_v3 = vmul.f32 0.1, %v352_v22  ;;  %vm384_vm5 = vcmp.gt.f32.partialorder %v352_v22, 0.0 }
 0x140   : > { %v1522_v1 = vpop.permute.xlu0 %1521  ;;  %v1648_v30 = vpop.permute.xlu1 %1647 }
 0x141   : > { %v4897_v29 = vsel %vm384_vm5, %v352_v22, %v416_v3  ;;  %v1897_v3 = vsel %vm6074_vm2, %v1864_v48, %v4781_v40  ;;  %v816_v48 = vld [vmem:[#allocation2 + $0xfa] sm:$0xff] }
 0x142   : > { %901 = vrot.lane.b32.xlu0 %v782_v42, %s4057_s30  ;;  %1027 = vrot.lane.b32.xlu1 %v813_v20, %s4056_s29  ;;  %6086 = vst [vmem:[#allocation15_spill] sm:$0xff] %v4897_v29  ;;  %537 = vst.msk [vmem:[#allocation2 + $0x159] sm:$0xff] %vm6072_vm0, %v4897_v29  ;;  %v2061_v42 = vsel %vm2052_vm13, %v2028_v60, %v1648_v30  ;;  %v783_v30 = vld [vmem:[#allocation2 + $0xf1] sm:$0xff]  ;;  %v1930_v45 = vsel %vm1920_vm9, %v1897_v3, %v4805_v24 }
 0x143   : > { %v1963_v17 = vsel %vm6071_vm10, %v1930_v45, %v4837_v5  ;;  %v784_v5 = vld [vmem:[#allocation2 + $0xf9] sm:$0xff] }
 0x144   : > { %v4887_v56 = vpop.permute.xlu0 %1141  ;;  %v4889_v33 = vpop.permute.xlu1 %1267  ;;  %v1996_v54 = vsel %vm1986_vm11, %v1963_v17, %v1394_v21  ;;  %v815_v21 = vld [vmem:[#allocation2 + $0xf2] sm:$0xff] }
 0x145   : > { %v2029_v40 = vsel %vm6070_vm12, %v1996_v54, %v1522_v1  ;;  %v280_v1 = vld [vmem:[%s4258_s28 + $0xe0] sm:$0xff] }
 0x146   : > { %1409 = vrot.lane.b32.xlu0 %v814_v16, %s4060_s9  ;;  %1535 = vrot.lane.b32.xlu1 %v4883_v44, %s4061_s14 }
 0x148   : > { %v1650_v20 = vpop.permute.xlu0 %1649  ;;  %v1776_v27 = vpop.permute.xlu1 %1775 }
 0x149   : > { %v2094_v35 = vsel %vm6069_vm1, %v2061_v42, %v1776_v27  ;;  %v317_v27 = vmul.f32 %v4262_v6, %v280_v1 }
 0x14a   : > { %1029 = vrot.lane.b32.xlu0 %v814_v16, %s4056_s29  ;;  %1155 = vrot.lane.b32.xlu1 %v4883_v44, %s4058_s7  ;;  %v2062_v16 = vsel %vm2052_vm13, %v2029_v40, %v1650_v20 }
 0x14b   : > { %3839 = vmatprep.mubr.msk.f32.mxu0 %vm2123_vm3, %v2094_v35  ;;  %v353_v35 = vadd.f32 %v4266_v7, %v317_v27 }
 0x14c   : > { %v4917_v22 = vpop.permute.xlu0 %887  ;;  %v4919_v59 = vpop.permute.xlu1 %1269 }
 0x14d   : > { %v417_v17 = vmul.f32 0.1, %v353_v35  ;;  %vm385_vm6 = vcmp.gt.f32.partialorder %v353_v35, 0.0 }
 0x14e   : > { %1537 = vrot.lane.b32.xlu0 %v4913_v58, %s4061_s14  ;;  %1663 = vrot.lane.b32.xlu1 %v783_v30, %s4062_s19 }
 0x14f   : > { %v4951_v54 = vsel %vm385_vm6, %v353_v35, %v417_v17  ;;  %v4965_v35 = vld [vmem:[#allocation2 + $0x108] sm:$0xff] }
 0x150   : > { %v1396_v24 = vpop.permute.xlu0 %1395  ;;  %v1778_v49 = vpop.permute.xlu1 %1777  ;;  %6087 = vst [vmem:[#allocation16_spill] sm:$0xff] %v4951_v54  ;;  %538 = vst.msk [vmem:[#allocation2 + $0x169] sm:$0xff] %vm6072_vm0, %v4951_v54 }
 0x151   : > { %v2095_v13 = vsel %vm6069_vm1, %v2062_v16, %v1778_v49 }
 0x152   : > { %1157 = vrot.lane.b32.xlu0 %v4913_v58, %s4058_s7  ;;  %1283 = vrot.lane.b32.xlu1 %v783_v30, %s4059_s8 }
 0x153   : > { %3840 = vmatmul.mubr.msk.f32.gmra.mrb[8].mxu0 %vm2123_vm3, %v2095_v13  ;;  %v1865_v13 = vsel %vm6072_vm0, %v4503_v39, %v4835_v23 }
 0x154   : > { %v4934_v8 = vpop.permute.xlu0 %889  ;;  %v4936_v60 = vpop.permute.xlu1 %1015  ;;  %v1898_v27 = vsel %vm6074_vm2, %v1865_v13, %v4854_v61 }
 0x155   : > { %v1931_v17 = vsel %vm1920_vm9, %v1898_v27, %v4865_v18 }
 0x156   : > { %1665 = vrot.lane.b32.xlu0 %v784_v5, %s4062_s19  ;;  %1791 = vrot.lane.b32.xlu1 %v815_v21, %s4063_s24  ;;  %v1964_v39 = vsel %vm6071_vm10, %v1931_v17, %v4889_v33 }
 0x157   : > { %v1997_v23 = vsel %vm1986_vm11, %v1964_v39, %v1396_v24  ;;  %v1866_v24 = vsel %vm6072_vm0, %v4517_v52, %v4852_v47 }
 0x158   : > { %v1398_v42 = vpop.permute.xlu0 %1397  ;;  %v1524_v20 = vpop.permute.xlu1 %1523 }
 0x159   : > { %v2030_v18 = vsel %vm6070_vm12, %v1997_v23, %v1524_v20  ;;  %v4995_v20 = vld [vmem:[#allocation2 + $0x110] sm:$0xff] }
 0x15a   : > { %903 = vrot.lane.b32.xlu0 %v783_v30, %s4057_s30  ;;  %1285 = vrot.lane.b32.xlu1 %v784_v5, %s4059_s8  ;;  %v281_v30 = vld [vmem:[%s4258_s28 + $0xe8] sm:$0xff] }
 0x15b   : > { %v318_v49 = vmul.f32 %v4262_v6, %v281_v30 }
 0x15c   : > { %v4945_v3 = vpop.permute.xlu0 %1017  ;;  %v4947_v45 = vpop.permute.xlu1 %1143 }
 0x15d   : > { %v354_v1 = vadd.f32 %v4266_v7, %v318_v49 }
 0x15e   : > { %1411 = vrot.lane.b32.xlu0 %v815_v21, %s4060_s9  ;;  %1793 = vrot.lane.b32.xlu1 %v816_v48, %s4063_s24 }
 0x15f   : > { %v418_v29 = vmul.f32 0.1, %v354_v1  ;;  %vm386_vm7 = vcmp.gt.f32.partialorder %v354_v1, 0.0 }
 0x160   : > { %v1526_v40 = vpop.permute.xlu0 %1525  ;;  %v1652_v16 = vpop.permute.xlu1 %1651 }
 0x161   : > { %v4979_v61 = vsel %vm386_vm7, %v354_v1, %v418_v29  ;;  %v1899_v29 = vsel %vm6074_vm2, %v1866_v24, %v4863_v14  ;;  %v818_v24 = vld [vmem:[#allocation2 + $0x112] sm:$0xff] }
 0x162   : > { %905 = vrot.lane.b32.xlu0 %v784_v5, %s4057_s30  ;;  %1031 = vrot.lane.b32.xlu1 %v815_v21, %s4056_s29  ;;  %6088 = vst [vmem:[#allocation17_spill] sm:$0xff] %v4979_v61  ;;  %539 = vst.msk [vmem:[#allocation2 + $0x171] sm:$0xff] %vm6072_vm0, %v4979_v61  ;;  %v2063_v5 = vsel %vm2052_vm13, %v2030_v18, %v1652_v16  ;;  %v785_v16 = vld [vmem:[#allocation2 + $0x109] sm:$0xff]  ;;  %v1932_v13 = vsel %vm1920_vm9, %v1899_v29, %v4887_v56 }
 0x163   : > { %v1965_v52 = vsel %vm6071_vm10, %v1932_v13, %v4919_v59  ;;  %v786_v59 = vld [vmem:[#allocation2 + $0x111] sm:$0xff] }
 0x164   : > { %v4969_v54 = vpop.permute.xlu0 %1145  ;;  %v4971_v30 = vpop.permute.xlu1 %1271  ;;  %v1998_v47 = vsel %vm1986_vm11, %v1965_v52, %v1398_v42  ;;  %v817_v42 = vld [vmem:[#allocation2 + $0x10a] sm:$0xff] }
 0x165   : > { %v2031_v14 = vsel %vm6070_vm12, %v1998_v47, %v1526_v40  ;;  %v282_v40 = vld [vmem:[%s4258_s28 + $0xf0] sm:$0xff] }
 0x166   : > { %1413 = vrot.lane.b32.xlu0 %v816_v48, %s4060_s9  ;;  %1539 = vrot.lane.b32.xlu1 %v4965_v35, %s4061_s14 }
 0x168   : > { %v1654_v21 = vpop.permute.xlu0 %1653  ;;  %v1780_v49 = vpop.permute.xlu1 %1779 }
 0x169   : > { %v2096_v33 = vsel %vm6069_vm1, %v2063_v5, %v1780_v49  ;;  %v319_v49 = vmul.f32 %v4262_v6, %v282_v40 }
 0x16a   : > { %1033 = vrot.lane.b32.xlu0 %v816_v48, %s4056_s29  ;;  %1159 = vrot.lane.b32.xlu1 %v4965_v35, %s4058_s7  ;;  %v2064_v48 = vsel %vm2052_vm13, %v2031_v14, %v1654_v21 }
 0x16b   : > { %3842 = vmatprep.mubr.msk.f32.mxu0 %vm2123_vm3, %v2096_v33  ;;  %v355_v33 = vadd.f32 %v4266_v7, %v319_v49 }
 0x16c   : > { %v4999_v1 = vpop.permute.xlu0 %891  ;;  %v5001_v27 = vpop.permute.xlu1 %1273 }
 0x16d   : > { %v419_v52 = vmul.f32 0.1, %v355_v33  ;;  %vm387_vm8 = vcmp.gt.f32.partialorder %v355_v33, 0.0 }
 0x16e   : > { %1541 = vrot.lane.b32.xlu0 %v4995_v20, %s4061_s14  ;;  %1667 = vrot.lane.b32.xlu1 %v785_v16, %s4062_s19 }
 0x16f   : > { %v5033_v47 = vsel %vm387_vm8, %v355_v33, %v419_v52  ;;  %v5047_v33 = vld [vmem:[#allocation2 + $0x120] sm:$0xff] }
 0x170   : > { %v1400_v56 = vpop.permute.xlu0 %1399  ;;  %v1782_v17 = vpop.permute.xlu1 %1781  ;;  %6089 = vst [vmem:[#allocation18_spill] sm:$0xff] %v5033_v47  ;;  %540 = vst.msk [vmem:[#allocation2 + $0x181] sm:$0xff] %vm6072_vm0, %v5033_v47 }
 0x171   : > { %v2097_v39 = vsel %vm6069_vm1, %v2064_v48, %v1782_v17 }
 0x172   : > { %1161 = vrot.lane.b32.xlu0 %v4995_v20, %s4058_s7  ;;  %1287 = vrot.lane.b32.xlu1 %v785_v16, %s4059_s8 }
 0x173   : > { %3843 = vmatmul.mubr.msk.f32.gmra.mrb[10].mxu0 %vm2123_vm3, %v2097_v39  ;;  %v1867_v39 = vsel %vm6072_vm0, %v4558_v26, %v4917_v22 }
 0x174   : > { %v5016_v23 = vpop.permute.xlu0 %893  ;;  %v5018_v18 = vpop.permute.xlu1 %1019  ;;  %v1900_v49 = vsel %vm6074_vm2, %v1867_v39, %v4936_v60 }
 0x175   : > { %v1933_v52 = vsel %vm1920_vm9, %v1900_v49, %v4947_v45 }
 0x176   : > { %1669 = vrot.lane.b32.xlu0 %v786_v59, %s4062_s19  ;;  %1795 = vrot.lane.b32.xlu1 %v817_v42, %s4063_s24  ;;  %v1966_v26 = vsel %vm6071_vm10, %v1933_v52, %v4971_v30 }
 0x177   : > { %v1999_v22 = vsel %vm1986_vm11, %v1966_v26, %v1400_v56  ;;  %v1868_v56 = vsel %vm6072_vm0, %v4585_v19, %v4934_v8 }
 0x178   : > { %v1402_v5 = vpop.permute.xlu0 %1401  ;;  %v1528_v21 = vpop.permute.xlu1 %1527 }
 0x179   : > { %v2032_v60 = vsel %vm6070_vm12, %v1999_v22, %v1528_v21  ;;  %v1901_v21 = vsel %vm6074_vm2, %v1868_v56, %v4945_v3 }
 0x17a   : > { %907 = vrot.lane.b32.xlu0 %v785_v16, %s4057_s30  ;;  %1289 = vrot.lane.b32.xlu1 %v786_v59, %s4059_s8  ;;  %v283_v16 = vld [vmem:[%s4258_s28 + $0xf8] sm:$0xff]  ;;  %v1934_v39 = vsel %vm1920_vm9, %v1901_v21, %v4969_v54  ;;  %v1869_v21 = vsel %vm6072_vm0, %v4637_v34, %v4999_v1 }
 0x17b   : > { %v320_v17 = vmul.f32 %v4262_v6, %v283_v16  ;;  %v1967_v19 = vsel %vm6071_vm10, %v1934_v39, %v5001_v27  ;;  %v788_v27 = vld [vmem:[#allocation2 + $0x129] sm:$0xff]  ;;  %v5115_v39 = vld [vmem:[#allocation2 + $0x138] sm:$0xff] }
 0x17c   : > { %v5027_v29 = vpop.permute.xlu0 %1021  ;;  %v5029_v13 = vpop.permute.xlu1 %1147  ;;  %v2000_v8 = vsel %vm1986_vm11, %v1967_v19, %v1402_v5  ;;  %v819_v5 = vld [vmem:[#allocation2 + $0x122] sm:$0xff] }
 0x17d   : > { %v356_v40 = vadd.f32 %v4266_v7, %v320_v17  ;;  %v5075_v17 = vld [vmem:[#allocation2 + $0x128] sm:$0xff] }
 0x17e   : > { %1415 = vrot.lane.b32.xlu0 %v817_v42, %s4060_s9  ;;  %1797 = vrot.lane.b32.xlu1 %v818_v24, %s4063_s24 }
 0x17f   : > { %v420_v16 = vmul.f32 0.1, %v356_v40  ;;  %vm388_vm14 = vcmp.gt.f32.partialorder %v356_v40, 0.0 }
 0x180   : > { %v1530_v14 = vpop.permute.xlu0 %1529  ;;  %v1656_v48 = vpop.permute.xlu1 %1655 }
 0x181   : > { %v5059_v7 = vsel %vm388_vm14, %v356_v40, %v420_v16  ;;  %v2065_v45 = vsel %vm2052_vm13, %v2032_v60, %v1656_v48  ;;  %v787_v48 = vld [vmem:[#allocation2 + $0x121] sm:$0xff]  ;;  %v2033_v3 = vsel %vm6070_vm12, %v2000_v8, %v1530_v14 }
 0x182   : > { %909 = vrot.lane.b32.xlu0 %v786_v59, %s4057_s30  ;;  %1035 = vrot.lane.b32.xlu1 %v817_v42, %s4056_s29  ;;  %6090 = vst [vmem:[#allocation19_spill] sm:$0xff] %v5059_v7  ;;  %541 = vst.msk [vmem:[#allocation2 + $0x189] sm:$0xff] %vm6072_vm0, %v5059_v7 }
 0x184   : > { %v5051_v47 = vpop.permute.xlu0 %1149  ;;  %v1276_v6 = vpop.permute.xlu1 %1275 }
 0x186   : > { %1417 = vrot.lane.b32.xlu0 %v818_v24, %s4060_s9  ;;  %1543 = vrot.lane.b32.xlu1 %v5047_v33, %s4061_s14 }
 0x188   : > { %v1658_v59 = vpop.permute.xlu0 %1657  ;;  %v1784_v42 = vpop.permute.xlu1 %1783 }
 0x189   : > { %v2098_v30 = vsel %vm6069_vm1, %v2065_v45, %v1784_v42  ;;  %v820_v45 = vld [vmem:[#allocation2 + $0x12a] sm:$0xff] }
 0x18a   : > { %1037 = vrot.lane.b32.xlu0 %v818_v24, %s4056_s29  ;;  %1163 = vrot.lane.b32.xlu1 %v5047_v33, %s4058_s7  ;;  %v2066_v24 = vsel %vm2052_vm13, %v2033_v3, %v1658_v59 }
 0x18b   : > { %3845 = vmatprep.mubr.msk.f32.mxu0 %vm2123_vm3, %v2098_v30 }
 0x18c   : > { %v5079_v40 = vpop.permute.xlu0 %895  ;;  %v1278_v49 = vpop.permute.xlu1 %1277 }
 0x18e   : > { %1545 = vrot.lane.b32.xlu0 %v5075_v17, %s4061_s14  ;;  %1671 = vrot.lane.b32.xlu1 %v787_v48, %s4062_s19 }
 0x190   : > { %v1404_v52 = vpop.permute.xlu0 %1403  ;;  %v1786_v16 = vpop.permute.xlu1 %1785 }
 0x191   : > { %v2099_v54 = vsel %vm6069_vm1, %v2066_v24, %v1786_v16 }
 0x192   : > { %1165 = vrot.lane.b32.xlu0 %v5075_v17, %s4058_s7  ;;  %1291 = vrot.lane.b32.xlu1 %v787_v48, %s4059_s8 }
 0x193   : > { %3846 = vmatmul.mubr.msk.f32.gmra.mrb[12].mxu0 %vm2123_vm3, %v2099_v54 }
 0x194   : > { %v5094_v26 = vpop.permute.xlu0 %897  ;;  %v5096_v22 = vpop.permute.xlu1 %1023 }
 0x196   : > { %1673 = vrot.lane.b32.xlu0 %v788_v27, %s4062_s19  ;;  %1799 = vrot.lane.b32.xlu1 %v819_v5, %s4063_s24 }
 0x198   : > { %v1406_v14 = vpop.permute.xlu0 %1405  ;;  %v1532_v60 = vpop.permute.xlu1 %1531 }
 0x19a   : > { %911 = vrot.lane.b32.xlu0 %v787_v48, %s4057_s30  ;;  %1293 = vrot.lane.b32.xlu1 %v788_v27, %s4059_s8  ;;  %v1902_v48 = vsel %vm6074_vm2, %v1869_v21, %v5018_v18  ;;  %v789_v21 = vld [vmem:[#allocation2 + $0x139] sm:$0xff] }
 0x19b   : > { %v1935_v19 = vsel %vm1920_vm9, %v1902_v48, %v5029_v13 }
 0x19c   : > { %v5102_v59 = vpop.permute.xlu0 %1025  ;;  %v5104_v42 = vpop.permute.xlu1 %1151  ;;  %v1968_v24 = vsel %vm6071_vm10, %v1935_v19, %v1276_v6 }
 0x19d   : > { %v2001_v16 = vsel %vm1986_vm11, %v1968_v24, %v1404_v52 }
 0x19e   : > { %1419 = vrot.lane.b32.xlu0 %v819_v5, %s4060_s9  ;;  %1801 = vrot.lane.b32.xlu1 %v820_v45, %s4063_s24  ;;  %v2034_v1 = vsel %vm6070_vm12, %v2001_v16, %v1532_v60 }
 0x1a0   : > { %v1534_v30 = vpop.permute.xlu0 %1533  ;;  %v1660_v56 = vpop.permute.xlu1 %1659 }
 0x1a1   : > { %v2067_v13 = vsel %vm2052_vm13, %v2034_v1, %v1660_v56  ;;  %v5144_v56 = vld [vmem:[#allocation2 + $0x140] sm:$0xff] }
 0x1a2   : > { %913 = vrot.lane.b32.xlu0 %v788_v27, %s4057_s30  ;;  %1039 = vrot.lane.b32.xlu1 %v819_v5, %s4056_s29  ;;  %v1870_v5 = vsel %vm6072_vm0, %v4667_v9, %v5016_v23 }
 0x1a3   : > { %v1903_v60 = vsel %vm6074_vm2, %v1870_v5, %v5027_v29 }
 0x1a4   : > { %v5119_v8 = vpop.permute.xlu0 %1153  ;;  %v1280_v3 = vpop.permute.xlu1 %1279  ;;  %v1936_v48 = vsel %vm1920_vm9, %v1903_v60, %v5051_v47 }
 0x1a5   : > { %v1969_v9 = vsel %vm6071_vm10, %v1936_v48, %v1278_v49  ;;  %v790_v49 = vld [vmem:[#allocation2 + $0x141] sm:$0xff] }
 0x1a6   : > { %v5123_v34 = vpop.f32.mrb[0].mxu0  ;;  %1421 = vrot.lane.b32.xlu0 %v820_v45, %s4060_s9  ;;  %1547 = vrot.lane.b32.xlu1 %v5115_v39, %s4061_s14  ;;  %v2002_v23 = vsel %vm1986_vm11, %v1969_v9, %v1406_v14  ;;  %v821_v14 = vld [vmem:[#allocation2 + $0x13a] sm:$0xff] }
 0x1a7   : > { %v5129_v18 = vpop.f32.mrb[1].mxu0  ;;  %v2035_v29 = vsel %vm6070_vm12, %v2002_v23, %v1534_v30  ;;  %v1871_v23 = vsel %vm6072_vm0, %v4719_v0, %v5079_v40 }
 0x1a8   : > { %v1662_v27 = vpop.permute.xlu0 %1661  ;;  %v1788_v6 = vpop.permute.xlu1 %1787 }
 0x1a9   : > { %v2100_v52 = vsel %vm6069_vm1, %v2067_v13, %v1788_v6 }
 0x1aa   : > { %1041 = vrot.lane.b32.xlu0 %v820_v45, %s4056_s29  ;;  %1167 = vrot.lane.b32.xlu1 %v5115_v39, %s4058_s7  ;;  %v2068_v45 = vsel %vm2052_vm13, %v2035_v29, %v1662_v27  ;;  %v5183_v29 = vld [vmem:[#allocation2 + $0x150] sm:$0xff] }
 0x1ab   : > { %3848 = vmatprep.mubr.msk.f32.mxu0 %vm2123_vm3, %v2100_v52  ;;  %v822_v52 = vld [vmem:[#allocation2 + $0x142] sm:$0xff] }
 0x1ac   : > { %v5148_v19 = vpop.permute.xlu0 %899  ;;  %v1282_v24 = vpop.permute.xlu1 %1281 }
 0x1ae   : > { %1549 = vrot.lane.b32.xlu0 %v5144_v56, %s4061_s14  ;;  %1675 = vrot.lane.b32.xlu1 %v789_v21, %s4062_s19 }
 0x1b0   : > { %v1408_v16 = vpop.permute.xlu0 %1407  ;;  %v1790_v1 = vpop.permute.xlu1 %1789 }
 0x1b1   : > { %v2101_v47 = vsel %vm6069_vm1, %v2068_v45, %v1790_v1 }
 0x1b2   : > { %1169 = vrot.lane.b32.xlu0 %v5144_v56, %s4058_s7  ;;  %1295 = vrot.lane.b32.xlu1 %v789_v21, %s4059_s8 }
 0x1b3   : > { %3849 = vmatmul.mubr.msk.f32.gmra.mrb[14].mxu0 %vm2123_vm3, %v2101_v47 }
 0x1b4   : > { %v5162_v13 = vpop.permute.xlu0 %901  ;;  %v5164_v6 = vpop.permute.xlu1 %1027 }
 0x1b6   : > { %1677 = vrot.lane.b32.xlu0 %v790_v49, %s4062_s19  ;;  %1803 = vrot.lane.b32.xlu1 %v821_v14, %s4063_s24 }
 0x1b8   : > { %v1410_v30 = vpop.permute.xlu0 %1409  ;;  %v1536_v27 = vpop.permute.xlu1 %1535 }
 0x1ba   : > { %915 = vrot.lane.b32.xlu0 %v789_v21, %s4057_s30  ;;  %1297 = vrot.lane.b32.xlu1 %v790_v49, %s4059_s8  ;;  %v1904_v21 = vsel %vm6074_vm2, %v1871_v23, %v5096_v22 }
 0x1bb   : > { %v1937_v45 = vsel %vm1920_vm9, %v1904_v21, %v5104_v42 }
 0x1bc   : > { %v5170_v5 = vpop.permute.xlu0 %1029  ;;  %v5172_v60 = vpop.permute.xlu1 %1155  ;;  %v1970_v54 = vsel %vm6071_vm10, %v1937_v45, %v1280_v3 }
 0x1bd   : > { %v2003_v7 = vsel %vm1986_vm11, %v1970_v54, %v1408_v16  ;;  %v1872_v16 = vsel %vm6072_vm0, %v4749_v15, %v5094_v26 }
 0x1be   : > { %1423 = vrot.lane.b32.xlu0 %v821_v14, %s4060_s9  ;;  %1805 = vrot.lane.b32.xlu1 %v822_v52, %s4063_s24  ;;  %v2036_v40 = vsel %vm6070_vm12, %v2003_v7, %v1536_v27  ;;  %v1905_v7 = vsel %vm6074_vm2, %v1872_v16, %v5102_v59  ;;  %v5212_v27 = vld [vmem:[#allocation2 + $0x158] sm:$0xff] }
 0x1bf   : > { %v1938_v23 = vsel %vm1920_vm9, %v1905_v7, %v5119_v8  ;;  %v824_v16 = vld [vmem:[#allocation2 + $0x15a] sm:$0xff] }
 0x1c0   : > { %v1538_v48 = vpop.permute.xlu0 %1537  ;;  %v1664_v9 = vpop.permute.xlu1 %1663  ;;  %v1971_v15 = vsel %vm6071_vm10, %v1938_v23, %v1282_v24  ;;  %v792_v24 = vld [vmem:[#allocation2 + $0x159] sm:$0xff] }
 0x1c1   : > { %v2069_v42 = vsel %vm2052_vm13, %v2036_v40, %v1664_v9  ;;  %v791_v9 = vld [vmem:[#allocation2 + $0x151] sm:$0xff]  ;;  %v2004_v26 = vsel %vm1986_vm11, %v1971_v15, %v1410_v30 }
 0x1c2   : > { %917 = vrot.lane.b32.xlu0 %v790_v49, %s4057_s30  ;;  %1043 = vrot.lane.b32.xlu1 %v821_v14, %s4056_s29  ;;  %v2037_v59 = vsel %vm6070_vm12, %v2004_v26, %v1538_v48  ;;  %v823_v30 = vld [vmem:[#allocation2 + $0x152] sm:$0xff] }
 0x1c4   : > { %v5187_v1 = vpop.permute.xlu0 %1157  ;;  %v1284_v47 = vpop.permute.xlu1 %1283 }
 0x1c6   : > { %v5191_v0 = vpop.f32.mrb[2].mxu0  ;;  %1425 = vrot.lane.b32.xlu0 %v822_v52, %s4060_s9  ;;  %1551 = vrot.lane.b32.xlu1 %v5183_v29, %s4061_s14 }
 0x1c7   : > { %v5197_v22 = vpop.f32.mrb[3].mxu0 }
 0x1c8   : > { %v1666_v14 = vpop.permute.xlu0 %1665  ;;  %v1792_v3 = vpop.permute.xlu1 %1791 }
 0x1c9   : > { %v2102_v54 = vsel %vm6069_vm1, %v2069_v42, %v1792_v3 }
 0x1ca   : > { %1045 = vrot.lane.b32.xlu0 %v822_v52, %s4056_s29  ;;  %1171 = vrot.lane.b32.xlu1 %v5183_v29, %s4058_s7  ;;  %v2070_v52 = vsel %vm2052_vm13, %v2037_v59, %v1666_v14  ;;  %v1873_v59 = vsel %vm6072_vm0, %v4801_v4, %v5148_v19 }
 0x1cb   : > { %3851 = vmatprep.mubr.msk.f32.mxu0 %vm2123_vm3, %v2102_v54 }
 0x1cc   : > { %v5216_v21 = vpop.permute.xlu0 %903  ;;  %v1286_v45 = vpop.permute.xlu1 %1285 }
 0x1ce   : > { %1553 = vrot.lane.b32.xlu0 %v5212_v27, %s4061_s14  ;;  %1679 = vrot.lane.b32.xlu1 %v791_v9, %s4062_s19 }
 0x1d0   : > { %v1412_v40 = vpop.permute.xlu0 %1411  ;;  %v1794_v42 = vpop.permute.xlu1 %1793 }
 0x1d1   : > { %v2103_v8 = vsel %vm6069_vm1, %v2070_v52, %v1794_v42  ;;  %v5251_v52 = vld [vmem:[#allocation2 + $0x168] sm:$0xff] }
 0x1d2   : > { %1173 = vrot.lane.b32.xlu0 %v5212_v27, %s4058_s7  ;;  %1299 = vrot.lane.b32.xlu1 %v791_v9, %s4059_s8 }
 0x1d3   : > { %3852 = vmatmul.mubr.msk.f32.gmra.mrb[16].mxu0 %vm2123_vm3, %v2103_v8 }
 0x1d4   : > { %v5230_v3 = vpop.permute.xlu0 %905  ;;  %v5232_v54 = vpop.permute.xlu1 %1031 }
 0x1d6   : > { %1681 = vrot.lane.b32.xlu0 %v792_v24, %s4062_s19  ;;  %1807 = vrot.lane.b32.xlu1 %v823_v30, %s4063_s24 }
 0x1d8   : > { %v1414_v48 = vpop.permute.xlu0 %1413  ;;  %v1540_v14 = vpop.permute.xlu1 %1539 }
 0x1da   : > { %919 = vrot.lane.b32.xlu0 %v791_v9, %s4057_s30  ;;  %1301 = vrot.lane.b32.xlu1 %v792_v24, %s4059_s8  ;;  %v1906_v9 = vsel %vm6074_vm2, %v1873_v59, %v5164_v6 }
 0x1db   : > { %v1939_v42 = vsel %vm1920_vm9, %v1906_v9, %v5172_v60 }
 0x1dc   : > { %v5238_v7 = vpop.permute.xlu0 %1033  ;;  %v5240_v23 = vpop.permute.xlu1 %1159  ;;  %v1972_v61 = vsel %vm6071_vm10, %v1939_v42, %v1284_v47 }
 0x1dd   : > { %v2005_v62 = vsel %vm1986_vm11, %v1972_v61, %v1412_v40  ;;  %v1874_v40 = vsel %vm6072_vm0, %v4831_v12, %v5162_v13 }
 0x1de   : > { %1427 = vrot.lane.b32.xlu0 %v823_v30, %s4060_s9  ;;  %1809 = vrot.lane.b32.xlu1 %v824_v16, %s4063_s24  ;;  %v2038_v19 = vsel %vm6070_vm12, %v2005_v62, %v1540_v14  ;;  %v1907_v62 = vsel %vm6074_vm2, %v1874_v40, %v5170_v5  ;;  %v5280_v14 = vld [vmem:[#allocation2 + $0x170] sm:$0xff] }
 0x1df   : > { %v1940_v59 = vsel %vm1920_vm9, %v1907_v62, %v5187_v1  ;;  %v826_v40 = vld [vmem:[#allocation2 + $0x172] sm:$0xff] }
 0x1e0   : > { %v1542_v15 = vpop.permute.xlu0 %1541  ;;  %v1668_v26 = vpop.permute.xlu1 %1667  ;;  %v1973_v12 = vsel %vm6071_vm10, %v1940_v59, %v1286_v45  ;;  %v794_v45 = vld [vmem:[#allocation2 + $0x171] sm:$0xff] }
 0x1e1   : > { %v2071_v60 = vsel %vm2052_vm13, %v2038_v19, %v1668_v26  ;;  %v793_v26 = vld [vmem:[#allocation2 + $0x169] sm:$0xff]  ;;  %v2006_v13 = vsel %vm1986_vm11, %v1973_v12, %v1414_v48 }
 0x1e2   : > { %921 = vrot.lane.b32.xlu0 %v792_v24, %s4057_s30  ;;  %1047 = vrot.lane.b32.xlu1 %v823_v30, %s4056_s29  ;;  %v2039_v5 = vsel %vm6070_vm12, %v2006_v13, %v1542_v15  ;;  %v825_v48 = vld [vmem:[#allocation2 + $0x16a] sm:$0xff] }
 0x1e4   : > { %v5255_v8 = vpop.permute.xlu0 %1161  ;;  %v1288_v49 = vpop.permute.xlu1 %1287 }
 0x1e6   : > { %v5259_v4 = vpop.f32.mrb[4].mxu0  ;;  %1429 = vrot.lane.b32.xlu0 %v824_v16, %s4060_s9  ;;  %1555 = vrot.lane.b32.xlu1 %v5251_v52, %s4061_s14 }
 0x1e7   : > { %v5265_v6 = vpop.f32.mrb[5].mxu0 }
 0x1e8   : > { %v1670_v30 = vpop.permute.xlu0 %1669  ;;  %v1796_v47 = vpop.permute.xlu1 %1795 }
 0x1e9   : > { %v2104_v61 = vsel %vm6069_vm1, %v2071_v60, %v1796_v47 }
 0x1ea   : > { %1049 = vrot.lane.b32.xlu0 %v824_v16, %s4056_s29  ;;  %1175 = vrot.lane.b32.xlu1 %v5251_v52, %s4058_s7  ;;  %v2072_v16 = vsel %vm2052_vm13, %v2039_v5, %v1670_v30  ;;  %v1875_v5 = vsel %vm6072_vm0, %v4883_v44, %v5216_v21 }
 0x1eb   : > { %3854 = vmatprep.mubr.msk.f32.mxu0 %vm2123_vm3, %v2104_v61 }
 0x1ec   : > { %v5284_v9 = vpop.permute.xlu0 %907  ;;  %v1290_v42 = vpop.permute.xlu1 %1289 }
 0x1ee   : > { %1557 = vrot.lane.b32.xlu0 %v5280_v14, %s4061_s14  ;;  %1683 = vrot.lane.b32.xlu1 %v793_v26, %s4062_s19 }
 0x1f0   : > { %v1416_v19 = vpop.permute.xlu0 %1415  ;;  %v1798_v60 = vpop.permute.xlu1 %1797 }
 0x1f1   : > { %v2105_v1 = vsel %vm6069_vm1, %v2072_v16, %v1798_v60  ;;  %v763_v16 = vld [vmem:[#allocation2 + $0x180] sm:$0xff] }
 0x1f2   : > { %1177 = vrot.lane.b32.xlu0 %v5280_v14, %s4058_s7  ;;  %1303 = vrot.lane.b32.xlu1 %v793_v26, %s4059_s8 }
 0x1f3   : > { %3855 = vmatmul.mubr.msk.f32.gmra.mrb[18].mxu0 %vm2123_vm3, %v2105_v1 }
 0x1f4   : > { %v5298_v47 = vpop.permute.xlu0 %909  ;;  %v5300_v61 = vpop.permute.xlu1 %1035 }
 0x1f6   : > { %1685 = vrot.lane.b32.xlu0 %v794_v45, %s4062_s19  ;;  %1811 = vrot.lane.b32.xlu1 %v825_v48, %s4063_s24 }
 0x1f8   : > { %v1418_v15 = vpop.permute.xlu0 %1417  ;;  %v1544_v30 = vpop.permute.xlu1 %1543 }
 0x1fa   : > { %923 = vrot.lane.b32.xlu0 %v793_v26, %s4057_s30  ;;  %1305 = vrot.lane.b32.xlu1 %v794_v45, %s4059_s8  ;;  %v1908_v26 = vsel %vm6074_vm2, %v1875_v5, %v5232_v54 }
 0x1fb   : > { %v1941_v60 = vsel %vm1920_vm9, %v1908_v26, %v5240_v23 }
 0x1fc   : > { %v5306_v62 = vpop.permute.xlu0 %1037  ;;  %v5308_v59 = vpop.permute.xlu1 %1163  ;;  %v1974_v25 = vsel %vm6071_vm10, %v1941_v60, %v1288_v49 }
 0x1fd   : > { %v2007_v55 = vsel %vm1986_vm11, %v1974_v25, %v1416_v19  ;;  %v1876_v25 = vsel %vm6072_vm0, %v4913_v58, %v5230_v3  ;;  %v764_v19 = vld [vmem:[#allocation2 + $0x188] sm:$0xff] }
 0x1fe   : > { %1431 = vrot.lane.b32.xlu0 %v825_v48, %s4060_s9  ;;  %1813 = vrot.lane.b32.xlu1 %v826_v40, %s4063_s24  ;;  %v2040_v21 = vsel %vm6070_vm12, %v2007_v55, %v1544_v30  ;;  %v1909_v55 = vsel %vm6074_vm2, %v1876_v25, %v5238_v7  ;;  %v795_v30 = vld [vmem:[#allocation2 + $0x181] sm:$0xff] }
 0x200   : > { %v1546_v12 = vpop.permute.xlu0 %1545  ;;  %v1672_v13 = vpop.permute.xlu1 %1671 }
 0x201   : > { %v2073_v23 = vsel %vm2052_vm13, %v2040_v21, %v1672_v13  ;;  %v1942_v13 = vsel %vm1920_vm9, %v1909_v55, %v5255_v8 }
 0x202   : > { %925 = vrot.lane.b32.xlu0 %v794_v45, %s4057_s30  ;;  %1051 = vrot.lane.b32.xlu1 %v825_v48, %s4056_s29  ;;  %v1975_v58 = vsel %vm6071_vm10, %v1942_v13, %v1290_v42  ;;  %v796_v42 = vld [vmem:[#allocation2 + $0x189] sm:$0xff] }
 0x203   : > { %v2008_v3 = vsel %vm1986_vm11, %v1975_v58, %v1418_v15  ;;  %v827_v15 = vld [vmem:[#allocation2 + $0x182] sm:$0xff] }
 0x204   : > { %v5321_v1 = vpop.permute.xlu0 %1165  ;;  %v5323_v24 = vpop.permute.xlu1 %1291  ;;  %v2041_v7 = vsel %vm6070_vm12, %v2008_v3, %v1546_v12  ;;  %v1877_v3 = vsel %vm6072_vm0, %v4965_v35, %v5284_v9 }
 0x206   : > { %v5327_v44 = vpop.f32.mrb[6].mxu0  ;;  %1433 = vrot.lane.b32.xlu0 %v826_v40, %s4060_s9  ;;  %1559 = vrot.lane.b32.xlu1 %v763_v16, %s4061_s14 }
 0x207   : > { %v5332_v54 = vpop.f32.mrb[7].mxu0 }
 0x208   : > { %v1674_v48 = vpop.permute.xlu0 %1673  ;;  %v1800_v5 = vpop.permute.xlu1 %1799 }
 0x209   : > { %v2106_v49 = vsel %vm6069_vm1, %v2073_v23, %v1800_v5 }
 0x20a   : > { %1053 = vrot.lane.b32.xlu0 %v826_v40, %s4056_s29  ;;  %1179 = vrot.lane.b32.xlu1 %v763_v16, %s4058_s7  ;;  %v2074_v40 = vsel %vm2052_vm13, %v2041_v7, %v1674_v48  ;;  %v1910_v7 = vsel %vm6074_vm2, %v1877_v3, %v5300_v61 }
 0x20b   : > { %3857 = vmatprep.mubr.msk.f32.mxu0 %vm2123_vm3, %v2106_v49  ;;  %v828_v49 = vld [vmem:[#allocation2 + $0x18a] sm:$0xff] }
 0x20c   : > { %v5348_v26 = vpop.permute.xlu0 %911  ;;  %v5350_v60 = vpop.permute.xlu1 %1293 }
 0x20e   : > { %1561 = vrot.lane.b32.xlu0 %v764_v19, %s4061_s14  ;;  %1687 = vrot.lane.b32.xlu1 %v795_v30, %s4062_s19 }
 0x210   : > { %v1420_v16 = vpop.permute.xlu0 %1419  ;;  %v1802_v21 = vpop.permute.xlu1 %1801 }
 0x211   : > { %v2107_v8 = vsel %vm6069_vm1, %v2074_v40, %v1802_v21  ;;  %v797_v40 = vld [vmem:[#allocation2 + $0x199] sm:$0xff]  ;;  %v798_v21 = vld [vmem:[#allocation2 + $0x1a1] sm:$0xff] }
 0x212   : > { %1181 = vrot.lane.b32.xlu0 %v764_v19, %s4058_s7  ;;  %1307 = vrot.lane.b32.xlu1 %v795_v30, %s4059_s8  ;;  %v765_v19 = vld [vmem:[#allocation2 + $0x198] sm:$0xff]  ;;  %v766_v30 = vld [vmem:[#allocation2 + $0x1a0] sm:$0xff] }
 0x213   : > { %3858 = vmatmul.mubr.msk.f32.gmra.mrb[20].mxu0 %vm2123_vm3, %v2107_v8  ;;  %v1943_v8 = vsel %vm1920_vm9, %v1910_v7, %v5308_v59 }
 0x214   : > { %v5362_v23 = vpop.permute.xlu0 %913  ;;  %v5364_v5 = vpop.permute.xlu1 %1039 }
 0x216   : > { %1689 = vrot.lane.b32.xlu0 %v796_v42, %s4062_s19  ;;  %1815 = vrot.lane.b32.xlu1 %v827_v15, %s4063_s24 }
 0x218   : > { %v1422_v12 = vpop.permute.xlu0 %1421  ;;  %v1548_v48 = vpop.permute.xlu1 %1547 }
 0x21a   : > { %1309 = vrot.lane.b32.xlu0 %v796_v42, %s4059_s8  ;;  %1435 = vrot.lane.b32.xlu1 %v827_v15, %s4060_s9 }
 0x21c   : > { %v5370_v25 = vpop.permute.xlu0 %1041  ;;  %v1168_v55 = vpop.permute.xlu1 %1167 }
 0x21e   : > { %1817 = vrot.lane.b32.xlu0 %v828_v49, %s4063_s24  ;;  %1437 = vrot.lane.b32.xlu1 %v828_v49, %s4060_s9  ;;  %v1976_v49 = vsel %vm6071_vm10, %v1943_v8, %v5323_v24 }
 0x21f   : > { %v2009_v45 = vsel %vm1986_vm11, %v1976_v49, %v1420_v16 }
 0x220   : > { %v1550_v13 = vpop.permute.xlu0 %1549  ;;  %v1676_v58 = vpop.permute.xlu1 %1675  ;;  %v2042_v9 = vsel %vm6070_vm12, %v2009_v45, %v1548_v48 }
 0x221   : > { %v2075_v59 = vsel %vm2052_vm13, %v2042_v9, %v1676_v58 }
 0x222   : > { %1563 = vrot.lane.b32.xlu0 %v765_v19, %s4061_s14  ;;  %1565 = vrot.lane.b32.xlu1 %v766_v30, %s4061_s14  ;;  %v829_v19 = vld [vmem:[#allocation2 + $0x19a] sm:$0xff]  ;;  %v830_v30 = vld [vmem:[#allocation2 + $0x1a2] sm:$0xff] }
 0x224   : > { %v1170_v42 = vpop.permute.xlu0 %1169  ;;  %v1296_v15 = vpop.permute.xlu1 %1295 }
 0x226   : > { %v5386_v35 = vpop.f32.mrb[8].mxu0  ;;  %1691 = vrot.lane.b32.xlu0 %v797_v40, %s4062_s19  ;;  %1693 = vrot.lane.b32.xlu1 %v798_v21, %s4062_s19  ;;  %v1878_v40 = vsel %vm6072_vm0, %v4995_v20, %v5298_v47 }
 0x227   : > { %v5391_v61 = vpop.f32.mrb[9].mxu0  ;;  %v1911_v45 = vsel %vm6074_vm2, %v1878_v40, %v5306_v62 }
 0x228   : > { %v1678_v24 = vpop.permute.xlu0 %1677  ;;  %v1804_v7 = vpop.permute.xlu1 %1803  ;;  %v1944_v48 = vsel %vm1920_vm9, %v1911_v45, %v5321_v1 }
 0x229   : > { %v2108_v16 = vsel %vm6069_vm1, %v2075_v59, %v1804_v7  ;;  %v1977_v8 = vsel %vm6071_vm10, %v1944_v48, %v5350_v60 }
 0x22a   : > { %1819 = vrot.lane.b32.xlu0 %v829_v19, %s4063_s24  ;;  %1821 = vrot.lane.b32.xlu1 %v830_v30, %s4063_s24  ;;  %v2010_v49 = vsel %vm1986_vm11, %v1977_v8, %v1422_v12  ;;  %v1879_v12 = vsel %vm6072_vm0, %v5047_v33, %v5348_v26 }
 0x22b   : > { %3860 = vmatprep.mubr.msk.f32.mxu0 %vm2123_vm3, %v2108_v16  ;;  %v2043_v20 = vsel %vm6070_vm12, %v2010_v49, %v1550_v13  ;;  %v1912_v13 = vsel %vm6074_vm2, %v1879_v12, %v5364_v5 }
 0x22c   : > { %v916_v58 = vpop.permute.xlu0 %915  ;;  %v1298_v21 = vpop.permute.xlu1 %1297  ;;  %v2076_v47 = vsel %vm2052_vm13, %v2043_v20, %v1678_v24  ;;  %v1945_v24 = vsel %vm1920_vm9, %v1912_v13, %v1168_v55 }
 0x22d   : > { %v1978_v49 = vsel %vm6071_vm10, %v1945_v24, %v1296_v15  ;;  %v1880_v15 = vsel %vm6072_vm0, %v5075_v17, %v5362_v23 }
 0x230   : > { %v1424_v9 = vpop.permute.xlu0 %1423  ;;  %v1806_v19 = vpop.permute.xlu1 %1805 }
 0x231   : > { %v2109_v62 = vsel %vm6069_vm1, %v2076_v47, %v1806_v19  ;;  %v2011_v20 = vsel %vm1986_vm11, %v1978_v49, %v1424_v9  ;;  %v1913_v9 = vsel %vm6074_vm2, %v1880_v15, %v5370_v25 }
 0x232   : > { %3861 = vmatmul.mubr.msk.f32.gmra.mrb[22].mxu0 %vm2123_vm3, %v2109_v62 }
 0x234   : > { %v918_v30 = vpop.permute.xlu0 %917  ;;  %v1044_v59 = vpop.permute.xlu1 %1043 }
 0x238   : > { %v1426_v1 = vpop.permute.xlu0 %1425  ;;  %v1552_v7 = vpop.permute.xlu1 %1551 }
 0x239   : > { %v2044_v19 = vsel %vm6070_vm12, %v2011_v20, %v1552_v7  ;;  %v1946_v7 = vsel %vm1920_vm9, %v1913_v9, %v1170_v42 }
 0x23a   : > { %v1979_v13 = vsel %vm6071_vm10, %v1946_v7, %v1298_v21 }
 0x23b   : > { %v2012_v24 = vsel %vm1986_vm11, %v1979_v13, %v1426_v1  ;;  %v1881_v1 = vsel %vm6072_vm0, %v5115_v39, %v916_v58 }
 0x23c   : > { %v1046_v16 = vpop.permute.xlu0 %1045  ;;  %v1172_v40 = vpop.permute.xlu1 %1171 }
 0x240   : > { %v1554_v45 = vpop.permute.xlu0 %1553  ;;  %v1680_v60 = vpop.permute.xlu1 %1679 }
 0x241   : > { %v2077_v3 = vsel %vm2052_vm13, %v2044_v19, %v1680_v60  ;;  %v2045_v49 = vsel %vm6070_vm12, %v2012_v24, %v1554_v45  ;;  %v1914_v45 = vsel %vm6074_vm2, %v1881_v1, %v1044_v59 }
 0x244   : > { %v1174_v48 = vpop.permute.xlu0 %1173  ;;  %v1300_v8 = vpop.permute.xlu1 %1299 }
 0x246   : > { %v5422_v47 = vpop.f32.mrb[10].mxu0 }
 0x247   : > { %v5425_v62 = vpop.f32.mrb[11].mxu0 }
 0x248   : > { %v1682_v26 = vpop.permute.xlu0 %1681  ;;  %v1808_v5 = vpop.permute.xlu1 %1807 }
 0x249   : > { %v2110_v55 = vsel %vm6069_vm1, %v2077_v3, %v1808_v5  ;;  %v2078_v3 = vsel %vm2052_vm13, %v2045_v49, %v1682_v26  ;;  %v1947_v26 = vsel %vm1920_vm9, %v1914_v45, %v1172_v40 }
 0x24a   : > { %3863 = vmatprep.mubr.msk.f32.mxu0 %vm2123_vm3, %v2110_v55  ;;  %v1980_v24 = vsel %vm6071_vm10, %v1947_v26, %v1300_v8  ;;  %v1882_v8 = vsel %vm6072_vm0, %v5144_v56, %v918_v30 }
 0x24c   : > { %v920_v12 = vpop.permute.xlu0 %919  ;;  %v1302_v60 = vpop.permute.xlu1 %1301 }
 0x250   : > { %v1428_v20 = vpop.permute.xlu0 %1427  ;;  %v1810_v19 = vpop.permute.xlu1 %1809 }
 0x251   : > { %v2111_v17 = vsel %vm6069_vm1, %v2078_v3, %v1810_v19  ;;  %v2013_v49 = vsel %vm1986_vm11, %v1980_v24, %v1428_v20  ;;  %v1915_v20 = vsel %vm6074_vm2, %v1882_v8, %v1046_v16 }
 0x252   : > { %3864 = vmatmul.mubr.msk.f32.gmra.mrb[24].mxu0 %vm2123_vm3, %v2111_v17 }
 0x254   : > { %v922_v23 = vpop.permute.xlu0 %921  ;;  %v1048_v25 = vpop.permute.xlu1 %1047 }
 0x258   : > { %v1430_v5 = vpop.permute.xlu0 %1429  ;;  %v1556_v42 = vpop.permute.xlu1 %1555 }
 0x259   : > { %v2046_v19 = vsel %vm6070_vm12, %v2013_v49, %v1556_v42  ;;  %v1948_v42 = vsel %vm1920_vm9, %v1915_v20, %v1174_v48 }
 0x25c   : > { %v1050_v55 = vpop.permute.xlu0 %1049  ;;  %v1176_v15 = vpop.permute.xlu1 %1175 }
 0x260   : > { %v1558_v9 = vpop.permute.xlu0 %1557  ;;  %v1684_v21 = vpop.permute.xlu1 %1683 }
 0x261   : > { %v2079_v33 = vsel %vm2052_vm13, %v2046_v19, %v1684_v21  ;;  %v1981_v21 = vsel %vm6071_vm10, %v1948_v42, %v1302_v60 }
 0x262   : > { %v2014_v26 = vsel %vm1986_vm11, %v1981_v21, %v1430_v5  ;;  %v1883_v5 = vsel %vm6072_vm0, %v5183_v29, %v920_v12 }
 0x263   : > { %v2047_v24 = vsel %vm6070_vm12, %v2014_v26, %v1558_v9  ;;  %v1916_v9 = vsel %vm6074_vm2, %v1883_v5, %v1048_v25 }
 0x264   : > { %v1178_v7 = vpop.permute.xlu0 %1177  ;;  %v1304_v13 = vpop.permute.xlu1 %1303 }
 0x266   : > { %v5450_v3 = vpop.f32.mrb[12].mxu0 }
 0x267   : > { %v5453_v17 = vpop.f32.mrb[13].mxu0 }
 0x268   : > { %v1686_v58 = vpop.permute.xlu0 %1685  ;;  %v1812_v59 = vpop.permute.xlu1 %1811 }
 0x269   : > { %v2112_v40 = vsel %vm6069_vm1, %v2079_v33, %v1812_v59  ;;  %v2080_v49 = vsel %vm2052_vm13, %v2047_v24, %v1686_v58  ;;  %v1949_v58 = vsel %vm1920_vm9, %v1916_v9, %v1176_v15 }
 0x26a   : > { %3866 = vmatprep.mubr.msk.f32.mxu0 %vm2123_vm3, %v2112_v40  ;;  %v1982_v26 = vsel %vm6071_vm10, %v1949_v58, %v1304_v13  ;;  %v1884_v13 = vsel %vm6072_vm0, %v5212_v27, %v922_v23 }
 0x26c   : > { %v924_v1 = vpop.permute.xlu0 %923  ;;  %v1306_v45 = vpop.permute.xlu1 %1305 }
 0x270   : > { %v1432_v33 = vpop.permute.xlu0 %1431  ;;  %v1814_v19 = vpop.permute.xlu1 %1813 }
 0x271   : > { %v2113_v56 = vsel %vm6069_vm1, %v2080_v49, %v1814_v19  ;;  %v2015_v24 = vsel %vm1986_vm11, %v1982_v26, %v1432_v33  ;;  %v1917_v33 = vsel %vm6074_vm2, %v1884_v13, %v1050_v55 }
 0x272   : > { %3867 = vmatmul.mubr.msk.f32.gmra.mrb[26].mxu0 %vm2123_vm3, %v2113_v56 }
 0x274   : > { %v926_v30 = vpop.permute.xlu0 %925  ;;  %v1052_v16 = vpop.permute.xlu1 %1051 }
 0x278   : > { %v1434_v59 = vpop.permute.xlu0 %1433  ;;  %v1560_v48 = vpop.permute.xlu1 %1559 }
 0x279   : > { %v2048_v19 = vsel %vm6070_vm12, %v2015_v24, %v1560_v48  ;;  %v1950_v48 = vsel %vm1920_vm9, %v1917_v33, %v1178_v7  ;;  %v1885_v7 = vsel %vm6072_vm0, %v5251_v52, %v924_v1 }
 0x27c   : > { %v1054_v40 = vpop.permute.xlu0 %1053  ;;  %v1180_v8 = vpop.permute.xlu1 %1179 }
 0x280   : > { %v1562_v20 = vpop.permute.xlu0 %1561  ;;  %v1688_v60 = vpop.permute.xlu1 %1687 }
 0x281   : > { %v2081_v39 = vsel %vm2052_vm13, %v2048_v19, %v1688_v60  ;;  %v1983_v60 = vsel %vm6071_vm10, %v1950_v48, %v1306_v45  ;;  %v1886_v45 = vsel %vm6072_vm0, %v5280_v14, %v926_v30 }
 0x282   : > { %v2016_v58 = vsel %vm1986_vm11, %v1983_v60, %v1434_v59  ;;  %v1918_v59 = vsel %vm6074_vm2, %v1885_v7, %v1052_v16 }
 0x283   : > { %v2049_v26 = vsel %vm6070_vm12, %v2016_v58, %v1562_v20  ;;  %v1919_v20 = vsel %vm6074_vm2, %v1886_v45, %v1054_v40  ;;  %v6093_v45 = vpack.c.bf16 %v5259_v4, %v5265_v6 }
 0x284   : > { %v1182_v42 = vpop.permute.xlu0 %1181  ;;  %v1308_v21 = vpop.permute.xlu1 %1307 }
 0x286   : > { %v5476_v49 = vpop.f32.mrb[14].mxu0 }
 0x287   : > { %v5479_v56 = vpop.f32.mrb[15].mxu0 }
 0x288   : > { %v3957_v29 = vpack.c.bf16 %v5476_v49, %v5479_v56  ;;  %v1690_v12 = vpop.permute.xlu0 %1689  ;;  %v1816_v25 = vpop.permute.xlu1 %1815  ;;  %v6108_v49 = vld [vmem:[#allocation17_spill] sm:$0xff] }
 0x289   : > { %v2114_v15 = vsel %vm6069_vm1, %v2081_v39, %v1816_v25  ;;  %v2082_v24 = vsel %vm2052_vm13, %v2049_v26, %v1690_v12  ;;  %v1951_v12 = vsel %vm1920_vm9, %v1918_v59, %v1180_v8  ;;  %v1952_v25 = vsel %vm1920_vm9, %v1919_v20, %v1182_v42 }
 0x28a   : > { %3869 = vmatprep.mubr.msk.f32.mxu0 %vm2123_vm3, %v2114_v15  ;;  %v1984_v33 = vsel %vm6071_vm10, %v1951_v12, %v1308_v21  ;;  %v6091_v26 = vpack.c.bf16 %v5123_v34, %v5129_v18  ;;  %v6094_v59 = vlaneseq  ;;  %v5532_v18 = vmul.u32 2, %v4223_v2 }
 0x28c   : > { %v1310_v5 = vpop.permute.xlu0 %1309  ;;  %v1436_v9 = vpop.permute.xlu1 %1435  ;;  %v5526_v20 = vand.u32 127, %v6094_v59  ;;  %v5550_v4 = vadd.s32 64, %v5532_v18  ;;  %v5557_v6 = vadd.s32 96, %v5532_v18  ;;  %v6115_v59 = vmov 0.0  }
 0x28d   : > { %v1985_v48 = vsel %vm6071_vm10, %v1952_v25, %v1310_v5  ;;  %v2017_v60 = vsel %vm1986_vm11, %v1984_v33, %v1436_v9  ;;  %v6095_v33 = vpack.c.bf16 %v5327_v44, %v5332_v54  ;;  %v5588_v44 = vadd.s32 224, %v5532_v18 }
 0x28e   : > { %v5529_v34 = vadd.s32 128, %v5526_v20  ;;  %vm2466_vm5 = vcmp.eq.s32.totalorder %v5526_v20, %v5550_v4  ;;  %vm2468_vm7 = vcmp.eq.s32.totalorder %v5526_v20, %v5557_v6 }
 0x28f   : > { %vm2476_vm2 = vcmp.eq.s32.totalorder %v5526_v20, %v5588_v44 }
 0x290   : > { %v1818_v39 = vpop.permute.xlu0 %1817  ;;  %v1438_v19 = vpop.permute.xlu1 %1437  ;;  %vm2463_vm9 = vcmp.eq.s32.totalorder %v5529_v34, %v5532_v18  ;;  %vm2467_vm4 = vcmp.eq.s32.totalorder %v5529_v34, %v5550_v4  ;;  %vm2469_vm6 = vcmp.eq.s32.totalorder %v5529_v34, %v5557_v6  ;;  %vm2477_vm15 = vcmp.eq.s32.totalorder %v5529_v34, %v5588_v44  ;;  %v2720_v4 = vld [vmem:[%s6044_s3] sm:$0x3] }
 0x291   : > { %v2115_v27 = vsel %vm6069_vm1, %v2082_v24, %v1818_v39  ;;  %v2018_v52 = vsel %vm1986_vm11, %v1985_v48, %v1438_v19  ;;  %vm2462_vm11 = vcmp.eq.s32.totalorder %v5526_v20, %v5532_v18  ;;  %v5574_v48 = vadd.s32 160, %v5532_v18 }
 0x292   : > { %3870 = vmatmul.mubr.msk.f32.gmra.mrb[28].mxu0 %vm2123_vm3, %v2115_v27  ;;  %v6092_v27 = vpack.c.bf16 %v5191_v0, %v5197_v22  ;;  %v4064_v0 = vmov 1.0   ;;  %v5543_v22 = vadd.s32 32, %v5532_v18 }
 0x293   : > { %3589 = vmatprep.mubr.msk.f32.mxu1 %vm2463_vm9, %v4064_v0 }
 0x294   : > { %v1564_v23 = vpop.permute.xlu0 %1563  ;;  %v1566_v55 = vpop.permute.xlu1 %1565 }
 0x295   : > { %v2050_v14 = vsel %vm6070_vm12, %v2017_v60, %v1564_v23  ;;  %v2051_v1 = vsel %vm6070_vm12, %v2018_v52, %v1566_v55  ;;  %vm2472_vm12 = vcmp.eq.s32.totalorder %v5526_v20, %v5574_v48  ;;  %v5581_v60 = vadd.s32 192, %v5532_v18 }
 0x297   : > { %vm2475_vm10 = vcmp.eq.s32.totalorder %v5529_v34, %v5581_v60  ;;  %vm2474_vm0 = vcmp.eq.s32.totalorder %v5526_v20, %v5581_v60 }
 0x298   : > { %v1692_v15 = vpop.permute.xlu0 %1691  ;;  %v1694_v13 = vpop.permute.xlu1 %1693 }
 0x299   : > { %v2083_v30 = vsel %vm2052_vm13, %v2050_v14, %v1692_v15  ;;  %v2084_v16 = vsel %vm2052_vm13, %v2051_v1, %v1694_v13  ;;  %vm2465_vm13 = vcmp.eq.s32.totalorder %v5529_v34, %v5543_v22  ;;  %v5564_v15 = vadd.s32 128, %v5532_v18 }
 0x29a   : > { %v6096_v1 = vpack.c.bf16 %v5386_v35, %v5391_v61  ;;  %v3959_v61 = vpack.c.bf16 %v4508_v43, %v4490_v31  ;;  %v3965_v31 = vpack.c.bf16 %v4309_v46, %v4304_v41  ;;  %v3971_v41 = vpack.c.bf16 %v4733_v38, %v4705_v10  ;;  %v6105_v10 = vld [vmem:[#allocation6_spill] sm:$0xff]  ;;  %v6106_v38 = vld [vmem:[#allocation7_spill] sm:$0xff] }
 0x29b   : > { %vm2471_vm8 = vcmp.eq.s32.totalorder %v5529_v34, %v5564_v15  ;;  %vm2470_vm14 = vcmp.eq.s32.totalorder %v5526_v20, %v5564_v15  ;;  %v3973_v46 = vpack.c.bf16 %v4330_v57, %v4324_v53  ;;  %v6103_v53 = vld [vmem:[#allocation14_spill] sm:$0xff]  ;;  %v6104_v57 = vld [vmem:[#allocation15_spill] sm:$0xff] }
 0x29c   : > { %v1820_v40 = vpop.permute.xlu0 %1819  ;;  %v1822_v8 = vpop.permute.xlu1 %1821 }
 0x29d   : > { %v2116_v42 = vsel %vm6069_vm1, %v2083_v30, %v1820_v40  ;;  %v2117_v21 = vsel %vm6069_vm1, %v2084_v16, %v1822_v8  ;;  %vm2473_vm1 = vcmp.eq.s32.totalorder %v5529_v34, %v5574_v48  ;;  %v6097_v8 = vpack.c.bf16 %v5422_v47, %v5425_v62 }
 0x29e   : > { %3872 = vmatprep.mubr.msk.f32.mxu0 %vm2123_vm3, %v2116_v42  ;;  %v3961_v47 = vpack.c.bf16 %v4295_v37, %v4293_v36  ;;  %v3963_v62 = vpack.c.bf16 %v4570_v28, %v4546_v32  ;;  %v3967_v36 = vpack.c.bf16 %v4651_v11, %v4623_v63  ;;  %v3969_v37 = vpack.c.bf16 %v4317_v51, %v4315_v50  ;;  %v6099_v50 = vld [vmem:[#allocation12_spill] sm:$0xff]  ;;  %v6100_v51 = vld [vmem:[#allocation13_spill] sm:$0xff] }
 0x29f   : > { %3873 = vmatmul.mubr.msk.f32.gmra.mrb[30].mxu0 %vm2123_vm3, %v2117_v21  ;;  %vm2464_vm3 = vcmp.eq.s32.totalorder %v5526_v20, %v5543_v22  ;;  %v3975_v43 = vpack.c.bf16 %v6100_v51, %v6099_v50  ;;  %v6101_v32 = vld [vmem:[#allocation4_spill] sm:$0xff]  ;;  %v6102_v28 = vld [vmem:[#allocation5_spill] sm:$0xff]  ;;  %v3979_v11 = vpack.c.bf16 %v6104_v57, %v6103_v53  ;;  %v2855_v22 = vld [vmem:[#allocation3 + $0x90] sm:$0xff] }
 0x2a0   : > { %v3977_v63 = vpack.c.bf16 %v6102_v28, %v6101_v32  ;;  %3054 = vrot.lane.b32.xlu1 %v2855_v22, %s4067_s27 }
 0x2a6   : > { %v3853_v5 = vpop.f32.mrb[16].mxu0 }
 0x2a7   : > { %v2370_v9 = vpop.f32.mrb[17].mxu0 }
 0x2a8   : > { %v3927_v58 = vpack.c.bf16 %v3853_v5, %v2370_v9  ;;  %v6098_v9 = vpack.c.bf16 %v5450_v3, %v5453_v17  ;;  %v3981_v3 = vpack.c.bf16 %v6106_v38, %v6105_v10  ;;  %v6107_v17 = vld [vmem:[#allocation16_spill] sm:$0xff] }
 0x2a9   : > { %v3983_v56 = vpack.c.bf16 %v6108_v49, %v6107_v17 }
 0x2aa   : > { %3928 = vmatprep.subr.bf16.mxu1 %v3927_v58 }
 0x2ab   : > { %3930 = vmatpush3.bf16.msra.mxu1 %v6091_v26 }
 0x2c6   : > { %v3856_v24 = vpop.f32.mrb[18].mxu0 }
 0x2c7   : > { %v2380_v39 = vpop.f32.mrb[19].mxu0 }
 0x2c8   : > { %v3931_v19 = vpack.c.bf16 %v3856_v24, %v2380_v39  ;;  %v6110_v24 = vld [vmem:[#allocation9_spill] sm:$0xff] }
 0x2ca   : > { %3932 = vmatprep.subr.bf16.mxu1 %v3931_v19  ;;  %v6111_v19 = vld [vmem:[#allocation18_spill] sm:$0xff] }
 0x2cb   : > { %3934 = vmatpush3.bf16.msra.mxu1 %v6092_v27  ;;  %v6112_v27 = vld [vmem:[#allocation19_spill] sm:$0xff] }
 0x2e6   : > { %v3859_v23 = vpop.f32.mrb[20].mxu0 }
 0x2e7   : > { %v2390_v55 = vpop.f32.mrb[21].mxu0 }
 0x2e8   : > { %v3935_v7 = vpack.c.bf16 %v3859_v23, %v2390_v55  ;;  %v3987_v23 = vpack.c.bf16 %v6112_v27, %v6111_v19  ;;  %v6113_v55 = vld [vmem:[#allocation10_spill] sm:$0xff] }
 0x2ea   : > { %3936 = vmatprep.subr.bf16.mxu1 %v3935_v7  ;;  %v6114_v7 = vld [vmem:[#allocation11_spill] sm:$0xff] }
 0x2eb   : > { %3938 = vmatpush3.bf16.msra.mxu1 %v6093_v45  ;;  %v3989_v45 = vpack.c.bf16 %v6114_v7, %v6113_v55 }
 0x305   : > { %v3862_v12 = vpop.f32.mrb[22].mxu0 }
 0x306   : > { %v2400_v25 = vpop.f32.mrb[23].mxu0 }
 0x307   : > { %v3939_v13 = vpack.c.bf16 %v3862_v12, %v2400_v25  ;;  %v6116_v12 = vsub.s32 0, %v4223_v2 }
 0x309   : > { %3940 = vmatprep.subr.bf16.mxu1 %v3939_v13  ;;  %v5782_v25 = vrot.slane %v2720_v4, %v6116_v12 }
 0x30a   : > { %3942 = vmatpush3.bf16.msra.mxu1 %v6095_v33  ;;  %v6117_v33 = vsub.s32 1, %v4223_v2 }
 0x30c   : > { %v5786_v48 = vrot.slane %v2720_v4, %v6117_v33 }
 0x325   : > { %v3865_v54 = vpop.f32.mrb[24].mxu0 }
 0x326   : > { %v2410_v52 = vpop.f32.mrb[25].mxu0 }
 0x327   : > { %v3943_v14 = vpack.c.bf16 %v3865_v54, %v2410_v52 }
 0x329   : > { %3944 = vmatprep.subr.bf16.mxu1 %v3943_v14 }
 0x32a   : > { %3946 = vmatpush3.bf16.msra.mxu1 %v6096_v1 }
 0x345   : > { %v3868_v30 = vpop.f32.mrb[26].mxu0 }
 0x346   : > { %v2420_v16 = vpop.f32.mrb[27].mxu0 }
 0x347   : > { %v3947_v40 = vpack.c.bf16 %v3868_v30, %v2420_v16 }
 0x349   : > { %3948 = vmatprep.subr.bf16.mxu1 %v3947_v40 }
 0x34a   : > { %3950 = vmatpush3.bf16.msra.mxu1 %v6097_v8 }
 0x365   : > { %v3871_v42 = vpop.f32.mrb[28].mxu0 }
 0x366   : > { %v2430_v21 = vpop.f32.mrb[29].mxu0 }
 0x367   : > { %v3951_v5 = vpack.c.bf16 %v3871_v42, %v2430_v21 }
 0x369   : > { %3952 = vmatprep.subr.bf16.mxu1 %v3951_v5 }
 0x36a   : > { %3954 = vmatpush3.bf16.msra.mxu1 %v6098_v9 }
 0x372   : > { %v3874_v58 = vpop.f32.mrb[30].mxu0 }
 0x373   : > { %v2440_v26 = vpop.f32.mrb[31].mxu0 }
 0x374   : > { %v3955_v35 = vpack.c.bf16 %v3874_v58, %v2440_v26 }
 0x376   : > { %3956 = vmatprep.subr.bf16.mxu1 %v3955_v35 }
 0x377   : > { %3958 = vmatpush3.bf16.msra.mxu1 %v3957_v29  ;;  %v6109_v29 = vld [vmem:[#allocation8_spill] sm:$0xff] }
 0x378   : > { %3960 = vmatprep.subr.bf16.mxu1 %v3959_v61  ;;  %v3985_v39 = vpack.c.bf16 %v6110_v24, %v6109_v29  ;;  %v3196_v29 = vld [vmem:[%s6045_s4] sm:$0xff]  ;;  %v3197_v24 = vld [vmem:[%s6045_s4 + $0x8] sm:$0xff] }
 0x379   : > { %v3991_v19 = vpack.c.bf16 %v3197_v24, %v3196_v29 }
 0x37a   : > { %3590 = vmatmul.mubr.msk.f32.vlgmr.msra.gmra.mrb[0].mxu1 %vm2462_vm11, %v4064_v0 }
 0x37b   : > { %3591 = vmatprep.mubr.msk.f32.mxu1 %vm2465_vm13, %v4064_v0  ;;  %3962 = vmatpush3.bf16.msra.mxu1 %v3961_v47 }
 0x37c   : > { %3964 = vmatprep.subr.bf16.mxu1 %v3963_v62 }
 0x37e   : > { %3592 = vmatmul.mubr.msk.f32.gmra.mrb[2].mxu1 %vm2464_vm3, %v4064_v0 }
 0x37f   : > { %3593 = vmatprep.mubr.msk.f32.mxu1 %vm2467_vm4, %v4064_v0  ;;  %3966 = vmatpush3.bf16.msra.mxu1 %v3965_v31 }
 0x380   : > { %3968 = vmatprep.subr.bf16.mxu1 %v3967_v36 }
 0x382   : > { %3594 = vmatmul.mubr.msk.f32.gmra.mrb[4].mxu1 %vm2466_vm5, %v4064_v0 }
 0x383   : > { %3595 = vmatprep.mubr.msk.f32.mxu1 %vm2469_vm6, %v4064_v0  ;;  %3970 = vmatpush3.bf16.msra.mxu1 %v3969_v37 }
 0x384   : > { %3972 = vmatprep.subr.bf16.mxu1 %v3971_v41 }
 0x386   : > { %3596 = vmatmul.mubr.msk.f32.gmra.mrb[6].mxu1 %vm2468_vm7, %v4064_v0 }
 0x387   : > { %3597 = vmatprep.mubr.msk.f32.mxu1 %vm2471_vm8, %v4064_v0  ;;  %3974 = vmatpush3.bf16.msra.mxu1 %v3973_v46 }
 0x388   : > { %3976 = vmatprep.subr.bf16.mxu1 %v3975_v43  ;;  %v3205_v43 = vld [vmem:[%s6046_s5] sm:$0xf] }
 0x38a   : > { %3598 = vmatmul.mubr.msk.f32.gmra.mrb[8].mxu1 %vm2470_vm14, %v4064_v0 }
 0x38b   : > { %3599 = vmatprep.mubr.msk.f32.mxu1 %vm2473_vm1, %v4064_v0  ;;  %3978 = vmatpush3.bf16.msra.mxu1 %v3977_v63 }
 0x38c   : > { %3980 = vmatprep.subr.bf16.mxu1 %v3979_v11 }
 0x38e   : > { %3600 = vmatmul.mubr.msk.f32.gmra.mrb[10].mxu1 %vm2472_vm12, %v4064_v0 }
 0x38f   : > { %3601 = vmatprep.mubr.msk.f32.mxu1 %vm2475_vm10, %v4064_v0  ;;  %3982 = vmatpush3.bf16.msra.mxu1 %v3981_v3 }
 0x390   : > { %3984 = vmatprep.subr.bf16.mxu1 %v3983_v56 }
 0x392   : > { %3602 = vmatmul.mubr.msk.f32.gmra.mrb[12].mxu1 %vm2474_vm0, %v4064_v0 }
 0x393   : > { %3603 = vmatprep.mubr.msk.f32.mxu1 %vm2477_vm15, %v4064_v0  ;;  %3986 = vmatpush3.bf16.msra.mxu1 %v3985_v39 }
 0x394   : > { %3988 = vmatprep.subr.bf16.mxu1 %v3987_v23 }
 0x396   : > { %3604 = vmatmul.mubr.msk.f32.gmra.mrb[14].mxu1 %vm2476_vm2, %v4064_v0 }
 0x397   : > { %3990 = vmatpush3.bf16.msra.mxu1 %v3989_v45  ;;  %3605 = vmatprep.mubr.msk.f32.mxu1 %vm2463_vm9, %v4064_v0 }
 0x398   : > { %4007 = vmatprep.subr.bf16.mxu1 %v3991_v19 }
 0x39a   : > { %3606 = vmatmul.mubr.msk.f32.vlgmr.msra.gmra.mrb[16].mxu1 %vm2462_vm11, %v4064_v0 }
 0x39b   : > { %3607 = vmatprep.mubr.msk.f32.mxu1 %vm2465_vm13, %v4064_v0  ;;  %vm6121_vm13 = vcmask 1043456   ;;  %4012 = vmatpush3.bf16.msra.mxu1 %v3991_v19 }
 0x39c   : > { %3875 = vmatprep.subr.msk.mxu0 %vm6121_vm13, %v3205_v43 }
 0x39e   : > { %3608 = vmatmul.mubr.msk.f32.gmra.mrb[18].mxu1 %vm2464_vm3, %v4064_v0  ;;  %vm6122_vm3 = vmmov %vm6121_vm13 }
 0x39f   : > { %3609 = vmatprep.mubr.msk.f32.mxu1 %vm2467_vm4, %v4064_v0  ;;  %3876 = vmatpush3.msk.msra.mxu0 %vm6122_vm3, %v3205_v43 }
 0x3a0   : > { %3992 = vmatprep.subr.bf16.mxu0 %v3991_v19 }
 0x3a2   : > { %3610 = vmatmul.mubr.msk.f32.gmra.mrb[20].mxu1 %vm2466_vm5, %v4064_v0 }
 0x3a3   : > { %3611 = vmatprep.mubr.msk.f32.mxu1 %vm2469_vm6, %v4064_v0 }
 0x3a6   : > { %3612 = vmatmul.mubr.msk.f32.gmra.mrb[22].mxu1 %vm2468_vm7, %v4064_v0 }
 0x3a7   : > { %3613 = vmatprep.mubr.msk.f32.mxu1 %vm2471_vm8, %v4064_v0 }
 0x3aa   : > { %3614 = vmatmul.mubr.msk.f32.gmra.mrb[24].mxu1 %vm2470_vm14, %v4064_v0 }
 0x3ab   : > { %3615 = vmatprep.mubr.msk.f32.mxu1 %vm2473_vm1, %v4064_v0 }
 0x3ae   : > { %3616 = vmatmul.mubr.msk.f32.gmra.mrb[26].mxu1 %vm2472_vm12, %v4064_v0  ;;  %vm2770_vm12 = vcmask 58368  }
 0x3af   : > { %3617 = vmatprep.mubr.msk.f32.mxu1 %vm2475_vm10, %v4064_v0  ;;  %2773 = vst.msk [vmem:[#allocation3 + $0x18] sm:$0x3] %vm2770_vm12, %v6115_v59  ;;  %2771 = vst.msk [vmem:[#allocation3 + $0x8] sm:$0x3] %vm2770_vm12, %v6115_v59 }
 0x3b0   : > { %2775 = vst.msk [vmem:[#allocation3 + $0x28] sm:$0x3] %vm2770_vm12, %v6115_v59  ;;  %2777 = vst.msk [vmem:[#allocation3 + $0x38] sm:$0x3] %vm2770_vm12, %v6115_v59 }
 0x3b1   : > { %2779 = vst.msk [vmem:[#allocation3 + $0x48] sm:$0x3] %vm2770_vm12, %v6115_v59  ;;  %2781 = vst.msk [vmem:[#allocation3 + $0x58] sm:$0x3] %vm2770_vm12, %v6115_v59 }
 0x3b2   : > { %3618 = vmatmul.mubr.msk.f32.gmra.mrb[28].mxu1 %vm2474_vm0, %v4064_v0  ;;  %2783 = vst.msk [vmem:[#allocation3 + $0x68] sm:$0x3] %vm2770_vm12, %v6115_v59  ;;  %2785 = vst.msk [vmem:[#allocation3 + $0x78] sm:$0x3] %vm2770_vm12, %v6115_v59 }
 0x3b3   : > { %3619 = vmatprep.mubr.msk.f32.mxu1 %vm2477_vm15, %v4064_v0  ;;  %2787 = vst.msk [vmem:[#allocation3 + $0x88] sm:$0x3] %vm2770_vm12, %v6115_v59  ;;  %2789 = vst.msk [vmem:[#allocation3 + $0x98] sm:$0x3] %vm2770_vm12, %v6115_v59 }
 0x3b6   : > { %3620 = vmatmul.mubr.msk.f32.gmra.mrb[30].mxu1 %vm2476_vm2, %v4064_v0  ;;  %v2807_v20 = vld [vmem:[#allocation3 + $0x1] sm:$0xff]  ;;  %vm6118_vm2 = vcmask 64512  }
 0x3b7   : > { %2880 = vrot.lane.b32.xlu0 %v2807_v20, %s4056_s29  ;;  %v2815_v34 = vld [vmem:[#allocation3 + $0x2] sm:$0xff]  ;;  %vm6119_vm10 = vmmov %vm6118_vm2 }
 0x3b8   : > { %vm6120_vm9 = vmmov %vm6118_vm2  ;;  %v3198_v20 = vld [vmem:[%s6045_s4 + $0x10] sm:$0xff] }
 0x3b9   : > { %vm6123_vm4 = vmmov %vm6118_vm2 }
 0x3ba   : > { %v2863_v18 = vld [vmem:[#allocation3 + $0x91] sm:$0xff]  ;;  %vm6124_vm6 = vmmov %vm6118_vm2 }
 0x3bb   : > { %2912 = vrot.lane.b32.xlu0 %v2815_v34, %s4059_s8  ;;  %v2871_v0 = vld [vmem:[#allocation3 + $0x92] sm:$0xff]  ;;  %v3199_v34 = vld [vmem:[%s6045_s4 + $0x18] sm:$0xff]  ;;  %vm6125_vm8 = vmmov %vm6118_vm2 }
 0x3bc   : > { %vm6126_vm12 = vmmov %vm6118_vm2 }
 0x3bf   : > { %3086 = vrot.lane.b32.xlu0 %v2863_v18, %s4065_s25 }
 0x3c3   : > { %3118 = vrot.lane.b32.xlu0 %v2871_v0, %s4066_s26 }
 0x44d   : > { %v3711_v6 = vpop.f32.mrb[0].mxu1 }
 0x44e   : > { %v3712_v15 = vpop.f32.mrb[1].mxu1 }
 0x44f   : > { %v3713_v13 = vadd.f32 %v3712_v15, %v3711_v6  ;;  %v3995_v15 = vpack.c.bf16 %v3199_v34, %v3198_v20 }
 0x451   : > { %v2725_v60 = vmul.f32 %v3713_v13, %v5782_v25  ;;  %v3714_v44 = vpop.f32.mrb[2].mxu1  ;;  %4008 = vmatprep.subr.bf16.mxu1 %v3995_v15 }
 0x452   : > { %v3715_v54 = vpop.f32.mrb[3].mxu1  ;;  %4013 = vmatpush3.bf16.msra.mxu1 %v3995_v15 }
 0x453   : > { %v2737_v52 = vadd.f32 %v5786_v48, %v2725_v60  ;;  %v3716_v14 = vadd.f32 %v3715_v54, %v3714_v44  ;;  %v3200_v44 = vld [vmem:[%s6045_s4 + $0x20] sm:$0xff] }
 0x455   : > { %vm2745_vm0 = vcmp.gt.f32.partialorder %v2737_v52, 0.0  ;;  %v2753_v1 = vmul.f32 0.1, %v2737_v52  ;;  %v2726_v30 = vmul.f32 %v3716_v14, %v5782_v25  ;;  %v3717_v16 = vpop.f32.mrb[4].mxu1 }
 0x456   : > { %v3718_v40 = vpop.f32.mrb[5].mxu1 }
 0x457   : > { %v2761_v8 = vsel %vm2745_vm0, %v2737_v52, %v2753_v1  ;;  %v2738_v42 = vadd.f32 %v5786_v48, %v2726_v30  ;;  %v3719_v21 = vadd.f32 %v3718_v40, %v3717_v16  ;;  %v3201_v52 = vld [vmem:[%s6045_s4 + $0x28] sm:$0xff] }
 0x458   : > { %2791 = vst.msk [vmem:[#allocation3 + $0x11] sm:$0xff] %vm6118_vm2, %v2761_v8  ;;  %v3999_v16 = vpack.c.bf16 %v3201_v52, %v3200_v44  ;;  %vm6127_vm2 = vcmask 31744   ;;  %v3202_v8 = vld [vmem:[%s6045_s4 + $0x30] sm:$0xff] }
 0x459   : > { %vm2746_vm15 = vcmp.gt.f32.partialorder %v2738_v42, 0.0  ;;  %v2754_v2 = vmul.f32 0.1, %v2738_v42  ;;  %v2727_v5 = vmul.f32 %v3719_v21, %v5782_v25  ;;  %v3720_v9 = vpop.f32.mrb[6].mxu1 }
 0x45a   : > { %v3721_v58 = vpop.f32.mrb[7].mxu1  ;;  %4009 = vmatprep.subr.bf16.mxu1 %v3999_v16 }
 0x45b   : > { %v2762_v26 = vsel %vm2746_vm15, %v2738_v42, %v2754_v2  ;;  %v2739_v35 = vadd.f32 %v5786_v48, %v2727_v5  ;;  %v3722_v61 = vadd.f32 %v3721_v58, %v3720_v9  ;;  %4014 = vmatpush3.bf16.msra.mxu1 %v3999_v16  ;;  %vm6128_vm15 = vmmov %vm6123_vm4 }
 0x45c   : > { %2792 = vst.msk [vmem:[#allocation3 + $0x21] sm:$0xff] %vm6119_vm10, %v2762_v26  ;;  %vm6129_vm10 = vmmov %vm6127_vm2 }
 0x45d   : > { %vm2747_vm1 = vcmp.gt.f32.partialorder %v2739_v35, 0.0  ;;  %v2755_v47 = vmul.f32 0.1, %v2739_v35  ;;  %v2728_v62 = vmul.f32 %v3722_v61, %v5782_v25  ;;  %v3723_v31 = vpop.f32.mrb[8].mxu1  ;;  %v3204_v61 = vld [vmem:[%s6045_s4 + $0x40] sm:$0xff] }
 0x45e   : > { %v3724_v36 = vpop.f32.mrb[9].mxu1 }
 0x45f   : > { %v5797_v37 = vld [vmem:[#allocation3 + $0x10] sm:$0xff]  ;;  %v2763_v46 = vsel %vm2747_vm1, %v2739_v35, %v2755_v47  ;;  %v2740_v50 = vadd.f32 %v5786_v48, %v2728_v62  ;;  %v3725_v51 = vadd.f32 %v3724_v36, %v3723_v31  ;;  %vm6130_vm1 = vmmov %vm6127_vm2 }
 0x460   : > { %v2808_v41 = vld [vmem:[#allocation3 + $0x11] sm:$0xff]  ;;  %2944 = vrot.lane.b32.xlu0 %v5797_v37, %s4061_s14  ;;  %2793 = vst.msk [vmem:[#allocation3 + $0x31] sm:$0xff] %vm6120_vm9, %v2763_v46  ;;  %vm6131_vm9 = vmmov %vm6130_vm1 }
 0x461   : > { %2882 = vrot.lane.b32.xlu1 %v2808_v41, %s4056_s29  ;;  %vm2748_vm11 = vcmp.gt.f32.partialorder %v2740_v50, 0.0  ;;  %v2756_v32 = vmul.f32 0.1, %v2740_v50  ;;  %v2729_v28 = vmul.f32 %v3725_v51, %v5782_v25  ;;  %v3726_v63 = vpop.f32.mrb[10].mxu1  ;;  %v2816_v57 = vld [vmem:[#allocation3 + $0x12] sm:$0xff]  ;;  %vm6133_vm13 = vmmov %vm6130_vm1 }
 0x462   : > { %v3727_v53 = vpop.f32.mrb[11].mxu1  ;;  %vm6134_vm3 = vmmov %vm6130_vm1 }
 0x463   : > { %v2764_v11 = vsel %vm2748_vm11, %v2740_v50, %v2756_v32  ;;  %v2741_v10 = vadd.f32 %v5786_v48, %v2729_v28  ;;  %v3728_v38 = vadd.f32 %v3727_v53, %v3726_v63  ;;  %v2832_v3 = vld [vmem:[#allocation3 + $0x21] sm:$0xff]  ;;  %vm6132_vm11 = vmmov %vm6130_vm1 }
 0x464   : > { %2976 = vrot.lane.b32.xlu0 %v2808_v41, %s4063_s24  ;;  %2794 = vst.msk [vmem:[#allocation3 + $0x41] sm:$0xff] %vm6123_vm4, %v2764_v11  ;;  %v2840_v0 = vld [vmem:[#allocation3 + $0x22] sm:$0xff]  ;;  %vm6135_vm4 = vmmov %vm6130_vm1 }
 0x465   : > { %2914 = vrot.lane.b32.xlu1 %v2816_v57, %s4059_s8  ;;  %vm2749_vm5 = vcmp.gt.f32.partialorder %v2741_v10, 0.0  ;;  %v2757_v17 = vmul.f32 0.1, %v2741_v10  ;;  %v2730_v49 = vmul.f32 %v3728_v38, %v5782_v25  ;;  %v3729_v56 = vpop.f32.mrb[12].mxu1  ;;  %v5832_v22 = vld [vmem:[#allocation3 + $0x20] sm:$0xff] }
 0x466   : > { %v3730_v39 = vpop.f32.mrb[13].mxu1 }
 0x467   : > { %v2765_v27 = vsel %vm2749_vm5, %v2741_v10, %v2757_v17  ;;  %v2742_v23 = vadd.f32 %v5786_v48, %v2730_v49  ;;  %v3731_v55 = vadd.f32 %v3730_v39, %v3729_v56  ;;  %v2810_v9 = vld [vmem:[#allocation3 + $0x31] sm:$0xff]  ;;  %vm6136_vm5 = vmmov %vm6124_vm6 }
 0x468   : > { %2978 = vrot.lane.b32.xlu0 %v2832_v3, %s4063_s24  ;;  %2795 = vst.msk [vmem:[#allocation3 + $0x51] sm:$0xff] %vm6124_vm6, %v2765_v27  ;;  %v5868_v31 = vld [vmem:[#allocation3 + $0x30] sm:$0xff]  ;;  %vm6137_vm6 = vcmask 130048  }
 0x469   : > { %3008 = vrot.lane.b32.xlu1 %v2816_v57, %s4068_s15  ;;  %vm2750_vm7 = vcmp.gt.f32.partialorder %v2742_v23, 0.0  ;;  %v2758_v7 = vmul.f32 0.1, %v2742_v23  ;;  %v2731_v45 = vmul.f32 %v3731_v55, %v5782_v25  ;;  %v3732_v59 = vpop.f32.mrb[14].mxu1  ;;  %v2818_v36 = vld [vmem:[#allocation3 + $0x32] sm:$0xff] }
 0x46a   : > { %v3733_v18 = vpop.f32.mrb[15].mxu1 }
 0x46b   : > { %v2766_v4 = vsel %vm2750_vm7, %v2742_v23, %v2758_v7  ;;  %v2743_v6 = vadd.f32 %v5786_v48, %v2731_v45  ;;  %v3734_v12 = vadd.f32 %v3733_v18, %v3732_v59  ;;  %v2834_v63 = vld [vmem:[#allocation3 + $0x41] sm:$0xff]  ;;  %v2881_v7 = vpop.permute.xlu0 %2880  ;;  %vm3160_vm7 = vcmask 326656  }
 0x46c   : > { %3010 = vrot.lane.b32.xlu0 %v2840_v0, %s4068_s15  ;;  %2796 = vst.msk [vmem:[#allocation3 + $0x61] sm:$0xff] %vm6125_vm8, %v2766_v4  ;;  %v5884_v17 = vld [vmem:[#allocation3 + $0x40] sm:$0xff]  ;;  %v5939_v4 = vpop.permute.xlu1 %3054  ;;  %vm6138_vm8 = vcmask 195584  }
 0x46d   : > { %2946 = vrot.lane.b32.xlu1 %v5832_v22, %s4061_s14  ;;  %vm2751_vm14 = vcmp.gt.f32.partialorder %v2743_v6, 0.0  ;;  %v2759_v13 = vmul.f32 0.1, %v2743_v6  ;;  %v2732_v33 = vmul.f32 %v3734_v12, %v5782_v25  ;;  %v3767_v60 = vpop.f32.mrb[16].mxu1 }
 0x46e   : > { %v3768_v54 = vpop.f32.mrb[17].mxu1 }
 0x46f   : > { %v2767_v14 = vsel %vm2751_vm14, %v2743_v6, %v2759_v13  ;;  %v2744_v1 = vadd.f32 %v5786_v48, %v2732_v33  ;;  %v3769_v30 = vadd.f32 %v3768_v54, %v3767_v60  ;;  %v3203_v48 = vld [vmem:[%s6045_s4 + $0x38] sm:$0xff]  ;;  %v2812_v56 = vld [vmem:[#allocation3 + $0x51] sm:$0xff]  ;;  %v2913_v59 = vpop.permute.xlu0 %2912  ;;  %vm3169_vm14 = vcmask 392192  }
 0x470   : > { %3072 = vrot.lane.b32.xlu0 %v2832_v3, %s4065_s25  ;;  %2797 = vst.msk [vmem:[#allocation3 + $0x71] sm:$0xff] %vm6126_vm12, %v2767_v14  ;;  %v4003_v5 = vpack.c.bf16 %v3203_v48, %v3202_v8  ;;  %v5897_v29 = vld [vmem:[#allocation3 + $0x50] sm:$0xff]  ;;  %v2799_v14 = vld [vmem:[#allocation3] sm:$0xff]  ;;  %vm6139_vm12 = vcmask 261120  }
 0x471   : > { %2884 = vrot.lane.b32.xlu1 %v2832_v3, %s4056_s29  ;;  %vm2752_vm0 = vcmp.gt.f32.partialorder %v2744_v1, 0.0  ;;  %v2760_v25 = vmul.f32 0.1, %v2744_v1  ;;  %v3770_v40 = vpop.f32.mrb[18].mxu1  ;;  %3877 = vmatprep.mubr.msk.f32.mxu0 %vm6127_vm2, %v3769_v30  ;;  %v2819_v3 = vld [vmem:[#allocation3 + $0x42] sm:$0xff]  ;;  %v2820_v24 = vld [vmem:[#allocation3 + $0x52] sm:$0xff] }
 0x472   : > { %v3771_v42 = vpop.f32.mrb[19].mxu1  ;;  %4010 = vmatprep.subr.bf16.mxu1 %v4003_v5  ;;  %vm3187_vm2 = vcmask 523264  }
 0x473   : > { %v2768_v21 = vsel %vm2752_vm0, %v2744_v1, %v2760_v25  ;;  %v3772_v2 = vadd.f32 %v3771_v42, %v3770_v40  ;;  %4015 = vmatpush3.bf16.msra.mxu1 %v4003_v5  ;;  %v2813_v39 = vld [vmem:[#allocation3 + $0x61] sm:$0xff]  ;;  %v5931_v34 = vpop.permute.xlu0 %3086  ;;  %vm3178_vm0 = vcmask 457728  }
 0x474   : > { %3104 = vrot.lane.b32.xlu0 %v2840_v0, %s4066_s26  ;;  %2798 = vst.msk [vmem:[#allocation3 + $0x81] sm:$0xff] %vm6128_vm15, %v2768_v21  ;;  %4011 = vmatprep.subr.mxu1 %v3204_v61  ;;  %v5909_v27 = vld [vmem:[#allocation3 + $0x60] sm:$0xff]  ;;  %vm3338_vm15 = vcmask 588800  }
 0x475   : > { %2916 = vrot.lane.b32.xlu1 %v2840_v0, %s4059_s8  ;;  %v3773_v58 = vpop.f32.mrb[20].mxu1  ;;  %3878 = vmatmul.mubr.msk.f32.vlgmr.msra.gmra.mrb[32].mxu0 %vm6129_vm10, %v3772_v2  ;;  %vm6140_vm10 = vmmov %vm6136_vm5 }
 0x476   : > { %v3774_v26 = vpop.f32.mrb[21].mxu1  ;;  %3994 = vmatpush3.bf16.msra.mxu0 %v3991_v19  ;;  %v2821_v19 = vld [vmem:[#allocation3 + $0x62] sm:$0xff] }
 0x477   : > { %v3775_v35 = vadd.f32 %v3774_v26, %v3773_v58  ;;  %3996 = vmatprep.subr.bf16.mxu0 %v3995_v15  ;;  %4016 = vmatpush3.msra.mxu1 %v3204_v61  ;;  %v2822_v23 = vld [vmem:[#allocation3 + $0x72] sm:$0xff]  ;;  %v5937_v0 = vpop.permute.xlu0 %3118 }
 0x478   : > { %2886 = vrot.lane.b32.xlu0 %v2810_v9, %s4056_s29  ;;  %v2837_v55 = vld [vmem:[#allocation3 + $0x71] sm:$0xff] }
 0x479   : > { %3040 = vrot.lane.b32.xlu1 %v5832_v22, %s4067_s27  ;;  %v3776_v47 = vpop.f32.mrb[22].mxu1  ;;  %3880 = vmatprep.mubr.msk.f32.mxu0 %vm6130_vm1, %v3775_v35  ;;  %v5923_v45 = vld [vmem:[#allocation3 + $0x70] sm:$0xff]  ;;  %vm6141_vm1 = vmmov %vm6137_vm6 }
 0x47a   : > { %v3777_v62 = vpop.f32.mrb[23].mxu1  ;;  %3998 = vmatpush3.bf16.msra.mxu0 %v3995_v15 }
 0x47b   : > { %v3778_v41 = vadd.f32 %v3777_v62, %v3776_v47  ;;  %4000 = vmatprep.subr.bf16.mxu0 %v3999_v16  ;;  %v2854_v20 = vld [vmem:[#allocation3 + $0x80] sm:$0xff] }
 0x47c   : > { %2948 = vrot.lane.b32.xlu0 %v5868_v31, %s4061_s14  ;;  %v2862_v18 = vld [vmem:[#allocation3 + $0x81] sm:$0xff] }
 0x47d   : > { %2918 = vrot.lane.b32.xlu1 %v2818_v36, %s4059_s8  ;;  %v3779_v46 = vpop.f32.mrb[24].mxu1  ;;  %3881 = vmatmul.mubr.msk.f32.gmra.mrb[34].mxu0 %vm6131_vm9, %v3778_v41  ;;  %v2846_v6 = vld [vmem:[#allocation3 + $0x82] sm:$0xff]  ;;  %vm6142_vm9 = vmmov %vm6138_vm8 }
 0x47e   : > { %v3780_v50 = vpop.f32.mrb[25].mxu1  ;;  %4002 = vmatpush3.bf16.msra.mxu0 %v3999_v16  ;;  %v3128_v16 = vsel %vm6136_vm5, %v2799_v14, %v2881_v7 }
 0x47f   : > { %v3781_v51 = vadd.f32 %v3780_v50, %v3779_v46  ;;  %4004 = vmatprep.subr.bf16.mxu0 %v4003_v5  ;;  %v3136_v8 = vsel %vm6137_vm6, %v3128_v16, %v2913_v59  ;;  %vm6148_vm6 = vmmov %vm6140_vm10 }
 0x480   : > { %2980 = vrot.lane.b32.xlu0 %v2810_v9, %s4063_s24 }
 0x481   : > { %3042 = vrot.lane.b32.xlu1 %v5868_v31, %s4067_s27  ;;  %v3782_v43 = vpop.f32.mrb[26].mxu1  ;;  %3883 = vmatprep.mubr.msk.f32.mxu0 %vm6132_vm11, %v3781_v51  ;;  %vm6143_vm11 = vmmov %vm6139_vm12 }
 0x482   : > { %v3783_v32 = vpop.f32.mrb[27].mxu1  ;;  %4006 = vmatpush3.bf16.msra.mxu0 %v4003_v5 }
 0x483   : > { %v3784_v28 = vadd.f32 %v3783_v32, %v3782_v43  ;;  %3905 = vmatprep.subr.mxu0 %v3204_v61 }
 0x484   : > { %3106 = vrot.lane.b32.xlu0 %v2818_v36, %s4066_s26 }
 0x485   : > { %3074 = vrot.lane.b32.xlu1 %v2810_v9, %s4065_s25  ;;  %v3785_v53 = vpop.f32.mrb[28].mxu1  ;;  %3884 = vmatmul.mubr.msk.f32.gmra.mrb[36].mxu0 %vm6133_vm13, %v3784_v28  ;;  %vm6144_vm13 = vmmov %vm6136_vm5 }
 0x486   : > { %v3786_v57 = vpop.f32.mrb[29].mxu1  ;;  %3906 = vmatpush3.msra.mxu0 %v3204_v61  ;;  %vm6147_vm5 = vmmov %vm6143_vm11 }
 0x487   : > { %v3787_v11 = vadd.f32 %v3786_v57, %v3785_v53 }
 0x488   : > { %2982 = vrot.lane.b32.xlu0 %v2834_v63, %s4063_s24 }
 0x489   : > { %3012 = vrot.lane.b32.xlu1 %v2818_v36, %s4068_s15  ;;  %v3788_v10 = vpop.f32.mrb[30].mxu1  ;;  %3886 = vmatprep.mubr.msk.f32.mxu0 %vm6134_vm3, %v3787_v11  ;;  %vm6145_vm3 = vmmov %vm6141_vm1 }
 0x48a   : > { %v3789_v38 = vpop.f32.mrb[31].mxu1 }
 0x48b   : > { %v3790_v49 = vadd.f32 %v3789_v38, %v3788_v10 }
 0x48c   : > { %2920 = vrot.lane.b32.xlu0 %v2819_v3, %s4059_s8 }
 0x48d   : > { %2950 = vrot.lane.b32.xlu1 %v5884_v17, %s4061_s14  ;;  %3887 = vmatmul.mubr.msk.f32.gmra.mrb[38].mxu0 %vm6135_vm4, %v3790_v49  ;;  %vm6146_vm4 = vmmov %vm6138_vm8 }
 0x490   : > { %3044 = vrot.lane.b32.xlu0 %v5884_v17, %s4067_s27 }
 0x491   : > { %2888 = vrot.lane.b32.xlu1 %v2834_v63, %s4056_s29 }
 0x494   : > { %3076 = vrot.lane.b32.xlu0 %v2834_v63, %s4065_s25 }
 0x495   : > { %3014 = vrot.lane.b32.xlu1 %v2819_v3, %s4068_s15 }
 0x498   : > { %3108 = vrot.lane.b32.xlu0 %v2819_v3, %s4066_s26 }
 0x499   : > { %2890 = vrot.lane.b32.xlu1 %v2812_v56, %s4056_s29 }
 0x49c   : > { %2952 = vrot.lane.b32.xlu0 %v5897_v29, %s4061_s14 }
 0x49d   : > { %2922 = vrot.lane.b32.xlu1 %v2820_v24, %s4059_s8 }
 0x4a0   : > { %2984 = vrot.lane.b32.xlu0 %v2812_v56, %s4063_s24 }
 0x4a1   : > { %3046 = vrot.lane.b32.xlu1 %v5897_v29, %s4067_s27 }
 0x4a4   : > { %3016 = vrot.lane.b32.xlu0 %v2820_v24, %s4068_s15 }
 0x4a5   : > { %3078 = vrot.lane.b32.xlu1 %v2812_v56, %s4065_s25 }
 0x4a8   : > { %2892 = vrot.lane.b32.xlu0 %v2813_v39, %s4056_s29 }
 0x4a9   : > { %3110 = vrot.lane.b32.xlu1 %v2820_v24, %s4066_s26 }
 0x4ac   : > { %2924 = vrot.lane.b32.xlu0 %v2821_v19, %s4059_s8 }
 0x4ad   : > { %2954 = vrot.lane.b32.xlu1 %v5909_v27, %s4061_s14 }
 0x4b0   : > { %3018 = vrot.lane.b32.xlu0 %v2821_v19, %s4068_s15 }
 0x4b1   : > { %2986 = vrot.lane.b32.xlu1 %v2813_v39, %s4063_s24 }
 0x4b4   : > { %2926 = vrot.lane.b32.xlu0 %v2822_v23, %s4059_s8 }
 0x4b5   : > { %3048 = vrot.lane.b32.xlu1 %v5909_v27, %s4067_s27 }
 0x4b8   : > { %2988 = vrot.lane.b32.xlu0 %v2837_v55, %s4063_s24 }
 0x4b9   : > { %3080 = vrot.lane.b32.xlu1 %v2813_v39, %s4065_s25 }
 0x4bc   : > { %3020 = vrot.lane.b32.xlu0 %v2822_v23, %s4068_s15 }
 0x4bd   : > { %2894 = vrot.lane.b32.xlu1 %v2837_v55, %s4056_s29  ;;  %s3641_s29 = sshll.u32 %s6175_s22, 6 }
 0x4c0   : > { %3050 = vrot.lane.b32.xlu0 %v5923_v45, %s4067_s27 }
 0x4c1   : > { %2956 = vrot.lane.b32.xlu1 %v5923_v45, %s4061_s14 }
 0x4c4   : > { %3052 = vrot.lane.b32.xlu0 %v2854_v20, %s4067_s27 }
 0x4c5   : > { %3082 = vrot.lane.b32.xlu1 %v2837_v55, %s4065_s25 }
 0x4c8   : > { %3084 = vrot.lane.b32.xlu0 %v2862_v18, %s4065_s25 }
 0x4c9   : > { %2958 = vrot.lane.b32.xlu1 %v2854_v20, %s4061_s14 }
 0x4cc   : > { %3112 = vrot.lane.b32.xlu0 %v2821_v19, %s4066_s26 }
 0x4cd   : > { %2990 = vrot.lane.b32.xlu1 %v2862_v18, %s4063_s24  ;;  %s251_s24 = scalar_lea.vmem %s6047_s6, %s3641_s29 }
 0x4d1   : > { %3022 = vrot.lane.b32.xlu1 %v2846_v6, %s4068_s15 }
 0x4d2   : > { %v2945_v12 = vpop.permute.xlu0 %2944 }
 0x4d3   : > { %v2883_v15 = vpop.permute.xlu1 %2882  ;;  %v3144_v48 = vsel %vm6138_vm8, %v3136_v8, %v2945_v12  ;;  %vm6149_vm8 = vmmov %vm6141_vm1 }
 0x4d4   : > { %v3129_v26 = vsel %vm6140_vm10, %v5797_v37, %v2883_v15  ;;  %vm6151_vm10 = vmmov %vm6147_vm5 }
 0x4d5   : > { %3116 = vrot.lane.b32.xlu1 %v2846_v6, %s4066_s26 }
 0x4d6   : > { %v2977_v13 = vpop.permute.xlu0 %2976 }
 0x4d7   : > { %v2915_v33 = vpop.permute.xlu1 %2914  ;;  %v3152_v42 = vsel %vm6139_vm12, %v3144_v48, %v2977_v13  ;;  %vm6150_vm12 = vmmov %vm6146_vm4 }
 0x4d8   : > { %v3137_v61 = vsel %vm6141_vm1, %v3129_v26, %v2915_v33  ;;  %vm6152_vm1 = vmmov %vm6148_vm6 }
 0x4d9   : > { %3114 = vrot.lane.b32.xlu1 %v2822_v23, %s4066_s26 }
 0x4da   : > { %v2979_v60 = vpop.permute.xlu0 %2978 }
 0x4db   : > { %v3009_v44 = vpop.permute.xlu1 %3008 }
 0x4dc   : > { %v3161_v21 = vsel %vm3160_vm7, %v3152_v42, %v3009_v44 }
 0x4de   : > { %v3011_v54 = vpop.permute.xlu0 %3010 }
 0x4df   : > { %v2947_v52 = vpop.permute.xlu1 %2946 }
 0x4e0   : > { %v3145_v36 = vsel %vm6142_vm9, %v3137_v61, %v2947_v52  ;;  %vm6153_vm9 = vmmov %vm6145_vm3 }
 0x4e1   : > { %v3153_v41 = vsel %vm6143_vm11, %v3145_v36, %v2979_v60  ;;  %vm6154_vm11 = vmmov %vm6146_vm4 }
 0x4e2   : > { %v3073_v1 = vpop.permute.xlu0 %3072  ;;  %v3162_v51 = vsel %vm3160_vm7, %v3153_v41, %v3011_v54 }
 0x4e3   : > { %v2885_v30 = vpop.permute.xlu1 %2884 }
 0x4e4   : > { %v3130_v49 = vsel %vm6144_vm13, %v5832_v22, %v2885_v30  ;;  %vm6155_vm13 = vmmov %vm6152_vm1 }
 0x4e6   : > { %v3105_v25 = vpop.permute.xlu0 %3104 }
 0x4e7   : > { %v2917_v40 = vpop.permute.xlu1 %2916 }
 0x4e8   : > { %v3138_v56 = vsel %vm6145_vm3, %v3130_v49, %v2917_v40  ;;  %vm6156_vm3 = vmmov %vm6147_vm5 }
 0x4ea   : > { %v2887_v2 = vpop.permute.xlu0 %2886 }
 0x4eb   : > { %v3041_v5 = vpop.permute.xlu1 %3040  ;;  %v3131_v15 = vsel %vm6148_vm6, %v5868_v31, %v2887_v2  ;;  %vm6159_vm6 = vmmov %vm6152_vm1 }
 0x4ec   : > { %v3170_v9 = vsel %vm3169_vm14, %v3161_v21, %v3041_v5 }
 0x4ed   : > { %v3179_v58 = vsel %vm3178_vm0, %v3170_v9, %v3073_v1 }
 0x4ee   : > { %v3188_v35 = vsel %vm3187_vm2, %v3179_v58, %v3105_v25  ;;  %v2949_v47 = vpop.permute.xlu0 %2948 }
 0x4ef   : > { %3907 = vmatprep.mubr.msk.f32.mxu0 %vm3338_vm15, %v3188_v35  ;;  %v2919_v62 = vpop.permute.xlu1 %2918  ;;  %v3146_v24 = vsel %vm6146_vm4, %v3138_v56, %v2949_v47  ;;  %vm6157_vm4 = vmmov %vm6149_vm8 }
 0x4f0   : > { %v3139_v60 = vsel %vm6149_vm8, %v3131_v15, %v2919_v62  ;;  %vm6160_vm8 = vmmov %vm6156_vm3 }
 0x4f2   : > { %v2981_v46 = vpop.permute.xlu0 %2980 }
 0x4f3   : > { %v3043_v50 = vpop.permute.xlu1 %3042  ;;  %v3154_v23 = vsel %vm6147_vm5, %v3146_v24, %v2981_v46  ;;  %vm6158_vm5 = vmmov %vm6154_vm11 }
 0x4f4   : > { %v3171_v43 = vsel %vm3169_vm14, %v3162_v51, %v3043_v50 }
 0x4f6   : > { %v3107_v32 = vpop.permute.xlu0 %3106 }
 0x4f7   : > { %v3075_v37 = vpop.permute.xlu1 %3074 }
 0x4f8   : > { %v3180_v28 = vsel %vm3178_vm0, %v3171_v43, %v3075_v37 }
 0x4f9   : > { %v3189_v63 = vsel %vm3187_vm2, %v3180_v28, %v3107_v32 }
 0x4fa   : > { %3908 = vmatmul.mubr.msk.f32.vlgmr.msra.gmra.mrb[32].mxu0 %vm3338_vm15, %v3189_v63  ;;  %v2983_v53 = vpop.permute.xlu0 %2982 }
 0x4fb   : > { %v3013_v57 = vpop.permute.xlu1 %3012 }
 0x4fc   : > { %v3163_v55 = vsel %vm3160_vm7, %v3154_v23, %v3013_v57 }
 0x4fe   : > { %v2921_v11 = vpop.permute.xlu0 %2920 }
 0x4ff   : > { %v2951_v10 = vpop.permute.xlu1 %2950 }
 0x500   : > { %v3147_v44 = vsel %vm6150_vm12, %v3139_v60, %v2951_v10  ;;  %vm6161_vm12 = vmmov %vm6157_vm4 }
 0x501   : > { %v3155_v14 = vsel %vm6151_vm10, %v3147_v44, %v2983_v53  ;;  %vm6162_vm10 = vmmov %vm6158_vm5 }
 0x502   : > { %v3045_v38 = vpop.permute.xlu0 %3044 }
 0x503   : > { %v2889_v3 = vpop.permute.xlu1 %2888  ;;  %v3172_v7 = vsel %vm3169_vm14, %v3163_v55, %v3045_v38 }
 0x504   : > { %v3132_v62 = vsel %vm6152_vm1, %v5884_v17, %v2889_v3 }
 0x505   : > { %v3140_v46 = vsel %vm6153_vm9, %v3132_v62, %v2921_v11  ;;  %vm6163_vm9 = vmmov %vm6156_vm3 }
 0x506   : > { %v3077_v39 = vpop.permute.xlu0 %3076 }
 0x507   : > { %v3015_v19 = vpop.permute.xlu1 %3014  ;;  %v3181_v59 = vsel %vm3178_vm0, %v3172_v7, %v3077_v39 }
 0x508   : > { %v3164_v1 = vsel %vm3160_vm7, %v3155_v14, %v3015_v19 }
 0x50a   : > { %v3109_v20 = vpop.permute.xlu0 %3108 }
 0x50b   : > { %v2891_v18 = vpop.permute.xlu1 %2890  ;;  %v3190_v6 = vsel %vm3187_vm2, %v3181_v59, %v3109_v20 }
 0x50c   : > { %3910 = vmatprep.mubr.msk.f32.mxu0 %vm3338_vm15, %v3190_v6  ;;  %v3133_v24 = vsel %vm6152_vm1, %v5897_v29, %v2891_v18 }
 0x50e   : > { %v2953_v22 = vpop.permute.xlu0 %2952 }
 0x50f   : > { %v2923_v12 = vpop.permute.xlu1 %2922  ;;  %v3148_v50 = vsel %vm6154_vm11, %v3140_v46, %v2953_v22  ;;  %vm6164_vm11 = vmmov %vm6157_vm4 }
 0x510   : > { %v3141_v23 = vsel %vm6164_vm11, %v3133_v24, %v2923_v12 }
 0x512   : > { %v2985_v13 = vpop.permute.xlu0 %2984 }
 0x513   : > { %v3047_v33 = vpop.permute.xlu1 %3046  ;;  %v3156_v37 = vsel %vm6156_vm3, %v3148_v50, %v2985_v13 }
 0x514   : > { %v3173_v30 = vsel %vm3169_vm14, %v3164_v1, %v3047_v33 }
 0x516   : > { %v3017_v54 = vpop.permute.xlu0 %3016 }
 0x517   : > { %v3079_v52 = vpop.permute.xlu1 %3078  ;;  %v3165_v63 = vsel %vm3160_vm7, %v3156_v37, %v3017_v54 }
 0x518   : > { %v3182_v16 = vsel %vm3178_vm0, %v3173_v30, %v3079_v52 }
 0x51a   : > { %v2893_v25 = vpop.permute.xlu0 %2892 }
 0x51b   : > { %v3111_v40 = vpop.permute.xlu1 %3110  ;;  %v3134_v51 = vsel %vm6155_vm13, %v5909_v27, %v2893_v25  ;;  %vm6165_vm13 = vmmov %vm6158_vm5 }
 0x51c   : > { %v3191_v31 = vsel %vm3187_vm2, %v3182_v16, %v3111_v40 }
 0x51d   : > { %3911 = vmatmul.mubr.msk.f32.gmra.mrb[34].mxu0 %vm3338_vm15, %v3191_v31 }
 0x51e   : > { %v2925_v8 = vpop.permute.xlu0 %2924 }
 0x51f   : > { %v2955_v48 = vpop.permute.xlu1 %2954  ;;  %v3142_v28 = vsel %vm6157_vm4, %v3134_v51, %v2925_v8 }
 0x520   : > { %v3149_v7 = vsel %vm6165_vm13, %v3141_v23, %v2955_v48 }
 0x522   : > { %v3019_v42 = vpop.permute.xlu0 %3018 }
 0x523   : > { %v2987_v21 = vpop.permute.xlu1 %2986 }
 0x524   : > { %v3157_v20 = vsel %vm6156_vm3, %v3149_v7, %v2987_v21 }
 0x525   : > { %v3166_v15 = vsel %vm3160_vm7, %v3157_v20, %v3019_v42 }
 0x526   : > { %v2927_v2 = vpop.permute.xlu0 %2926 }
 0x527   : > { %v3049_v5 = vpop.permute.xlu1 %3048 }
 0x528   : > { %v3174_v17 = vsel %vm3169_vm14, %v3165_v63, %v3049_v5 }
 0x52a   : > { %v2989_v9 = vpop.permute.xlu0 %2988 }
 0x52b   : > { %v3081_v58 = vpop.permute.xlu1 %3080 }
 0x52c   : > { %v3183_v11 = vsel %vm3178_vm0, %v3174_v17, %v3081_v58 }
 0x52e   : > { %v3021_v26 = vpop.permute.xlu0 %3020 }
 0x52f   : > { %v2895_v35 = vpop.permute.xlu1 %2894 }
 0x530   : > { %v3135_v57 = vsel %vm6159_vm6, %v5923_v45, %v2895_v35 }
 0x531   : > { %v3143_v49 = vsel %vm6161_vm12, %v3135_v57, %v2927_v2 }
 0x532   : > { %v3051_v61 = vpop.permute.xlu0 %3050 }
 0x533   : > { %v2957_v47 = vpop.permute.xlu1 %2956  ;;  %v3175_v13 = vsel %vm3169_vm14, %v3166_v15, %v3051_v61 }
 0x534   : > { %v3150_v53 = vsel %vm6158_vm5, %v3142_v28, %v2957_v47 }
 0x535   : > { %v3158_v27 = vsel %vm6160_vm8, %v3150_v53, %v2989_v9 }
 0x536   : > { %v3053_v36 = vpop.permute.xlu0 %3052  ;;  %v3167_v39 = vsel %vm3160_vm7, %v3158_v27, %v3021_v26 }
 0x537   : > { %v3083_v41 = vpop.permute.xlu1 %3082  ;;  %v3176_v6 = vsel %vm3169_vm14, %v3167_v39, %v3053_v36 }
 0x538   : > { %v3184_v33 = vsel %vm3178_vm0, %v3175_v13, %v3083_v41 }
 0x53a   : > { %v3085_v43 = vpop.permute.xlu0 %3084 }
 0x53b   : > { %v2959_v32 = vpop.permute.xlu1 %2958  ;;  %v3185_v18 = vsel %vm3178_vm0, %v3176_v6, %v3085_v43 }
 0x53c   : > { %v3151_v56 = vsel %vm6162_vm10, %v3143_v49, %v2959_v32 }
 0x53e   : > { %v3113_v10 = vpop.permute.xlu0 %3112 }
 0x53f   : > { %v2991_v38 = vpop.permute.xlu1 %2990  ;;  %v3192_v3 = vsel %vm3187_vm2, %v3183_v11, %v3113_v10 }
 0x540   : > { %3913 = vmatprep.mubr.msk.f32.mxu0 %vm3338_vm15, %v3192_v3  ;;  %v3159_v45 = vsel %vm6163_vm9, %v3151_v56, %v2991_v38 }
 0x543   : > { %v3023_v19 = vpop.permute.xlu1 %3022 }
 0x544   : > { %v3168_v55 = vsel %vm3160_vm7, %v3159_v45, %v3023_v19  ;;  %vm6166_vm7 = vmmov %vm6152_vm1 }
 0x545   : > { %v3177_v59 = vsel %vm3169_vm14, %v3168_v55, %v5939_v4  ;;  %vm6167_vm14 = vmmov %vm6152_vm1 }
 0x546   : > { %v3186_v29 = vsel %vm3178_vm0, %v3177_v59, %v5931_v34  ;;  %vm6168_vm0 = vmmov %vm6152_vm1 }
 0x547   : > { %v3117_v22 = vpop.permute.xlu1 %3116  ;;  %v3195_v4 = vsel %vm3187_vm2, %v3186_v29, %v5937_v0  ;;  %vm6171_vm4 = vmmov %vm6168_vm0 }
 0x548   : > { %v3194_v12 = vsel %vm3187_vm2, %v3185_v18, %v3117_v22  ;;  %vm6172_vm5 = vmmov %vm6168_vm0 }
 0x549   : > { %3916 = vmatprep.mubr.msk.f32.mxu1 %vm3338_vm15, %v3194_v12  ;;  %vm6173_vm6 = vmmov %vm6168_vm0 }
 0x54a   : > { %3917 = vmatmul.mubr.msk.f32.vlgmr.msra.gmra.mrb[32].mxu1 %vm3338_vm15, %v3195_v4 }
 0x54b   : > { %v3115_v60 = vpop.permute.xlu1 %3114 }
 0x54c   : > { %v3193_v34 = vsel %vm3187_vm2, %v3184_v33, %v3115_v60  ;;  %vm6169_vm2 = vmmov %vm6168_vm0 }
 0x54d   : > { %3914 = vmatmul.mubr.msk.f32.gmra.mrb[36].mxu0 %vm3338_vm15, %v3193_v34  ;;  %vm6170_vm15 = vmmov %vm6168_vm0 }
 0x560   : > { %v3888_v44 = vpop.f32.mrb[38].mxu0 }
 0x561   : > { %v3329_v54 = vpop.f32.mrb[39].mxu0 }
 0x5cd   : > { %v3909_v52 = vpop.f32.mrb[32].mxu0 }
 0x5ce   : > { %3469 = vst.msk [vmem:[%s251_s24 + $0x8] sm:$0xff] %vm6166_vm7, %v3909_v52  ;;  %v3429_v0 = vpop.f32.mrb[33].mxu0 }
 0x5cf   : > { %3468 = vst.msk [vmem:[%s251_s24] sm:$0xff] %vm6167_vm14, %v3429_v0 }
 0x5f0   : > { %v3912_v14 = vpop.f32.mrb[34].mxu0 }
 0x5f1   : > { %3471 = vst.msk [vmem:[%s251_s24 + $0x18] sm:$0xff] %vm6168_vm0, %v3912_v14  ;;  %v3439_v1 = vpop.f32.mrb[35].mxu0 }
 0x5f2   : > { %3470 = vst.msk [vmem:[%s251_s24 + $0x10] sm:$0xff] %vm6169_vm2, %v3439_v1 }
 0x61d   : > { %v3918_v30 = vpop.f32.mrb[32].mxu1 }
 0x61e   : > { %v3465_v16 = vadd.f32 %v3918_v30, %v3888_v44  ;;  %v3459_v25 = vpop.f32.mrb[33].mxu1 }
 0x61f   : > { %v3460_v40 = vadd.f32 %v3459_v25, %v3329_v54 }
 0x620   : > { %3475 = vst.msk [vmem:[%s251_s24 + $0x38] sm:$0xff] %vm6170_vm15, %v3465_v16  ;;  %v3915_v31 = vpop.f32.mrb[36].mxu0 }
 0x621   : > { %3474 = vst.msk [vmem:[%s251_s24 + $0x30] sm:$0xff] %vm6171_vm4, %v3460_v40  ;;  %v3449_v8 = vpop.f32.mrb[37].mxu0 }
 0x622   : > { %3473 = vst.msk [vmem:[%s251_s24 + $0x28] sm:$0xff] %vm6172_vm5, %v3915_v31 }
 0x623   : > { %3472 = vst.msk [vmem:[%s251_s24 + $0x20] sm:$0xff] %vm6173_vm6, %v3449_v8 }
 0x624 PF: > { %s16_s21 = sadd.s32 1, %s4053_s21  }
 0x625   : > { %p13_p4 = scmp.ge.s32.totalorder %s16_s21, 4  }
 0x627   :  { %15 = sbr.rel (!%p13_p4) target bundleno = 1 (0x1), region = 78 }

</bundles_post_ra>
